<compile_context>
chip_gen: v7x
topology: tpu7x:2x2x1
jax: 0.10.0
libtpu: 0.0.40
codegen_flags: <defaults>
</compile_context>

<pallas_src>
import jax
import jax.numpy as jnp
import numpy as np
from jax.experimental import pallas as pl
from jax.experimental.pallas import tpu as pltpu


def _generator_kernel(x_ref, w1_ref, b1_ref, w2_ref, b2_ref, o_ref):
    """Fused: o = relu( leaky_relu(x @ w1 + b1, 0.2) @ w2 + b2 ).

    Single grid step; all operands are full VMEM-resident blocks.
    x/w1/w2 are bf16; both matmuls accumulate in f32 on the MXU.
    """
    # fc1 + LeakyReLU(0.2)   -- h stays on-chip (never written to HBM)
    h = jnp.dot(x_ref[...], w1_ref[...], preferred_element_type=jnp.float32)
    h = h + b1_ref[...]                      # f32 bias, broadcast over batch
    h = jnp.where(h > 0, h, 0.2 * h)         # LeakyReLU(negative_slope=0.2)

    # fc2 + ReLU
    o = jnp.dot(h.astype(w2_ref.dtype), w2_ref[...],
                preferred_element_type=jnp.float32)
    o = o + b2_ref[...]
    o = jnp.maximum(o, 0.0)                  # ReLU
    o_ref[...] = o.astype(o_ref.dtype)


def generator_forward(noise, att, params):
    """Pallas implementation of Generator.forward (one fused kernel)."""
    # concat along feature axis (glue, plain JAX), then bf16 for the MXU
    x = jnp.concatenate((noise, att), axis=1).astype(jnp.bfloat16)
    M, K1 = x.shape
    H = params["w1"].shape[1]
    N = params["w2"].shape[1]

    w1 = params["w1"].astype(jnp.bfloat16)
    w2 = params["w2"].astype(jnp.bfloat16)
    b1 = params["b1"].reshape(1, H).astype(jnp.float32)
    b2 = params["b2"].reshape(1, N).astype(jnp.float32)

    return pl.pallas_call(
        _generator_kernel,
        out_shape=jax.ShapeDtypeStruct((M, N), jnp.float32),
        grid_spec=pltpu.PrefetchScalarGridSpec(
            num_scalar_prefetch=0,
            grid=(1,),  # single step: whole problem fits VMEM (~3 MiB in bf16)
            in_specs=[
                pl.BlockSpec((M, K1), lambda i: (0, 0)),   # x  (bf16)
                pl.BlockSpec((K1, H), lambda i: (0, 0)),   # w1 (bf16)
                pl.BlockSpec((1, H), lambda i: (0, 0)),    # b1 (f32)
                pl.BlockSpec((H, N), lambda i: (0, 0)),    # w2 (bf16)
                pl.BlockSpec((1, N), lambda i: (0, 0)),    # b2 (f32)
            ],
            out_specs=pl.BlockSpec((M, N), lambda i: (0, 0)),
        ),
        compiler_params=pltpu.CompilerParams(
            dimension_semantics=("arbitrary",),
        ),
    )(x, w1, b1, w2, b2)


def init_params(key, att_size, noise_size, res_size, hidden=4096):
    """Deterministic synthetic init matching weights_init:
    Linear.weight ~ N(0, 0.02), Linear.bias = 0.
    Weights stored as (in_features, out_features) so the kernel computes x @ W."""
    k1, k2 = jax.random.split(key)
    d_in = att_size + noise_size
    w1 = 0.02 * jax.random.normal(k1, (d_in, hidden), dtype=jnp.float32)
    b1 = jnp.zeros((hidden,), dtype=jnp.float32)
    w2 = 0.02 * jax.random.normal(k2, (hidden, res_size), dtype=jnp.float32)
    b2 = jnp.zeros((res_size,), dtype=jnp.float32)
    return {"w1": w1, "b1": b1, "w2": w2, "b2": b2}


if __name__ == "__main__":
    # Small shapes consistent with the module: batch=8, attSize=32,
    # noiseSize=32, resSize=256; hidden is fixed at 4096 by the module.
    batch, att_size, noise_size, res_size = 8, 32, 32, 256

    key = jax.random.PRNGKey(0)
    kp, kn, ka = jax.random.split(key, 3)

    params = init_params(kp, att_size, noise_size, res_size)
    noise = jax.random.normal(kn, (batch, noise_size), dtype=jnp.float32)
    att = jax.random.normal(ka, (batch, att_size), dtype=jnp.float32)

    out = jax.jit(generator_forward)(noise, att, params)
    out = jax.block_until_ready(out)

    # reference check (plain JAX, same bf16-in / f32-accumulate recipe) —
    # silent unless it fails
    i_bf = jnp.concatenate((noise, att), axis=1).astype(jnp.bfloat16)
    w1_bf = params["w1"].astype(jnp.bfloat16)
    w2_bf = params["w2"].astype(jnp.bfloat16)
    h_ref = jnp.dot(i_bf, w1_bf, preferred_element_type=jnp.float32) + params["b1"]
    h_ref = jnp.where(h_ref > 0, h_ref, 0.2 * h_ref)
    o_ref = jnp.dot(h_ref.astype(jnp.bfloat16), w2_bf,
                    preferred_element_type=jnp.float32) + params["b2"]
    o_ref = jnp.maximum(o_ref, 0.0)
    np.testing.assert_allclose(np.asarray(out), np.asarray(o_ref),
                               rtol=2e-2, atol=2e-2)

    print("KERNEL_OK")
</pallas_src>

<mosaic_0001>
module attributes {stable_mosaic.version = 11 : i64} {
  func.func @_generator_kernel(%arg0: i32, %arg1: memref<8x64xbf16, #tpu.memory_space<vmem>>, %arg2: memref<64x4096xbf16, #tpu.memory_space<vmem>>, %arg3: memref<1x4096xf32, #tpu.memory_space<vmem>>, %arg4: memref<4096x256xbf16, #tpu.memory_space<vmem>>, %arg5: memref<1x256xf32, #tpu.memory_space<vmem>>, %arg6: memref<8x256xf32, #tpu.memory_space<vmem>>) attributes {dimension_semantics = [#tpu.dimension_semantics<arbitrary>], iteration_bounds = array<i64: 1>, scalar_prefetch = 0 : i64, scratch_operands = 0 : i64, tpu.core_type = #tpu.core_type<tc>, window_params = [{pipeline_mode = #tpu.pipeline_mode<synchronous>, transform_indices = @transform_0, window_bounds = array<i64: 8, 64>}, {pipeline_mode = #tpu.pipeline_mode<synchronous>, transform_indices = @transform_1, window_bounds = array<i64: 64, 4096>}, {pipeline_mode = #tpu.pipeline_mode<synchronous>, transform_indices = @transform_2, window_bounds = array<i64: 1, 4096>}, {pipeline_mode = #tpu.pipeline_mode<synchronous>, transform_indices = @transform_3, window_bounds = array<i64: 4096, 256>}, {pipeline_mode = #tpu.pipeline_mode<synchronous>, transform_indices = @transform_4, window_bounds = array<i64: 1, 256>}, {pipeline_mode = #tpu.pipeline_mode<synchronous>, transform_indices = @transform_5, window_bounds = array<i64: 8, 256>}]} {
    %c0 = arith.constant 0 : index
    %c0_0 = arith.constant 0 : index
    %0 = vector.load %arg1[%c0, %c0_0] : memref<8x64xbf16, #tpu.memory_space<vmem>>, vector<8x64xbf16>
    %c0_1 = arith.constant 0 : index
    %c0_2 = arith.constant 0 : index
    %1 = vector.load %arg2[%c0_1, %c0_2] : memref<64x4096xbf16, #tpu.memory_space<vmem>>, vector<64x4096xbf16>
    %cst = arith.constant dense<0.000000e+00> : vector<8x4096xf32>
    %2 = tpu.matmul %0, %1, %cst {dimension_numbers = #tpu.dot_dimension_numbers<[1], [0], [0], [1], [0, 0, 1, 1], [], []>} : vector<8x64xbf16>, vector<64x4096xbf16>, vector<8x4096xf32> -> vector<8x4096xf32>
    %c0_3 = arith.constant 0 : index
    %c0_4 = arith.constant 0 : index
    %3 = vector.load %arg3[%c0_3, %c0_4] : memref<1x4096xf32, #tpu.memory_space<vmem>>, vector<1x4096xf32>
    %4 = vector.broadcast %3 : vector<1x4096xf32> to vector<8x4096xf32>
    %5 = arith.addf %2, %4 : vector<8x4096xf32>
    %cst_5 = arith.constant 0.000000e+00 : f32
    %6 = vector.broadcast %cst_5 : f32 to vector<8x4096xf32>
    %7 = arith.cmpf ogt, %5, %6 : vector<8x4096xf32>
    %cst_6 = arith.constant 2.000000e-01 : f32
    %8 = vector.broadcast %cst_6 : f32 to vector<8x4096xf32>
    %9 = arith.mulf %8, %5 : vector<8x4096xf32>
    %10 = arith.select %7, %5, %9 : vector<8x4096xi1>, vector<8x4096xf32>
    %11 = arith.truncf %10 : vector<8x4096xf32> to vector<8x4096xbf16>
    %c0_7 = arith.constant 0 : index
    %c0_8 = arith.constant 0 : index
    %12 = vector.load %arg4[%c0_7, %c0_8] : memref<4096x256xbf16, #tpu.memory_space<vmem>>, vector<4096x256xbf16>
    %cst_9 = arith.constant dense<0.000000e+00> : vector<8x256xf32>
    %13 = tpu.matmul %11, %12, %cst_9 {dimension_numbers = #tpu.dot_dimension_numbers<[1], [0], [0], [1], [0, 0, 1, 1], [], []>} : vector<8x4096xbf16>, vector<4096x256xbf16>, vector<8x256xf32> -> vector<8x256xf32>
    %c0_10 = arith.constant 0 : index
    %c0_11 = arith.constant 0 : index
    %14 = vector.load %arg5[%c0_10, %c0_11] : memref<1x256xf32, #tpu.memory_space<vmem>>, vector<1x256xf32>
    %15 = vector.broadcast %14 : vector<1x256xf32> to vector<8x256xf32>
    %16 = arith.addf %13, %15 : vector<8x256xf32>
    %cst_12 = arith.constant 0.000000e+00 : f32
    %17 = vector.broadcast %cst_12 : f32 to vector<8x256xf32>
    %18 = arith.maximumf %16, %17 : vector<8x256xf32>
    %c0_13 = arith.constant 0 : index
    %c0_14 = arith.constant 0 : index
    %19 = vector.load %arg6[%c0_13, %c0_14] : memref<8x256xf32, #tpu.memory_space<vmem>>, vector<8x256xf32>
    tpu.vector_store %arg6[%c0_13, %c0_14], %18 {strides = array<i32>} : memref<8x256xf32, #tpu.memory_space<vmem>>, vector<8x256xf32>,
    return
  }
  func.func @transform_0(%arg0: i32) -> (i32, i32) {
    %c0_i32 = arith.constant 0 : i32
    %c0_i32_0 = arith.constant 0 : i32
    %c0_i32_1 = arith.constant 0 : i32
    return %c0_i32, %c0_i32_0 : i32, i32
  }
  func.func @transform_1(%arg0: i32) -> (i32, i32) {
    %c0_i32 = arith.constant 0 : i32
    %c0_i32_0 = arith.constant 0 : i32
    %c0_i32_1 = arith.constant 0 : i32
    return %c0_i32, %c0_i32_0 : i32, i32
  }
  func.func @transform_2(%arg0: i32) -> (i32, i32) {
    %c0_i32 = arith.constant 0 : i32
    %c0_i32_0 = arith.constant 0 : i32
    %c0_i32_1 = arith.constant 0 : i32
    return %c0_i32, %c0_i32_0 : i32, i32
  }
  func.func @transform_3(%arg0: i32) -> (i32, i32) {
    %c0_i32 = arith.constant 0 : i32
    %c0_i32_0 = arith.constant 0 : i32
    %c0_i32_1 = arith.constant 0 : i32
    return %c0_i32, %c0_i32_0 : i32, i32
  }
  func.func @transform_4(%arg0: i32) -> (i32, i32) {
    %c0_i32 = arith.constant 0 : i32
    %c0_i32_0 = arith.constant 0 : i32
    %c0_i32_1 = arith.constant 0 : i32
    return %c0_i32, %c0_i32_0 : i32, i32
  }
  func.func @transform_5(%arg0: i32) -> (i32, i32) {
    %c0_i32 = arith.constant 0 : i32
    %c0_i32_0 = arith.constant 0 : i32
    %c0_i32_1 = arith.constant 0 : i32
    return %c0_i32, %c0_i32_0 : i32, i32
  }
}

</mosaic_0001>

<bundles_post_ra>
// kernel: generator_forward.1
= control target key start
LH: loop header
LB: loop body
LE: loop exit
PB: predicated region body
PF: predicated region fallthrough
CT: control target
= control target key end

     0   :  { %v7020_v6 = vmov 0   ;;  %vm959_vm0 = vcmask 523264   ;;  %s9254_s0 = inlined_call_operand.vmem [shape: bf16[8,64], index: 0, kind: input, shape index: {}]   ;;  %s9255_s1 = inlined_call_operand.vmem [shape: bf16[64,4096], index: 1, kind: input, shape index: {}]   ;;  %s9256_s2 = inlined_call_operand.vmem [shape: f32[1,4096], index: 2, kind: input, shape index: {}]   ;;  %s9257_s3 = inlined_call_operand.vmem [shape: bf16[4096,256], index: 3, kind: input, shape index: {}]   ;;  %s9258_s4 = inlined_call_operand.vmem [shape: f32[1,256], index: 4, kind: input, shape index: {}]   ;;  %s9259_s5 = inlined_call_operand.hbm [shape: f32[8,256], index: 5, kind: output, shape index: {}]  }
   0x1   :  { %v23_v0 = vld [vmem:[%s9255_s1] sm:$0xff]  ;;  %995 = vmatprep.mubr.bf16.mxu0 %v7020_v6  ;;  %1036 = vmatprep.mubr.bf16.mxu1 %v7020_v6  ;;  %v24_v14 = vld [vmem:[%s9255_s1 + $0x8] sm:$0xff]  ;;  %v25_v18 = vld [vmem:[%s9255_s1 + $0x10] sm:$0xff] }
   0x2   :  { %v39_v1 = vld [vmem:[%s9255_s1 + $0x80] sm:$0xff]  ;;  %v40_v16 = vld [vmem:[%s9255_s1 + $0x88] sm:$0xff]  ;;  %v41_v23 = vld [vmem:[%s9255_s1 + $0x90] sm:$0xff] }
   0x3   :  { %v55_v2 = vld [vmem:[%s9255_s1 + $0x100] sm:$0xff]  ;;  %v5506_v3 = vcombine.high %v23_v0, %v39_v1  ;;  %v5505_v4 = vcombine.low %v23_v0, %v39_v1  ;;  %v5508_v19 = vcombine.high %v24_v14, %v40_v16  ;;  %v5507_v20 = vcombine.low %v24_v14, %v40_v16  ;;  %v56_v21 = vld [vmem:[%s9255_s1 + $0x108] sm:$0xff]  ;;  %v57_v31 = vld [vmem:[%s9255_s1 + $0x110] sm:$0xff] }
   0x4   :  { %v71_v5 = vld [vmem:[%s9255_s1 + $0x180] sm:$0xff]  ;;  %v72_v22 = vld [vmem:[%s9255_s1 + $0x188] sm:$0xff]  ;;  %v5510_v29 = vcombine.high %v25_v18, %v41_v23  ;;  %v73_v32 = vld [vmem:[%s9255_s1 + $0x190] sm:$0xff]  ;;  %v5509_v36 = vcombine.low %v25_v18, %v41_v23 }
   0x5   :  { %v5538_v7 = vcombine.high %v55_v2, %v71_v5  ;;  %v87_v8 = vld [vmem:[%s9255_s1 + $0x200] sm:$0xff]  ;;  %963 = vmatprep.subr.bf16.mxu0 %v5506_v3  ;;  %v5537_v10 = vcombine.low %v55_v2, %v71_v5  ;;  %v5540_v24 = vcombine.high %v56_v21, %v72_v22  ;;  %v88_v25 = vld [vmem:[%s9255_s1 + $0x208] sm:$0xff]  ;;  %1004 = vmatprep.subr.bf16.mxu1 %v5508_v19  ;;  %v89_v39 = vld [vmem:[%s9255_s1 + $0x210] sm:$0xff] }
   0x6   :  { %v103_v9 = vld [vmem:[%s9255_s1 + $0x280] sm:$0xff]  ;;  %964 = vmatpush1.bf16.msra.mxu0 %v5505_v4  ;;  %v104_v26 = vld [vmem:[%s9255_s1 + $0x288] sm:$0xff]  ;;  %1005 = vmatpush1.bf16.msra.mxu1 %v5507_v20  ;;  %v5539_v28 = vcombine.low %v56_v21, %v72_v22  ;;  %v5542_v37 = vcombine.high %v57_v31, %v73_v32  ;;  %v105_v40 = vld [vmem:[%s9255_s1 + $0x290] sm:$0xff]  ;;  %v5541_v44 = vcombine.low %v57_v31, %v73_v32 }
   0x7   :  { %965 = vmatprep.subr.bf16.mxu0 %v5538_v7  ;;  %v5570_v11 = vcombine.high %v87_v8, %v103_v9  ;;  %v119_v12 = vld [vmem:[%s9255_s1 + $0x300] sm:$0xff]  ;;  %v5569_v15 = vcombine.low %v87_v8, %v103_v9  ;;  %1006 = vmatprep.subr.bf16.mxu1 %v5540_v24  ;;  %v5572_v30 = vcombine.high %v88_v25, %v104_v26  ;;  %v120_v33 = vld [vmem:[%s9255_s1 + $0x308] sm:$0xff]  ;;  %v26_v42 = vld [vmem:[%s9255_s1 + $0x18] sm:$0xff] }
   0x8   :  { %v135_v13 = vld [vmem:[%s9255_s1 + $0x380] sm:$0xff]  ;;  %v136_v34 = vld [vmem:[%s9255_s1 + $0x388] sm:$0xff]  ;;  %v5571_v38 = vcombine.low %v88_v25, %v104_v26  ;;  %v42_v43 = vld [vmem:[%s9255_s1 + $0x98] sm:$0xff]  ;;  %v5574_v45 = vcombine.high %v89_v39, %v105_v40  ;;  %v5573_v52 = vcombine.low %v89_v39, %v105_v40 }
   0x9   :  { %v5602_v17 = vcombine.high %v119_v12, %v135_v13  ;;  %v5601_v27 = vcombine.low %v119_v12, %v135_v13  ;;  %v7117_v35 = vld [vmem:[%s9254_s0] sm:$0xf]  ;;  %v5604_v41 = vcombine.high %v120_v33, %v136_v34  ;;  %v5603_v46 = vcombine.low %v120_v33, %v136_v34  ;;  %v121_v47 = vld [vmem:[%s9255_s1 + $0x310] sm:$0xff]  ;;  %v58_v50 = vld [vmem:[%s9255_s1 + $0x118] sm:$0xff] }
   0xa   :  { %966 = vmatpush1.bf16.msra.mxu0 %v5537_v10  ;;  %1007 = vmatpush1.bf16.msra.mxu1 %v5539_v28  ;;  %v137_v48 = vld [vmem:[%s9255_s1 + $0x390] sm:$0xff]  ;;  %v5512_v49 = vcombine.high %v26_v42, %v42_v43  ;;  %v74_v51 = vld [vmem:[%s9255_s1 + $0x198] sm:$0xff]  ;;  %v5511_v54 = vcombine.low %v26_v42, %v42_v43  ;;  %v27_v55 = vld [vmem:[%s9255_s1 + $0x20] sm:$0xff] }
   0xb   :  { %967 = vmatprep.subr.bf16.mxu0 %v5570_v11  ;;  %1008 = vmatprep.subr.bf16.mxu1 %v5572_v30  ;;  %v5606_v53 = vcombine.high %v121_v47, %v137_v48  ;;  %v43_v56 = vld [vmem:[%s9255_s1 + $0xa0] sm:$0xff]  ;;  %v5544_v57 = vcombine.high %v58_v50, %v74_v51  ;;  %v90_v58 = vld [vmem:[%s9255_s1 + $0x218] sm:$0xff]  ;;  %v5605_v60 = vcombine.low %v121_v47, %v137_v48  ;;  %v28_v11 = vld [vmem:[%s9255_s1 + $0x28] sm:$0xff] }
   0xc   :  { %v106_v59 = vld [vmem:[%s9255_s1 + $0x298] sm:$0xff]  ;;  %v5514_v61 = vcombine.high %v27_v55, %v43_v56  ;;  %v5543_v62 = vcombine.low %v58_v50, %v74_v51  ;;  %v59_v63 = vld [vmem:[%s9255_s1 + $0x120] sm:$0xff]  ;;  %v5513_v4 = vcombine.low %v27_v55, %v43_v56  ;;  %v44_v12 = vld [vmem:[%s9255_s1 + $0xa8] sm:$0xff] }
   0xd   :  { %v75_v0 = vld [vmem:[%s9255_s1 + $0x1a0] sm:$0xff]  ;;  %v5576_v1 = vcombine.high %v90_v58, %v106_v59  ;;  %v122_v2 = vld [vmem:[%s9255_s1 + $0x318] sm:$0xff]  ;;  %v5575_v7 = vcombine.low %v90_v58, %v106_v59  ;;  %v5516_v18 = vcombine.high %v28_v11, %v44_v12  ;;  %v60_v19 = vld [vmem:[%s9255_s1 + $0x128] sm:$0xff]  ;;  %v5515_v23 = vcombine.low %v28_v11, %v44_v12 }
   0xe   :  { %968 = vmatpush1.bf16.msra.mxu0 %v5569_v15  ;;  %1009 = vmatpush1.bf16.msra.mxu1 %v5571_v38  ;;  %v138_v3 = vld [vmem:[%s9255_s1 + $0x398] sm:$0xff]  ;;  %v5546_v5 = vcombine.high %v59_v63, %v75_v0  ;;  %v91_v8 = vld [vmem:[%s9255_s1 + $0x220] sm:$0xff]  ;;  %v5545_v13 = vcombine.low %v59_v63, %v75_v0  ;;  %v76_v20 = vld [vmem:[%s9255_s1 + $0x1a8] sm:$0xff] }
   0xf   :  { %969 = vmatprep.subr.bf16.mxu0 %v5602_v17  ;;  %1010 = vmatprep.subr.bf16.mxu1 %v5604_v41  ;;  %v107_v9 = vld [vmem:[%s9255_s1 + $0x2a0] sm:$0xff]  ;;  %v5608_v10 = vcombine.high %v122_v2, %v138_v3  ;;  %v5607_v16 = vcombine.low %v122_v2, %v138_v3  ;;  %v29_v24 = vld [vmem:[%s9255_s1 + $0x30] sm:$0xff]  ;;  %v5548_v26 = vcombine.high %v60_v19, %v76_v20  ;;  %v108_v28 = vld [vmem:[%s9255_s1 + $0x2a8] sm:$0xff] }
  0x10   :  { %v5578_v14 = vcombine.high %v91_v8, %v107_v9  ;;  %v123_v15 = vld [vmem:[%s9255_s1 + $0x320] sm:$0xff]  ;;  %v5577_v21 = vcombine.low %v91_v8, %v107_v9  ;;  %v45_v25 = vld [vmem:[%s9255_s1 + $0xb0] sm:$0xff]  ;;  %v5547_v31 = vcombine.low %v60_v19, %v76_v20  ;;  %v94_v59 = vld [vmem:[%s9255_s1 + $0x238] sm:$0xff] }
  0x11   :  { %v139_v17 = vld [vmem:[%s9255_s1 + $0x3a0] sm:$0xff]  ;;  %v5518_v30 = vcombine.high %v29_v24, %v45_v25  ;;  %v61_v32 = vld [vmem:[%s9255_s1 + $0x130] sm:$0xff]  ;;  %v5517_v38 = vcombine.low %v29_v24, %v45_v25  ;;  %v126_v3 = vld [vmem:[%s9255_s1 + $0x338] sm:$0xff] }
  0x12   :  { %970 = vmatpush1.bf16.msra.mxu0 %v5601_v27  ;;  %1011 = vmatpush1.bf16.msra.mxu1 %v5603_v46  ;;  %v5610_v22 = vcombine.high %v123_v15, %v139_v17  ;;  %v92_v27 = vld [vmem:[%s9255_s1 + $0x228] sm:$0xff]  ;;  %v77_v33 = vld [vmem:[%s9255_s1 + $0x1b0] sm:$0xff]  ;;  %v31_v56 = vld [vmem:[%s9255_s1 + $0x40] sm:$0xff] }
  0x13   :  { %1045 = vmatprep.subr.bf16.mxu0 %v5510_v29  ;;  %1086 = vmatprep.subr.bf16.mxu1 %v5512_v49  ;;  %v5609_v29 = vcombine.low %v123_v15, %v139_v17  ;;  %v5580_v34 = vcombine.high %v92_v27, %v108_v28  ;;  %v5550_v39 = vcombine.high %v61_v32, %v77_v33  ;;  %v93_v41 = vld [vmem:[%s9255_s1 + $0x230] sm:$0xff]  ;;  %v63_v0 = vld [vmem:[%s9255_s1 + $0x140] sm:$0xff]  ;;  %v32_v12 = vld [vmem:[%s9255_s1 + $0x48] sm:$0xff] }
  0x14   :  { %v5579_v40 = vcombine.low %v92_v27, %v108_v28  ;;  %v109_v42 = vld [vmem:[%s9255_s1 + $0x2b0] sm:$0xff]  ;;  %v5549_v46 = vcombine.low %v61_v32, %v77_v33  ;;  %v95_v8 = vld [vmem:[%s9255_s1 + $0x240] sm:$0xff]  ;;  %v64_v20 = vld [vmem:[%s9255_s1 + $0x148] sm:$0xff] }
  0x15   :  { %5633 = vmatmul.mubr.msk.bf16.vlgmr.msra.gmra.mrb[0].mxu0 %vm959_vm0, %v7117_v35  ;;  %5634 = vmatmul.mubr.msk.bf16.vlgmr.msra.gmra.mrb[0].mxu1 %vm959_vm0, %v7117_v35  ;;  %v5582_v47 = vcombine.high %v93_v41, %v109_v42  ;;  %v125_v49 = vld [vmem:[%s9255_s1 + $0x330] sm:$0xff]  ;;  %v143_v17 = vld [vmem:[%s9255_s1 + $0x3c0] sm:$0xff]  ;;  %v96_v28 = vld [vmem:[%s9255_s1 + $0x248] sm:$0xff] }
  0x16   :  { %1046 = vmatpush1.bf16.msra.mxu0 %v5509_v36  ;;  %1077 = vmatprep.mubr.bf16.mxu0 %v7020_v6  ;;  %v124_v36 = vld [vmem:[%s9255_s1 + $0x328] sm:$0xff]  ;;  %v141_v50 = vld [vmem:[%s9255_s1 + $0x3b0] sm:$0xff] }
  0x17   :  { %1047 = vmatprep.subr.bf16.mxu0 %v5542_v37  ;;  %1087 = vmatpush1.bf16.msra.mxu1 %v5511_v54  ;;  %v140_v37 = vld [vmem:[%s9255_s1 + $0x3a8] sm:$0xff]  ;;  %v5581_v54 = vcombine.low %v93_v41, %v109_v42  ;;  %v5614_v55 = vcombine.high %v125_v49, %v141_v50  ;;  %v33_v24 = vld [vmem:[%s9255_s1 + $0x50] sm:$0xff] }
  0x18   :  { %1088 = vmatprep.subr.bf16.mxu1 %v5544_v57  ;;  %1118 = vmatprep.mubr.bf16.mxu1 %v7020_v6  ;;  %v5612_v43 = vcombine.high %v124_v36, %v140_v37  ;;  %v5611_v48 = vcombine.low %v124_v36, %v140_v37  ;;  %v47_v57 = vld [vmem:[%s9255_s1 + $0xc0] sm:$0xff]  ;;  %v49_v25 = vld [vmem:[%s9255_s1 + $0xd0] sm:$0xff]  ;;  %v128_v36 = vld [vmem:[%s9255_s1 + $0x348] sm:$0xff] }
  0x19   :  { %v5522_v63 = vcombine.high %v31_v56, %v47_v57  ;;  %v65_v32 = vld [vmem:[%s9255_s1 + $0x150] sm:$0xff]  ;;  %v144_v37 = vld [vmem:[%s9255_s1 + $0x3c8] sm:$0xff] }
  0x1a   :  { %1048 = vmatpush1.bf16.msra.mxu0 %v5541_v44  ;;  %v30_v44 = vld [vmem:[%s9255_s1 + $0x38] sm:$0xff]  ;;  %v81_v33 = vld [vmem:[%s9255_s1 + $0x1d0] sm:$0xff] }
  0x1b   :  { %1049 = vmatprep.subr.bf16.mxu0 %v5574_v45  ;;  %1089 = vmatpush1.bf16.msra.mxu1 %v5543_v62  ;;  %v46_v45 = vld [vmem:[%s9255_s1 + $0xb8] sm:$0xff]  ;;  %v5613_v62 = vcombine.low %v125_v49, %v141_v50  ;;  %v97_v41 = vld [vmem:[%s9255_s1 + $0x250] sm:$0xff]  ;;  %v5619_v49 = vcombine.low %v128_v36, %v144_v37 }
  0x1c   :  { %1090 = vmatprep.subr.bf16.mxu1 %v5576_v1  ;;  %v5520_v51 = vcombine.high %v30_v44, %v46_v45  ;;  %v5519_v58 = vcombine.low %v30_v44, %v46_v45  ;;  %v79_v1 = vld [vmem:[%s9255_s1 + $0x1c0] sm:$0xff]  ;;  %v113_v42 = vld [vmem:[%s9255_s1 + $0x2d0] sm:$0xff]  ;;  %v34_v44 = vld [vmem:[%s9255_s1 + $0x58] sm:$0xff] }
  0x1d   :  { %v5554_v9 = vcombine.high %v63_v0, %v79_v1  ;;  %v5553_v15 = vcombine.low %v63_v0, %v79_v1  ;;  %v50_v45 = vld [vmem:[%s9255_s1 + $0xd8] sm:$0xff]  ;;  %v67_v1 = vld [vmem:[%s9255_s1 + $0x160] sm:$0xff] }
  0x1e   :  { %1050 = vmatpush1.bf16.msra.mxu0 %v5573_v52  ;;  %v62_v52 = vld [vmem:[%s9255_s1 + $0x138] sm:$0xff] }
  0x1f   :  { %1051 = vmatprep.subr.bf16.mxu0 %v5606_v53  ;;  %1091 = vmatpush1.bf16.msra.mxu1 %v5575_v7  ;;  %v78_v53 = vld [vmem:[%s9255_s1 + $0x1b8] sm:$0xff]  ;;  %v5521_v7 = vcombine.low %v31_v56, %v47_v57  ;;  %v5589_v56 = vcombine.low %v97_v41, %v113_v42  ;;  %v35_v57 = vld [vmem:[%s9255_s1 + $0x60] sm:$0xff] }
  0x20   :  { %1092 = vmatprep.subr.bf16.mxu1 %v5608_v10  ;;  %v5551_v2 = vcombine.low %v62_v52, %v78_v53  ;;  %v111_v10 = vld [vmem:[%s9255_s1 + $0x2c0] sm:$0xff]  ;;  %v66_v50 = vld [vmem:[%s9255_s1 + $0x158] sm:$0xff] }
  0x22   :  { %1052 = vmatpush1.bf16.msra.mxu0 %v5605_v60  ;;  %v5552_v60 = vcombine.high %v62_v52, %v78_v53  ;;  %v5590_v52 = vcombine.high %v97_v41, %v113_v42  ;;  %v129_v53 = vld [vmem:[%s9255_s1 + $0x350] sm:$0xff] }
  0x23   :  { %1127 = vmatprep.subr.bf16.mxu0 %v5514_v61  ;;  %1093 = vmatpush1.bf16.msra.mxu1 %v5607_v16  ;;  %v110_v61 = vld [vmem:[%s9255_s1 + $0x2b8] sm:$0xff]  ;;  %v127_v16 = vld [vmem:[%s9255_s1 + $0x340] sm:$0xff]  ;;  %v85_v41 = vld [vmem:[%s9255_s1 + $0x1f0] sm:$0xff] }
  0x24   :  { %1168 = vmatprep.subr.bf16.mxu1 %v5516_v18  ;;  %v5583_v11 = vcombine.low %v94_v59, %v110_v61  ;;  %v5586_v18 = vcombine.high %v95_v8, %v111_v10 }
  0x25   :  { %5635 = vmatmul.mubr.msk.bf16.vlgmr.msra.gmra.mrb[4].mxu0 %vm959_vm0, %v7117_v35 }
  0x26   :  { %1128 = vmatpush1.bf16.msra.mxu0 %v5513_v4  ;;  %1159 = vmatprep.mubr.bf16.mxu0 %v7020_v6  ;;  %v5584_v4 = vcombine.high %v94_v59, %v110_v61  ;;  %v5527_v59 = vcombine.low %v34_v44, %v50_v45  ;;  %v114_v61 = vld [vmem:[%s9255_s1 + $0x2d8] sm:$0xff] }
  0x27   :  { %1129 = vmatprep.subr.bf16.mxu0 %v5546_v5  ;;  %5636 = vmatmul.mubr.msk.bf16.vlgmr.msra.gmra.mrb[4].mxu1 %vm959_vm0, %v7117_v35  ;;  %v142_v5 = vld [vmem:[%s9255_s1 + $0x3b8] sm:$0xff] }
  0x28   :  { %1169 = vmatpush1.bf16.msra.mxu1 %v5515_v23  ;;  %1200 = vmatprep.mubr.bf16.mxu1 %v7020_v6  ;;  %v5615_v19 = vcombine.low %v126_v3, %v142_v5  ;;  %v5585_v23 = vcombine.low %v95_v8, %v111_v10  ;;  %v99_v10 = vld [vmem:[%s9255_s1 + $0x260] sm:$0xff] }
  0x29   :  { %1170 = vmatprep.subr.bf16.mxu1 %v5548_v26  ;;  %v5618_v26 = vcombine.high %v127_v16, %v143_v17 }
  0x2a   :  { %1130 = vmatpush1.bf16.msra.mxu0 %v5545_v13  ;;  %v48_v13 = vld [vmem:[%s9255_s1 + $0xc8] sm:$0xff] }
  0x2b   :  { %1131 = vmatprep.subr.bf16.mxu0 %v5578_v14  ;;  %v5616_v14 = vcombine.high %v126_v3, %v142_v5  ;;  %v5523_v27 = vcombine.low %v32_v12, %v48_v13  ;;  %v146_v5 = vld [vmem:[%s9255_s1 + $0x3d8] sm:$0xff] }
  0x2c   :  { %1171 = vmatpush1.bf16.msra.mxu1 %v5547_v31  ;;  %v5617_v31 = vcombine.low %v127_v16, %v143_v17 }
  0x2d   :  { %1172 = vmatprep.subr.bf16.mxu1 %v5580_v34 }
  0x2e   :  { %1132 = vmatpush1.bf16.msra.mxu0 %v5577_v21  ;;  %v80_v21 = vld [vmem:[%s9255_s1 + $0x1c8] sm:$0xff] }
  0x2f   :  { %1133 = vmatprep.subr.bf16.mxu0 %v5610_v22  ;;  %v5524_v22 = vcombine.high %v32_v12, %v48_v13  ;;  %v5555_v34 = vcombine.low %v64_v20, %v80_v21  ;;  %v36_v13 = vld [vmem:[%s9255_s1 + $0x68] sm:$0xff] }
  0x30   :  { %1173 = vmatpush1.bf16.msra.mxu1 %v5579_v40  ;;  %v5525_v40 = vcombine.low %v33_v24, %v49_v25 }
  0x31   :  { %1174 = vmatprep.subr.bf16.mxu1 %v5612_v43 }
  0x32   :  { %1134 = vmatpush1.bf16.msra.mxu0 %v5609_v29  ;;  %v112_v29 = vld [vmem:[%s9255_s1 + $0x2c8] sm:$0xff] }
  0x33   :  { %1209 = vmatprep.subr.bf16.mxu0 %v5518_v30  ;;  %v5556_v30 = vcombine.high %v64_v20, %v80_v21  ;;  %v5587_v43 = vcombine.low %v96_v28, %v112_v29 }
  0x34   :  { %1175 = vmatpush1.bf16.msra.mxu1 %v5611_v48  ;;  %v5557_v48 = vcombine.low %v65_v32, %v81_v33 }
  0x35   :  { %5637 = vmatmul.mubr.msk.bf16.vlgmr.msra.gmra.mrb[8].mxu0 %vm959_vm0, %v7117_v35  ;;  %1250 = vmatprep.subr.bf16.mxu1 %v5520_v51  ;;  %v82_v51 = vld [vmem:[%s9255_s1 + $0x1d8] sm:$0xff] }
  0x36   :  { %1210 = vmatpush1.bf16.msra.mxu0 %v5517_v38  ;;  %1241 = vmatprep.mubr.bf16.mxu0 %v7020_v6  ;;  %v5526_v38 = vcombine.high %v33_v24, %v49_v25  ;;  %v5559_v3 = vcombine.low %v66_v50, %v82_v51  ;;  %v147_v24 = vld [vmem:[%s9255_s1 + $0x3e0] sm:$0xff] }
  0x37   :  { %1211 = vmatprep.subr.bf16.mxu0 %v5550_v39  ;;  %5638 = vmatmul.mubr.msk.bf16.vlgmr.msra.gmra.mrb[8].mxu1 %vm959_vm0, %v7117_v35  ;;  %v5588_v39 = vcombine.high %v96_v28, %v112_v29  ;;  %v116_v28 = vld [vmem:[%s9255_s1 + $0x2e8] sm:$0xff]  ;;  %v37_v29 = vld [vmem:[%s9255_s1 + $0x70] sm:$0xff] }
  0x38   :  { %1251 = vmatpush1.bf16.msra.mxu1 %v5519_v58  ;;  %1282 = vmatprep.mubr.bf16.mxu1 %v7020_v6  ;;  %v51_v58 = vld [vmem:[%s9255_s1 + $0xe0] sm:$0xff] }
  0x39   :  { %1252 = vmatprep.subr.bf16.mxu1 %v5552_v60  ;;  %v98_v60 = vld [vmem:[%s9255_s1 + $0x258] sm:$0xff] }
  0x3a   :  { %1212 = vmatpush1.bf16.msra.mxu0 %v5549_v46  ;;  %v5558_v46 = vcombine.high %v65_v32, %v81_v33  ;;  %v5592_v8 = vcombine.high %v98_v60, %v114_v61  ;;  %v5591_v12 = vcombine.low %v98_v60, %v114_v61  ;;  %v53_v32 = vld [vmem:[%s9255_s1 + $0xf0] sm:$0xff]  ;;  %v102_v61 = vld [vmem:[%s9255_s1 + $0x278] sm:$0xff] }
  0x3b   :  { %1213 = vmatprep.subr.bf16.mxu0 %v5582_v47  ;;  %v5620_v47 = vcombine.high %v128_v36, %v144_v37  ;;  %v132_v36 = vld [vmem:[%s9255_s1 + $0x368] sm:$0xff]  ;;  %v5533_v42 = vcombine.low %v37_v29, %v53_v32 }
  0x3c   :  { %1253 = vmatpush1.bf16.msra.mxu1 %v5551_v2  ;;  %v83_v2 = vld [vmem:[%s9255_s1 + $0x1e0] sm:$0xff]  ;;  %v148_v37 = vld [vmem:[%s9255_s1 + $0x3e8] sm:$0xff] }
  0x3d   :  { %1254 = vmatprep.subr.bf16.mxu1 %v5584_v4  ;;  %v130_v4 = vld [vmem:[%s9255_s1 + $0x358] sm:$0xff]  ;;  %v5561_v17 = vcombine.low %v67_v1, %v83_v2 }
  0x3e   :  { %1214 = vmatpush1.bf16.msra.mxu0 %v5581_v54  ;;  %v145_v54 = vld [vmem:[%s9255_s1 + $0x3d0] sm:$0xff]  ;;  %v5624_v16 = vcombine.high %v130_v4, %v146_v5 }
  0x3f   :  { %1215 = vmatprep.subr.bf16.mxu0 %v5614_v55  ;;  %v5528_v55 = vcombine.high %v34_v44, %v50_v45  ;;  %v5621_v0 = vcombine.low %v129_v53, %v145_v54  ;;  %v38_v44 = vld [vmem:[%s9255_s1 + $0x78] sm:$0xff] }
  0x40   :  { %1255 = vmatpush1.bf16.msra.mxu1 %v5583_v11  ;;  %v115_v11 = vld [vmem:[%s9255_s1 + $0x2e0] sm:$0xff]  ;;  %v54_v45 = vld [vmem:[%s9255_s1 + $0xf8] sm:$0xff] }
  0x41   :  { %1256 = vmatprep.subr.bf16.mxu1 %v5616_v14  ;;  %v52_v14 = vld [vmem:[%s9255_s1 + $0xe8] sm:$0xff]  ;;  %v5594_v20 = vcombine.high %v99_v10, %v115_v11  ;;  %v5593_v25 = vcombine.low %v99_v10, %v115_v11  ;;  %v6280_v10 = vld [vmem:[%s9257_s3 + $0x810] ss:$8 sps:$4 sm:$0xff]  }
  0x42   :  { %1216 = vmatpush1.bf16.msra.mxu0 %v5613_v62  ;;  %v5560_v62 = vcombine.high %v66_v50, %v82_v51  ;;  %v5532_v21 = vcombine.high %v36_v13, %v52_v14  ;;  %v5627_v51 = vcombine.low %v132_v36, %v148_v37 }
  0x43   :  { %1291 = vmatprep.subr.bf16.mxu0 %v5522_v63  ;;  %v5622_v63 = vcombine.high %v129_v53, %v145_v54  ;;  %v5536_v53 = vcombine.high %v38_v44, %v54_v45  ;;  %v70_v54 = vld [vmem:[%s9255_s1 + $0x178] sm:$0xff] }
  0x44   :  { %1257 = vmatpush1.bf16.msra.mxu1 %v5615_v19  ;;  %v68_v19 = vld [vmem:[%s9255_s1 + $0x168] sm:$0xff] }
  0x45   :  { %5639 = vmatmul.mubr.msk.bf16.vlgmr.msra.gmra.mrb[12].mxu0 %vm959_vm0, %v7117_v35  ;;  %1332 = vmatprep.subr.bf16.mxu1 %v5524_v22  ;;  %v84_v22 = vld [vmem:[%s9255_s1 + $0x1e8] sm:$0xff] }
  0x46   :  { %1292 = vmatpush1.bf16.msra.mxu0 %v5521_v7  ;;  %1323 = vmatprep.mubr.bf16.mxu0 %v7020_v6  ;;  %v5530_v7 = vcombine.high %v35_v57, %v51_v58 }
  0x47   :  { %1293 = vmatprep.subr.bf16.mxu0 %v5554_v9  ;;  %5640 = vmatmul.mubr.msk.bf16.vlgmr.msra.gmra.mrb[12].mxu1 %vm959_vm0, %v7117_v35  ;;  %v5529_v9 = vcombine.low %v35_v57, %v51_v58  ;;  %v5535_v58 = vcombine.low %v38_v44, %v54_v45  ;;  %v6244_v44 = vld [vmem:[%s9257_s3 + $0x70] ss:$8 sps:$4 sm:$0xff]   ;;  %v6336_v45 = vld [vmem:[%s9257_s3 + $0x8a4] ss:$8 sps:$4 sm:$0xff]  }
  0x48   :  { %1333 = vmatpush1.bf16.msra.mxu1 %v5523_v27  ;;  %1364 = vmatprep.mubr.bf16.mxu1 %v7020_v6  ;;  %v100_v27 = vld [vmem:[%s9255_s1 + $0x268] sm:$0xff] }
  0x49   :  { %1334 = vmatprep.subr.bf16.mxu1 %v5556_v30  ;;  %v5564_v30 = vcombine.high %v68_v19, %v84_v22 }
  0x4a   :  { %1294 = vmatpush1.bf16.msra.mxu0 %v5553_v15  ;;  %v5562_v15 = vcombine.high %v67_v1, %v83_v2  ;;  %v134_v2 = vld [vmem:[%s9255_s1 + $0x378] sm:$0xff] }
  0x4b   :  { %1295 = vmatprep.subr.bf16.mxu0 %v5586_v18  ;;  %v5623_v18 = vcombine.low %v130_v4, %v146_v5  ;;  %v150_v5 = vld [vmem:[%s9255_s1 + $0x3f8] sm:$0xff] }
  0x4c   :  { %1335 = vmatpush1.bf16.msra.mxu1 %v5555_v34  ;;  %v5563_v34 = vcombine.low %v68_v19, %v84_v22  ;;  %v5631_v11 = vcombine.low %v134_v2, %v150_v5  ;;  %v6226_v19 = vld [vmem:[%s9257_s3 + $0x10] ss:$8 sps:$4 sm:$0xff]   ;;  %v6298_v22 = vld [vmem:[%s9257_s3 + $0x840] ss:$8 sps:$4 sm:$0xff]  }
  0x4d   :  { %1336 = vmatprep.subr.bf16.mxu1 %v5588_v39  ;;  %v5596_v39 = vcombine.high %v100_v27, %v116_v28 }
  0x4e   :  { %1296 = vmatpush1.bf16.msra.mxu0 %v5585_v23  ;;  %v131_v23 = vld [vmem:[%s9255_s1 + $0x360] sm:$0xff] }
  0x4f   :  { %1297 = vmatprep.subr.bf16.mxu0 %v5618_v26  ;;  %v5531_v26 = vcombine.low %v36_v13, %v52_v14  ;;  %v5625_v33 = vcombine.low %v131_v23, %v147_v24  ;;  %v6225_v13 = vld [vmem:[%s9257_s3 + $0x4] ss:$8 sps:$4 sm:$0xff]   ;;  %v6223_v14 = vld [vmem:[%s9257_s3] ss:$8 sps:$4 sm:$0xff]  }
  0x50   :  { %1337 = vmatpush1.bf16.msra.mxu1 %v5587_v43  ;;  %v5595_v43 = vcombine.low %v100_v27, %v116_v28  ;;  %v6232_v27 = vld [vmem:[%s9257_s3 + $0x30] ss:$8 sps:$4 sm:$0xff]   ;;  %v6312_v28 = vld [vmem:[%s9257_s3 + $0x864] ss:$8 sps:$4 sm:$0xff]  }
  0x51   :  { %1338 = vmatprep.subr.bf16.mxu1 %v5620_v47  ;;  %v5628_v47 = vcombine.high %v132_v36, %v148_v37  ;;  %v6238_v36 = vld [vmem:[%s9257_s3 + $0x50] ss:$8 sps:$4 sm:$0xff]   ;;  %v6324_v37 = vld [vmem:[%s9257_s3 + $0x884] ss:$8 sps:$4 sm:$0xff]  }
  0x52   :  { %1298 = vmatpush1.bf16.msra.mxu0 %v5617_v31  ;;  %v5626_v31 = vcombine.high %v131_v23, %v147_v24  ;;  %v6229_v23 = vld [vmem:[%s9257_s3 + $0x20] ss:$8 sps:$4 sm:$0xff]   ;;  %v6306_v24 = vld [vmem:[%s9257_s3 + $0x854] ss:$8 sps:$4 sm:$0xff]  }
  0x53   :  { %1373 = vmatprep.subr.bf16.mxu0 %v5526_v38  ;;  %v5534_v38 = vcombine.high %v37_v29, %v53_v32  ;;  %v6237_v29 = vld [vmem:[%s9257_s3 + $0x44] ss:$8 sps:$4 sm:$0xff]   ;;  %v6318_v32 = vld [vmem:[%s9257_s3 + $0x874] ss:$8 sps:$4 sm:$0xff]  }
  0x54   :  { %1339 = vmatpush1.bf16.msra.mxu1 %v5619_v49  ;;  %v117_v49 = vld [vmem:[%s9255_s1 + $0x2f0] sm:$0xff] }
  0x55   :  { %5641 = vmatmul.mubr.msk.bf16.vlgmr.msra.gmra.mrb[16].mxu0 %vm959_vm0, %v7117_v35  ;;  %1414 = vmatprep.subr.bf16.mxu1 %v5528_v55  ;;  %v86_v55 = vld [vmem:[%s9255_s1 + $0x1f8] sm:$0xff] }
  0x56   :  { %1374 = vmatpush1.bf16.msra.mxu0 %v5525_v40  ;;  %1405 = vmatprep.mubr.bf16.mxu0 %v7020_v6  ;;  %v69_v40 = vld [vmem:[%s9255_s1 + $0x170] sm:$0xff]  ;;  %v5567_v1 = vcombine.low %v70_v54, %v86_v55 }
  0x57   :  { %1375 = vmatprep.subr.bf16.mxu0 %v5558_v46  ;;  %5642 = vmatmul.mubr.msk.bf16.vlgmr.msra.gmra.mrb[16].mxu1 %vm959_vm0, %v7117_v35  ;;  %v5566_v46 = vcombine.high %v69_v40, %v85_v41  ;;  %v5565_v50 = vcombine.low %v69_v40, %v85_v41  ;;  %v6241_v40 = vld [vmem:[%s9257_s3 + $0x60] ss:$8 sps:$4 sm:$0xff]   ;;  %v6330_v41 = vld [vmem:[%s9257_s3 + $0x894] ss:$8 sps:$4 sm:$0xff]  }
  0x58   :  { %1415 = vmatpush1.bf16.msra.mxu1 %v5527_v59  ;;  %1446 = vmatprep.mubr.bf16.mxu1 %v7020_v6  ;;  %v5568_v59 = vcombine.high %v70_v54, %v86_v55  ;;  %v6255_v54 = vld [vmem:[%s9257_s3 + $0xa4] ss:$8 sps:$4 sm:$0xff]   ;;  %v6253_v55 = vld [vmem:[%s9257_s3 + $0xa0] ss:$8 sps:$4 sm:$0xff]  }
  0x59   :  { %1416 = vmatprep.subr.bf16.mxu1 %v5560_v62  ;;  %v118_v62 = vld [vmem:[%s9255_s1 + $0x2f8] sm:$0xff] }
  0x5a   :  { %1376 = vmatpush1.bf16.msra.mxu0 %v5557_v48  ;;  %v101_v48 = vld [vmem:[%s9255_s1 + $0x270] sm:$0xff]  ;;  %v5600_v4 = vcombine.high %v102_v61, %v118_v62 }
  0x5b   :  { %1377 = vmatprep.subr.bf16.mxu0 %v5590_v52  ;;  %v5598_v52 = vcombine.high %v101_v48, %v117_v49  ;;  %v5597_v57 = vcombine.low %v101_v48, %v117_v49  ;;  %v6334_v48 = vld [vmem:[%s9257_s3 + $0x8a0] ss:$8 sps:$4 sm:$0xff]   ;;  %v6342_v49 = vld [vmem:[%s9257_s3 + $0x8b4] ss:$8 sps:$4 sm:$0xff]  }
  0x5c   :  { %1417 = vmatpush1.bf16.msra.mxu1 %v5559_v3  ;;  %v6276_v3 = vld [vmem:[%s9257_s3 + $0x804] ss:$8 sps:$4 sm:$0xff]  }
  0x5d   :  { %1418 = vmatprep.subr.bf16.mxu1 %v5592_v8  ;;  %v5599_v8 = vcombine.low %v102_v61, %v118_v62  ;;  %v6261_v61 = vld [vmem:[%s9257_s3 + $0xc4] ss:$8 sps:$4 sm:$0xff]   ;;  %v6358_v62 = vld [vmem:[%s9257_s3 + $0x8e0] ss:$8 sps:$4 sm:$0xff]  }
  0x5e   :  { %1378 = vmatpush1.bf16.msra.mxu0 %v5589_v56  ;;  %v149_v56 = vld [vmem:[%s9255_s1 + $0x3f0] sm:$0xff] }
  0x5f   :  { %1379 = vmatprep.subr.bf16.mxu0 %v5622_v63  ;;  %v6991_v63 = vld [vmem:[%s9254_s0] sm:$0xf] }
  0x60   :  { %1419 = vmatpush1.bf16.msra.mxu1 %v5591_v12  ;;  %v6288_v12 = vld [vmem:[%s9257_s3 + $0x824] ss:$8 sps:$4 sm:$0xff]  }
  0x61   :  { %1420 = vmatprep.subr.bf16.mxu1 %v5624_v16  ;;  %v6294_v16 = vld [vmem:[%s9257_s3 + $0x834] ss:$8 sps:$4 sm:$0xff]  }
  0x62   :  { %1380 = vmatpush1.bf16.msra.mxu0 %v5621_v0 }
  0x63   :  { %1455 = vmatprep.subr.bf16.mxu0 %v5530_v7  ;;  %v6274_v7 = vld [vmem:[%s9257_s3 + $0x800] ss:$8 sps:$4 sm:$0xff]  }
  0x64   :  { %1421 = vmatpush1.bf16.msra.mxu1 %v5623_v18  ;;  %v6292_v18 = vld [vmem:[%s9257_s3 + $0x830] ss:$8 sps:$4 sm:$0xff]  }
  0x65   :  { %5643 = vmatmul.mubr.msk.bf16.vlgmr.msra.gmra.mrb[20].mxu0 %vm959_vm0, %v7117_v35  ;;  %1496 = vmatprep.subr.bf16.mxu1 %v5532_v21  ;;  %v6231_v21 = vld [vmem:[%s9257_s3 + $0x24] ss:$8 sps:$4 sm:$0xff]  }
  0x66   :  { %1456 = vmatpush1.bf16.msra.mxu0 %v5529_v9  ;;  %1487 = vmatprep.mubr.bf16.mxu0 %v7020_v6  ;;  %v5632_v9 = vcombine.high %v134_v2, %v150_v5  ;;  %v6364_v2 = vld [vmem:[%s9257_s3 + $0x8f0] ss:$8 sps:$4 sm:$0xff]   ;;  %v6267_v5 = vld [vmem:[%s9257_s3 + $0xe4] ss:$8 sps:$4 sm:$0xff]  }
  0x67   :  { %1457 = vmatprep.subr.bf16.mxu0 %v5562_v15  ;;  %5644 = vmatmul.mubr.msk.bf16.vlgmr.msra.gmra.mrb[20].mxu1 %vm959_vm0, %v7117_v35  ;;  %v6286_v15 = vld [vmem:[%s9257_s3 + $0x820] ss:$8 sps:$4 sm:$0xff]  }
  0x68   :  { %1497 = vmatpush1.bf16.msra.mxu1 %v5531_v26  ;;  %1528 = vmatprep.mubr.bf16.mxu1 %v7020_v6  ;;  %v6304_v26 = vld [vmem:[%s9257_s3 + $0x850] ss:$8 sps:$4 sm:$0xff]  }
  0x69   :  { %1498 = vmatprep.subr.bf16.mxu1 %v5564_v30  ;;  %v6235_v30 = vld [vmem:[%s9257_s3 + $0x40] ss:$8 sps:$4 sm:$0xff]  }
  0x6a   :  { %1458 = vmatpush1.bf16.msra.mxu0 %v5561_v17  ;;  %v6228_v17 = vld [vmem:[%s9257_s3 + $0x14] ss:$8 sps:$4 sm:$0xff]  }
  0x6b   :  { %1459 = vmatprep.subr.bf16.mxu0 %v5594_v20  ;;  %v6300_v20 = vld [vmem:[%s9257_s3 + $0x844] ss:$8 sps:$4 sm:$0xff]  }
  0x6c   :  { %1499 = vmatpush1.bf16.msra.mxu1 %v5563_v34  ;;  %v6316_v34 = vld [vmem:[%s9257_s3 + $0x870] ss:$8 sps:$4 sm:$0xff]  }
  0x6d   :  { %1500 = vmatprep.subr.bf16.mxu1 %v5596_v39  ;;  %v6322_v39 = vld [vmem:[%s9257_s3 + $0x880] ss:$8 sps:$4 sm:$0xff]  }
  0x6e   :  { %1460 = vmatpush1.bf16.msra.mxu0 %v5593_v25  ;;  %v6234_v25 = vld [vmem:[%s9257_s3 + $0x34] ss:$8 sps:$4 sm:$0xff]  }
  0x6f   :  { %1461 = vmatprep.subr.bf16.mxu0 %v5626_v31  ;;  %v6310_v31 = vld [vmem:[%s9257_s3 + $0x860] ss:$8 sps:$4 sm:$0xff]  }
  0x70   :  { %1501 = vmatpush1.bf16.msra.mxu1 %v5595_v43  ;;  %v6328_v43 = vld [vmem:[%s9257_s3 + $0x890] ss:$8 sps:$4 sm:$0xff]  }
  0x71   :  { %1502 = vmatprep.subr.bf16.mxu1 %v5628_v47  ;;  %v6247_v47 = vld [vmem:[%s9257_s3 + $0x80] ss:$8 sps:$4 sm:$0xff]  }
  0x72   :  { %1462 = vmatpush1.bf16.msra.mxu0 %v5625_v33  ;;  %v6240_v33 = vld [vmem:[%s9257_s3 + $0x54] ss:$8 sps:$4 sm:$0xff]  }
  0x73   :  { %1537 = vmatprep.subr.bf16.mxu0 %v5534_v38  ;;  %v6243_v38 = vld [vmem:[%s9257_s3 + $0x64] ss:$8 sps:$4 sm:$0xff]  }
  0x74   :  { %1503 = vmatpush1.bf16.msra.mxu1 %v5627_v51  ;;  %v6250_v51 = vld [vmem:[%s9257_s3 + $0x90] ss:$8 sps:$4 sm:$0xff]  }
  0x75   :  { %5645 = vmatmul.mubr.msk.bf16.vlgmr.msra.gmra.mrb[24].mxu0 %vm959_vm0, %v7117_v35  ;;  %v133_v35 = vld [vmem:[%s9255_s1 + $0x370] sm:$0xff]  ;;  %1578 = vmatprep.subr.bf16.mxu1 %v5536_v53  ;;  %v6348_v53 = vld [vmem:[%s9257_s3 + $0x8c4] ss:$8 sps:$4 sm:$0xff]  }
  0x76   :  { %1538 = vmatpush1.bf16.msra.mxu0 %v5533_v42  ;;  %1569 = vmatprep.mubr.bf16.mxu0 %v7020_v6  ;;  %v5630_v60 = vcombine.high %v133_v35, %v149_v56  ;;  %v5629_v0 = vcombine.low %v133_v35, %v149_v56  ;;  %v6246_v42 = vld [vmem:[%s9257_s3 + $0x74] ss:$8 sps:$4 sm:$0xff]   ;;  %v6346_v35 = vld [vmem:[%s9257_s3 + $0x8c0] ss:$8 sps:$4 sm:$0xff]  }
  0x77   :  { %1539 = vmatprep.subr.bf16.mxu0 %v5566_v46  ;;  %5646 = vmatmul.mubr.msk.bf16.vlgmr.msra.gmra.mrb[24].mxu1 %vm959_vm0, %v6991_v63  ;;  %v6249_v46 = vld [vmem:[%s9257_s3 + $0x84] ss:$8 sps:$4 sm:$0xff]   ;;  %v6354_v56 = vld [vmem:[%s9257_s3 + $0x8d4] ss:$8 sps:$4 sm:$0xff]  }
  0x78   :  { %1579 = vmatpush1.bf16.msra.mxu1 %v5535_v58  ;;  %1610 = vmatprep.mubr.bf16.mxu1 %v7020_v6  ;;  %v6282_v6 = vld [vmem:[%s9257_s3 + $0x814] ss:$8 sps:$4 sm:$0xff]   ;;  %v6352_v58 = vld [vmem:[%s9257_s3 + $0x8d0] ss:$8 sps:$4 sm:$0xff]  }
  0x79   :  { %1580 = vmatprep.subr.bf16.mxu1 %v5568_v59  ;;  %v6256_v59 = vld [vmem:[%s9257_s3 + $0xb0] ss:$8 sps:$4 sm:$0xff]  }
  0x7a   :  { %1540 = vmatpush1.bf16.msra.mxu0 %v5565_v50  ;;  %v6252_v50 = vld [vmem:[%s9257_s3 + $0x94] ss:$8 sps:$4 sm:$0xff]  }
  0x7b   :  { %1541 = vmatprep.subr.bf16.mxu0 %v5598_v52  ;;  %v6340_v52 = vld [vmem:[%s9257_s3 + $0x8b0] ss:$8 sps:$4 sm:$0xff]  }
  0x7c   :  { %1581 = vmatpush1.bf16.msra.mxu1 %v5567_v1  ;;  %v6264_v1 = vld [vmem:[%s9257_s3 + $0xd4] ss:$8 sps:$4 sm:$0xff]  }
  0x7d   :  { %1582 = vmatprep.subr.bf16.mxu1 %v5600_v4  ;;  %v6372_v4 = vld [vmem:[%s9257_s3 + $0x904] ss:$8 sps:$4 sm:$0xff]  }
  0x7e   :  { %1542 = vmatpush1.bf16.msra.mxu0 %v5597_v57  ;;  %v6258_v57 = vld [vmem:[%s9257_s3 + $0xb4] ss:$8 sps:$4 sm:$0xff]  }
  0x7f   :  { %1543 = vmatprep.subr.bf16.mxu0 %v5630_v60  ;;  %v6360_v60 = vld [vmem:[%s9257_s3 + $0x8e4] ss:$8 sps:$4 sm:$0xff]  }
  0x80   :  { %1583 = vmatpush1.bf16.msra.mxu1 %v5599_v8  ;;  %v6270_v8 = vld [vmem:[%s9257_s3 + $0xf4] ss:$8 sps:$4 sm:$0xff]  }
  0x81   :  { %1584 = vmatprep.subr.bf16.mxu1 %v5632_v9  ;;  %v6273_v9 = vld [vmem:[%s9257_s3 + $0x104] ss:$8 sps:$4 sm:$0xff]  }
  0x82   :  { %1544 = vmatpush1.bf16.msra.mxu0 %v5629_v0  ;;  %v6366_v0 = vld [vmem:[%s9257_s3 + $0x8f4] ss:$8 sps:$4 sm:$0xff]  }
  0x83   :  { %5159 = vmatprep.subr.bf16.mxu0 %v6276_v3  ;;  %v6262_v3 = vld [vmem:[%s9257_s3 + $0xd0] ss:$8 sps:$4 sm:$0xff]  }
  0x84   :  { %1585 = vmatpush1.bf16.msra.mxu1 %v5631_v11 }
  0x85   :  { %5647 = vmatmul.mubr.msk.bf16.vlgmr.msra.gmra.mrb[28].mxu0 %vm959_vm0, %v6991_v63  ;;  %4831 = vmatprep.subr.bf16.mxu1 %v6225_v13 }
  0x86   :  { %5160 = vmatpush1.bf16.msra.mxu0 %v6274_v7  ;;  %v6265_v7 = vld [vmem:[%s9257_s3 + $0xe0] ss:$8 sps:$4 sm:$0xff]  }
  0x87   :  { %5161 = vmatprep.subr.bf16.mxu0 %v6282_v6  ;;  %5648 = vmatmul.mubr.msk.bf16.vlgmr.msra.gmra.mrb[28].mxu1 %vm959_vm0, %v6991_v63  ;;  %v6259_v63 = vld [vmem:[%s9257_s3 + $0xc0] ss:$8 sps:$4 sm:$0xff]   ;;  %v6268_v6 = vld [vmem:[%s9257_s3 + $0xf0] ss:$8 sps:$4 sm:$0xff]  }
  0x88   :  { %4832 = vmatpush1.bf16.msra.mxu1 %v6223_v14 }
  0x89   :  { %4833 = vmatprep.subr.bf16.mxu1 %v6228_v17 }
  0x8a   :  { %5162 = vmatpush1.bf16.msra.mxu0 %v6280_v10  ;;  %v159_v10 = vlaneseq }
  0x8b   :  { %5163 = vmatprep.subr.bf16.mxu0 %v6288_v12  ;;  %v7692_v12 = vld [vmem:[%s9256_s2] sm:$0xff] }
  0x8c   :  { %4834 = vmatpush1.bf16.msra.mxu1 %v6226_v19  ;;  %v7687_v11 = vshrl.u32 %v159_v10, 7 }
  0x8d   :  { %4835 = vmatprep.subr.bf16.mxu1 %v6231_v21 }
  0x8e   :  { %5164 = vmatpush1.bf16.msra.mxu0 %v6286_v15  ;;  %v7695_v13 = vsub.s32 0, %v7687_v11  ;;  %v7698_v14 = vsub.s32 1, %v7687_v11 }
  0x8f   :  { %5165 = vmatprep.subr.bf16.mxu0 %v6294_v16 }
  0x90   :  { %4836 = vmatpush1.bf16.msra.mxu1 %v6229_v23  ;;  %v162_v15 = vrot.slane %v7692_v12, %v7695_v13  ;;  %v166_v16 = vrot.slane %v7692_v12, %v7698_v14 }
  0x91   :  { %4837 = vmatprep.subr.bf16.mxu1 %v6234_v25 }
  0x92   :  { %5166 = vmatpush1.bf16.msra.mxu0 %v6292_v18 }
  0x93   :  { %5167 = vmatprep.subr.bf16.mxu0 %v6300_v20 }
  0x94   :  { %4838 = vmatpush1.bf16.msra.mxu1 %v6232_v27  ;;  %v6271_v27 = vld [vmem:[%s9257_s3 + $0x100] ss:$8 sps:$4 sm:$0xff]  }
  0x95   :  { %4839 = vmatprep.subr.bf16.mxu1 %v6237_v29  ;;  %v6279_v29 = vld [vmem:[%s9257_s3 + $0x114] ss:$8 sps:$4 sm:$0xff]  }
  0x96   :  { %5168 = vmatpush1.bf16.msra.mxu0 %v6298_v22  ;;  %v7705_v22 = vsub.s32 3, %v7687_v11 }
  0x97   :  { %5169 = vmatprep.subr.bf16.mxu0 %v6306_v24 }
  0x98   :  { %4840 = vmatpush1.bf16.msra.mxu1 %v6235_v30 }
  0x99   :  { %4841 = vmatprep.subr.bf16.mxu1 %v6240_v33 }
  0x9a   :  { %5170 = vmatpush1.bf16.msra.mxu0 %v6304_v26 }
  0x9b   :  { %5171 = vmatprep.subr.bf16.mxu0 %v6312_v28 }
  0x9c   :  { %4842 = vmatpush1.bf16.msra.mxu1 %v6238_v36 }
  0x9d   :  { %4843 = vmatprep.subr.bf16.mxu1 %v6243_v38 }
  0x9e   :  { %5172 = vmatpush1.bf16.msra.mxu0 %v6310_v31  ;;  %v174_v31 = vrot.slane %v7692_v12, %v7705_v22 }
  0x9f   :  { %5173 = vmatprep.subr.bf16.mxu0 %v6318_v32 }
  0xa0   :  { %4844 = vmatpush1.bf16.msra.mxu1 %v6241_v40 }
  0xa1   :  { %4845 = vmatprep.subr.bf16.mxu1 %v6246_v42  ;;  %v6283_v42 = vld [vmem:[%s9257_s3 + $0x120] ss:$8 sps:$4 sm:$0xff]  }
  0xa2   :  { %5174 = vmatpush1.bf16.msra.mxu0 %v6316_v34  ;;  %v6277_v34 = vld [vmem:[%s9257_s3 + $0x110] ss:$8 sps:$4 sm:$0xff]  }
  0xa3   :  { %5175 = vmatprep.subr.bf16.mxu0 %v6324_v37 }
  0xa4   :  { %4846 = vmatpush1.bf16.msra.mxu1 %v6244_v44 }
  0xa5   :  { %4847 = vmatprep.subr.bf16.mxu1 %v6249_v46 }
  0xa6   :  { %5176 = vmatpush1.bf16.msra.mxu0 %v6322_v39  ;;  %v6285_v39 = vld [vmem:[%s9257_s3 + $0x124] ss:$8 sps:$4 sm:$0xff]  }
  0xa7   :  { %5177 = vmatprep.subr.bf16.mxu0 %v6330_v41 }
  0xa8   :  { %4848 = vmatpush1.bf16.msra.mxu1 %v6247_v47 }
  0xa9   :  { %4849 = vmatprep.subr.bf16.mxu1 %v6252_v50  ;;  %v6289_v50 = vld [vmem:[%s9257_s3 + $0x130] ss:$8 sps:$4 sm:$0xff]  }
  0xaa   :  { %5178 = vmatpush1.bf16.msra.mxu0 %v6328_v43 }
  0xab   :  { %5179 = vmatprep.subr.bf16.mxu0 %v6336_v45  ;;  %v6291_v45 = vld [vmem:[%s9257_s3 + $0x134] ss:$8 sps:$4 sm:$0xff]  }
  0xac   :  { %4850 = vmatpush1.bf16.msra.mxu1 %v6250_v51  ;;  %v6297_v51 = vld [vmem:[%s9257_s3 + $0x144] ss:$8 sps:$4 sm:$0xff]  }
  0xad   :  { %4851 = vmatprep.subr.bf16.mxu1 %v6255_v54  ;;  %v6301_v54 = vld [vmem:[%s9257_s3 + $0x150] ss:$8 sps:$4 sm:$0xff]  }
  0xae   :  { %5180 = vmatpush1.bf16.msra.mxu0 %v6334_v48 }
  0xaf   :  { %5181 = vmatprep.subr.bf16.mxu0 %v6342_v49 }
  0xb0   :  { %4852 = vmatpush1.bf16.msra.mxu1 %v6253_v55 }
  0xb1   :  { %4853 = vmatprep.subr.bf16.mxu1 %v6258_v57  ;;  %v6309_v57 = vld [vmem:[%s9257_s3 + $0x164] ss:$8 sps:$4 sm:$0xff]  }
  0xb2   :  { %5182 = vmatpush1.bf16.msra.mxu0 %v6340_v52  ;;  %v6295_v52 = vld [vmem:[%s9257_s3 + $0x140] ss:$8 sps:$4 sm:$0xff]  }
  0xb3   :  { %5183 = vmatprep.subr.bf16.mxu0 %v6348_v53  ;;  %v6303_v53 = vld [vmem:[%s9257_s3 + $0x154] ss:$8 sps:$4 sm:$0xff]  }
  0xb4   :  { %4854 = vmatpush1.bf16.msra.mxu1 %v6256_v59  ;;  %v6307_v59 = vld [vmem:[%s9257_s3 + $0x160] ss:$8 sps:$4 sm:$0xff]  }
  0xb5   :  { %4855 = vmatprep.subr.bf16.mxu1 %v6261_v61  ;;  %v6315_v61 = vld [vmem:[%s9257_s3 + $0x174] ss:$8 sps:$4 sm:$0xff]  }
  0xb6   :  { %5184 = vmatpush1.bf16.msra.mxu0 %v6346_v35 }
  0xb7   :  { %5185 = vmatprep.subr.bf16.mxu0 %v6354_v56 }
  0xb8   :  { %4856 = vmatpush1.bf16.msra.mxu1 %v6259_v63 }
  0xb9   :  { %4857 = vmatprep.subr.bf16.mxu1 %v6264_v1  ;;  %v6313_v1 = vld [vmem:[%s9257_s3 + $0x170] ss:$8 sps:$4 sm:$0xff]  }
  0xba   :  { %5186 = vmatpush1.bf16.msra.mxu0 %v6352_v58 }
  0xbb   :  { %5187 = vmatprep.subr.bf16.mxu0 %v6360_v60 }
  0xbc   :  { %4858 = vmatpush1.bf16.msra.mxu1 %v6262_v3  ;;  %v6319_v3 = vld [vmem:[%s9257_s3 + $0x180] ss:$8 sps:$4 sm:$0xff]  }
  0xbd   :  { %4859 = vmatprep.subr.bf16.mxu1 %v6267_v5  ;;  %v6325_v5 = vld [vmem:[%s9257_s3 + $0x190] ss:$8 sps:$4 sm:$0xff]  }
  0xbe   :  { %5188 = vmatpush1.bf16.msra.mxu0 %v6358_v62 }
  0xbf   :  { %5189 = vmatprep.subr.bf16.mxu0 %v6366_v0 }
  0xc0   :  { %4860 = vmatpush1.bf16.msra.mxu1 %v6265_v7 }
  0xc1   :  { %4861 = vmatprep.subr.bf16.mxu1 %v6270_v8 }
  0xc2   :  { %5190 = vmatpush1.bf16.msra.mxu0 %v6364_v2  ;;  %v6321_v2 = vld [vmem:[%s9257_s3 + $0x184] ss:$8 sps:$4 sm:$0xff]  }
  0xc3   :  { %5200 = vmatprep.subr.bf16.mxu0 %v6372_v4  ;;  %v6327_v4 = vld [vmem:[%s9257_s3 + $0x194] ss:$8 sps:$4 sm:$0xff]  }
  0xc4   :  { %4862 = vmatpush1.bf16.msra.mxu1 %v6268_v6 }
  0xc5   :  { %4872 = vmatprep.subr.bf16.mxu1 %v6273_v9  ;;  %v6333_v9 = vld [vmem:[%s9257_s3 + $0x1a4] ss:$8 sps:$4 sm:$0xff]  }
  0xe8   :  { %v997_v17 = vpop.f32.mrb[0].mxu0  ;;  %v7715_v33 = vpop.f32.mrb[0].mxu1 }
  0xe9   :  { %v998_v18 = vadd.f32 %v997_v17, %v162_v15  ;;  %v999_v19 = vpop.f32.mrb[1].mxu0  ;;  %v1040_v36 = vpop.f32.mrb[1].mxu1  ;;  %v6331_v15 = vld [vmem:[%s9257_s3 + $0x1a0] ss:$8 sps:$4 sm:$0xff]   ;;  %v6339_v17 = vld [vmem:[%s9257_s3 + $0x1b4] ss:$8 sps:$4 sm:$0xff]  }
  0xea   :  { %v1000_v20 = vadd.f32 %v999_v19, %v166_v16  ;;  %v1001_v21 = vpop.f32.mrb[2].mxu0  ;;  %v1041_v37 = vadd.f32 %v1040_v36, %v174_v31  ;;  %v1042_v38 = vpop.f32.mrb[2].mxu1 }
  0xeb   :  { %vm1619_vm1 = vcmp.gt.f32.partialorder %v998_v18, 0.0  ;;  %v1651_v23 = vmul.f32 0.2, %v998_v18  ;;  %v1002_v24 = vpop.f32.mrb[3].mxu0  ;;  %v1043_v40 = vpop.f32.mrb[3].mxu1 }
  0xec   :  { %vm1620_vm2 = vcmp.gt.f32.partialorder %v1000_v20, 0.0  ;;  %v1652_v25 = vmul.f32 0.2, %v1000_v20  ;;  %vm1622_vm3 = vcmp.gt.f32.partialorder %v1041_v37, 0.0  ;;  %v1654_v41 = vmul.f32 0.2, %v1041_v37 }
  0xed   :  { %v1683_v26 = vsel %vm1619_vm1, %v998_v18, %v1651_v23  ;;  %v6337_v21 = vld [vmem:[%s9257_s3 + $0x1b0] ss:$8 sps:$4 sm:$0xff]   ;;  %v6345_v23 = vld [vmem:[%s9257_s3 + $0x1c4] ss:$8 sps:$4 sm:$0xff]   ;;  %v6343_v24 = vld [vmem:[%s9257_s3 + $0x1c0] ss:$8 sps:$4 sm:$0xff]  }
  0xee   :  { %v1684_v28 = vsel %vm1620_vm2, %v1000_v20, %v1652_v25  ;;  %v1715_v32 = vpack.c.bf16 %v1683_v26, %v1683_v26  ;;  %v1686_v43 = vsel %vm1622_vm3, %v1041_v37, %v1654_v41  ;;  %v7807_v25 = vsub.s32 2, %v7687_v11  ;;  %v6357_v37 = vld [vmem:[%s9257_s3 + $0x1e4] ss:$8 sps:$4 sm:$0xff]  }
  0xef   :  { %v1716_v30 = vpack.c.bf16 %v1684_v28, %v1684_v28  ;;  %v1718_v46 = vpack.c.bf16 %v1686_v43, %v1686_v43  ;;  %v7810_v26 = vsub.s32 5, %v7687_v11  ;;  %v6349_v28 = vld [vmem:[%s9257_s3 + $0x1d0] ss:$8 sps:$4 sm:$0xff]   ;;  %v6355_v43 = vld [vmem:[%s9257_s3 + $0x1e0] ss:$8 sps:$4 sm:$0xff]  }
  0xf1   :  { %4863 = vmatprep.mubr.bf16.mxu1 %v1716_v30  ;;  %v7823_v30 = vld [vmem:[%s9256_s2 + $0x10] sm:$0xff] }
  0xf2   :  { %4864 = vmatmul.mubr.bf16.vlgmr.msra.gmra.mrb[32].mxu1 %v1715_v32  ;;  %v182_v32 = vrot.slane %v7692_v12, %v7810_v26  ;;  %v226_v40 = vrot.slane %v7823_v30, %v7695_v13 }
  0xf3   :  { %4873 = vmatpush1.bf16.msra.mxu1 %v6271_v27  ;;  %4904 = vmatprep.mubr.bf16.mxu1 %v1718_v46  ;;  %v6351_v27 = vld [vmem:[%s9257_s3 + $0x1d4] ss:$8 sps:$4 sm:$0xff]  }
  0xf4   :  { %4874 = vmatprep.subr.bf16.mxu1 %v6279_v29  ;;  %v170_v29 = vrot.slane %v7692_v12, %v7807_v25 }
  0xf7   :  { %4875 = vmatpush1.bf16.msra.mxu1 %v6277_v34 }
  0xf8   :  { %v7726_v44 = vpop.f32.mrb[4].mxu0  ;;  %4876 = vmatprep.subr.bf16.mxu1 %v6285_v39  ;;  %v1039_v39 = vadd.f32 %v7715_v33, %v170_v29 }
  0xf9   :  { %v7731_v47 = vpop.f32.mrb[5].mxu0 }
  0xfa   :  { %v1083_v48 = vpop.f32.mrb[6].mxu0  ;;  %v7748_v55 = vpop.f32.mrb[4].mxu1  ;;  %v1082_v41 = vadd.f32 %v7731_v47, %v182_v32 }
  0xfb   :  { %4877 = vmatpush1.bf16.msra.mxu1 %v6283_v42  ;;  %v1084_v49 = vpop.f32.mrb[7].mxu0  ;;  %v7750_v35 = vpop.f32.mrb[5].mxu1  ;;  %v230_v42 = vrot.slane %v7823_v30, %v7698_v14 }
  0xfc   :  { %4878 = vmatprep.subr.bf16.mxu1 %v6291_v45  ;;  %v1124_v56 = vpop.f32.mrb[6].mxu1 }
  0xfd   :  { %v1125_v58 = vpop.f32.mrb[7].mxu1 }
  0xff   :  { %4879 = vmatpush1.bf16.msra.mxu1 %v6289_v50 }
 0x100   :  { %4880 = vmatprep.subr.bf16.mxu1 %v6297_v51 }
 0x103   :  { %4881 = vmatpush1.bf16.msra.mxu1 %v6295_v52 }
 0x104   :  { %4882 = vmatprep.subr.bf16.mxu1 %v6303_v53 }
 0x107   :  { %4883 = vmatpush1.bf16.msra.mxu1 %v6301_v54 }
 0x108   :  { %v7758_v60 = vpop.f32.mrb[8].mxu0  ;;  %4884 = vmatprep.subr.bf16.mxu1 %v6309_v57 }
 0x109   :  { %v7763_v62 = vpop.f32.mrb[9].mxu0 }
 0x10a   :  { %v1165_v63 = vpop.f32.mrb[10].mxu0  ;;  %v7780_v7 = vpop.f32.mrb[8].mxu1 }
 0x10b   :  { %4885 = vmatpush1.bf16.msra.mxu1 %v6307_v59  ;;  %v1166_v0 = vpop.f32.mrb[11].mxu0  ;;  %v7782_v8 = vpop.f32.mrb[9].mxu1 }
 0x10c   :  { %4886 = vmatprep.subr.bf16.mxu1 %v6315_v61  ;;  %v1206_v6 = vpop.f32.mrb[10].mxu1 }
 0x10d   :  { %v1207_v10 = vpop.f32.mrb[11].mxu1 }
 0x10f   :  { %4887 = vmatpush1.bf16.msra.mxu1 %v6313_v1 }
 0x110   :  { %4888 = vmatprep.subr.bf16.mxu1 %v6321_v2 }
 0x113   :  { %4889 = vmatpush1.bf16.msra.mxu1 %v6319_v3 }
 0x114   :  { %4890 = vmatprep.subr.bf16.mxu1 %v6327_v4 }
 0x117   :  { %4891 = vmatpush1.bf16.msra.mxu1 %v6325_v5 }
 0x118   :  { %v7790_v16 = vpop.f32.mrb[12].mxu0  ;;  %4892 = vmatprep.subr.bf16.mxu1 %v6333_v9 }
 0x119   :  { %v7795_v18 = vpop.f32.mrb[13].mxu0 }
 0x11a   :  { %v1247_v19 = vpop.f32.mrb[14].mxu0  ;;  %v7825_v31 = vpop.f32.mrb[12].mxu1 }
 0x11b   :  { %4893 = vmatpush1.bf16.msra.mxu1 %v6331_v15  ;;  %v1248_v20 = vpop.f32.mrb[15].mxu0  ;;  %v7829_v34 = vpop.f32.mrb[13].mxu1 }
 0x11c   :  { %4894 = vmatprep.subr.bf16.mxu1 %v6339_v17  ;;  %v1288_v36 = vpop.f32.mrb[14].mxu1 }
 0x11d   :  { %v1289_v38 = vpop.f32.mrb[15].mxu1 }
 0x11f   :  { %4895 = vmatpush1.bf16.msra.mxu1 %v6337_v21 }
 0x120   :  { %4896 = vmatprep.subr.bf16.mxu1 %v6345_v23 }
 0x123   :  { %4897 = vmatpush1.bf16.msra.mxu1 %v6343_v24 }
 0x124   :  { %4898 = vmatprep.subr.bf16.mxu1 %v6351_v27 }
 0x127   :  { %4899 = vmatpush1.bf16.msra.mxu1 %v6349_v28 }
 0x128   :  { %10 = vsyncpa [#allocation3], 0  ;;  %v1325_v45 = vpop.f32.mrb[16].mxu0  ;;  %4900 = vmatprep.subr.bf16.mxu1 %v6357_v37  ;;  %v6363_v33 = vld [vmem:[%s9257_s3 + $0x1f4] ss:$8 sps:$4 sm:$0xff]   ;;  %vm1621_vm4 = vcmp.gt.f32.partialorder %v1039_v39, 0.0  ;;  %v238_v2 = vrot.slane %v7823_v30, %v7705_v22 }
 0x129   :  { %v1653_v46 = vmul.f32 0.2, %v1039_v39  ;;  %v1326_v48 = vadd.f32 %v1325_v45, %v226_v40  ;;  %v1327_v49 = vpop.f32.mrb[17].mxu0  ;;  %v1656_v50 = vmul.f32 0.2, %v1082_v41  ;;  %vm1624_vm5 = vcmp.gt.f32.partialorder %v1082_v41, 0.0 }
 0x12a   :  { %v1328_v47 = vadd.f32 %v1327_v49, %v230_v42  ;;  %v1329_v51 = vpop.f32.mrb[18].mxu0  ;;  %v6361_v52 = vld [vmem:[%s9257_s3 + $0x1f0] ss:$8 sps:$4 sm:$0xff]   ;;  %v6369_v57 = vld [vmem:[%s9257_s3 + $0x204] ss:$8 sps:$4 sm:$0xff]   ;;  %v7866_v15 = vpop.f32.mrb[16].mxu1 }
 0x12b   :  { %vm1635_vm6 = vcmp.gt.f32.partialorder %v1326_v48, 0.0  ;;  %v1667_v53 = vmul.f32 0.2, %v1326_v48  ;;  %4901 = vmatpush1.bf16.msra.mxu1 %v6355_v43  ;;  %v1330_v54 = vpop.f32.mrb[19].mxu0  ;;  %v1685_v58 = vsel %vm1621_vm4, %v1039_v39, %v1653_v46  ;;  %v1688_v63 = vsel %vm1624_vm5, %v1082_v41, %v1656_v50  ;;  %v6367_v0 = vld [vmem:[%s9257_s3 + $0x200] ss:$8 sps:$4 sm:$0xff]  }
 0x12c   :  { %vm1636_vm7 = vcmp.gt.f32.partialorder %v1328_v47, 0.0  ;;  %v1668_v56 = vmul.f32 0.2, %v1328_v47  ;;  %4902 = vmatprep.subr.bf16.mxu1 %v6363_v33  ;;  %v1717_v3 = vpack.c.bf16 %v1685_v58, %v1685_v58  ;;  %v6370_v5 = vld [vmem:[%s9257_s3 + $0x900] ss:$8 sps:$4 sm:$0xff]   ;;  %v1720_v9 = vpack.c.bf16 %v1688_v63, %v1688_v63  ;;  %v1368_v17 = vpop.f32.mrb[17].mxu1 }
 0x12d   :  { %v1699_v59 = vsel %vm1635_vm6, %v1326_v48, %v1667_v53  ;;  %v6375_v6 = vld [vmem:[%s9257_s3 + $0x214] ss:$8 sps:$4 sm:$0xff]   ;;  %v6373_v19 = vld [vmem:[%s9257_s3 + $0x210] ss:$8 sps:$4 sm:$0xff]   ;;  %v1369_v20 = vadd.f32 %v1368_v17, %v238_v2  ;;  %v1370_v21 = vpop.f32.mrb[18].mxu1 }
 0x12e   :  { %v1700_v61 = vsel %vm1636_vm7, %v1328_v47, %v1668_v56  ;;  %v1731_v4 = vpack.c.bf16 %v1699_v59, %v1699_v59  ;;  %v6378_v10 = vld [vmem:[%s9257_s3 + $0x914] ss:$8 sps:$4 sm:$0xff]   ;;  %v6376_v23 = vld [vmem:[%s9257_s3 + $0x910] ss:$8 sps:$4 sm:$0xff]   ;;  %v6381_v24 = vld [vmem:[%s9257_s3 + $0x224] ss:$8 sps:$4 sm:$0xff]  }
 0x12f   :  { %4903 = vmatpush1.bf16.msra.mxu1 %v6361_v52  ;;  %v1732_v1 = vpack.c.bf16 %v1700_v61, %v1700_v61  ;;  %v1371_v27 = vpop.f32.mrb[19].mxu1  ;;  %v6384_v28 = vld [vmem:[%s9257_s3 + $0x924] ss:$8 sps:$4 sm:$0xff]   ;;  %vm1638_vm8 = vcmp.gt.f32.partialorder %v1369_v20, 0.0  ;;  %v1670_v29 = vmul.f32 0.2, %v1369_v20 }
 0x130   :  { %4913 = vmatprep.subr.bf16.mxu1 %v6369_v57  ;;  %v6379_v32 = vld [vmem:[%s9257_s3 + $0x220] ss:$8 sps:$4 sm:$0xff]   ;;  %v6387_v38 = vld [vmem:[%s9257_s3 + $0x234] ss:$8 sps:$4 sm:$0xff]   ;;  %v6385_v45 = vld [vmem:[%s9257_s3 + $0x230] ss:$8 sps:$4 sm:$0xff]  }
 0x131   :  { %5191 = vmatprep.mubr.bf16.mxu0 %v1732_v1  ;;  %v1702_v36 = vsel %vm1638_vm8, %v1369_v20, %v1670_v29  ;;  %v6382_v37 = vld [vmem:[%s9257_s3 + $0x920] ss:$8 sps:$4 sm:$0xff]   ;;  %v6390_v41 = vld [vmem:[%s9257_s3 + $0x934] ss:$8 sps:$4 sm:$0xff]   ;;  %v6388_v46 = vld [vmem:[%s9257_s3 + $0x930] ss:$8 sps:$4 sm:$0xff]  }
 0x132   :  { %4905 = vmatmul.mubr.bf16.vlgmr.msra.gmra.mrb[32].mxu1 %v1717_v3  ;;  %5192 = vmatmul.mubr.bf16.vlgmr.msra.gmra.mrb[32].mxu0 %v1731_v4  ;;  %v1734_v39 = vpack.c.bf16 %v1702_v36, %v1702_v36  ;;  %v6393_v48 = vld [vmem:[%s9257_s3 + $0x244] ss:$8 sps:$4 sm:$0xff]   ;;  %v6391_v50 = vld [vmem:[%s9257_s3 + $0x240] ss:$8 sps:$4 sm:$0xff]   ;;  %v6399_v51 = vld [vmem:[%s9257_s3 + $0x254] ss:$8 sps:$4 sm:$0xff]  }
 0x133   :  { %4914 = vmatpush1.bf16.msra.mxu1 %v6367_v0  ;;  %4945 = vmatprep.mubr.bf16.mxu1 %v1720_v9  ;;  %v6396_v49 = vld [vmem:[%s9257_s3 + $0x944] ss:$8 sps:$4 sm:$0xff]   ;;  %v6394_v47 = vld [vmem:[%s9257_s3 + $0x940] ss:$8 sps:$4 sm:$0xff]   ;;  %v6402_v52 = vld [vmem:[%s9257_s3 + $0x954] ss:$8 sps:$4 sm:$0xff]  }
 0x134   :  { %5201 = vmatpush1.bf16.msra.mxu0 %v6370_v5  ;;  %4915 = vmatprep.subr.bf16.mxu1 %v6375_v6  ;;  %v6397_v56 = vld [vmem:[%s9257_s3 + $0x250] ss:$8 sps:$4 sm:$0xff]   ;;  %v6405_v59 = vld [vmem:[%s9257_s3 + $0x264] ss:$8 sps:$4 sm:$0xff]   ;;  %v6403_v0 = vld [vmem:[%s9257_s3 + $0x260] ss:$8 sps:$4 sm:$0xff]  }
 0x135   :  { %5202 = vmatprep.subr.bf16.mxu0 %v6378_v10  ;;  %5232 = vmatprep.mubr.bf16.mxu0 %v1734_v39  ;;  %v6400_v58 = vld [vmem:[%s9257_s3 + $0x950] ss:$8 sps:$4 sm:$0xff]   ;;  %v6408_v63 = vld [vmem:[%s9257_s3 + $0x964] ss:$8 sps:$4 sm:$0xff]   ;;  %v6406_v1 = vld [vmem:[%s9257_s3 + $0x960] ss:$8 sps:$4 sm:$0xff]  }
 0x136   :  { %v6411_v2 = vld [vmem:[%s9257_s3 + $0x274] ss:$8 sps:$4 sm:$0xff]   ;;  %v6409_v9 = vld [vmem:[%s9257_s3 + $0x270] ss:$8 sps:$4 sm:$0xff]   ;;  %v6417_v20 = vld [vmem:[%s9257_s3 + $0x284] ss:$8 sps:$4 sm:$0xff]  }
 0x137   :  { %4916 = vmatpush1.bf16.msra.mxu1 %v6373_v19  ;;  %v6414_v4 = vld [vmem:[%s9257_s3 + $0x974] ss:$8 sps:$4 sm:$0xff]   ;;  %v6412_v19 = vld [vmem:[%s9257_s3 + $0x970] ss:$8 sps:$4 sm:$0xff]   ;;  %v6420_v21 = vld [vmem:[%s9257_s3 + $0x984] ss:$8 sps:$4 sm:$0xff]  }
 0x138   :  { %5203 = vmatpush1.bf16.msra.mxu0 %v6376_v23  ;;  %4917 = vmatprep.subr.bf16.mxu1 %v6381_v24  ;;  %v7889_v40 = vpop.f32.mrb[20].mxu0  ;;  %v7958_v10 = vld [vmem:[%s9256_s2 + $0x18] sm:$0xff]  ;;  %v6415_v24 = vld [vmem:[%s9257_s3 + $0x280] ss:$8 sps:$4 sm:$0xff]   ;;  %v7988_v39 = vsub.s32 4, %v7687_v11 }
 0x139   :  { %5204 = vmatprep.subr.bf16.mxu0 %v6384_v28  ;;  %v7894_v42 = vpop.f32.mrb[21].mxu0  ;;  %v266_v23 = vrot.slane %v7958_v10, %v7807_v25  ;;  %v270_v27 = vrot.slane %v7958_v10, %v7705_v22  ;;  %v6418_v28 = vld [vmem:[%s9257_s3 + $0x980] ss:$8 sps:$4 sm:$0xff]   ;;  %v6423_v29 = vld [vmem:[%s9257_s3 + $0x294] ss:$8 sps:$4 sm:$0xff]  }
 0x13a   :  { %v1411_v43 = vpop.f32.mrb[22].mxu0  ;;  %v7920_v53 = vpop.f32.mrb[20].mxu1 }
 0x13b   :  { %4918 = vmatpush1.bf16.msra.mxu1 %v6379_v32  ;;  %v1412_v33 = vpop.f32.mrb[23].mxu0  ;;  %v7922_v54 = vpop.f32.mrb[21].mxu1  ;;  %v6426_v32 = vld [vmem:[%s9257_s3 + $0x994] ss:$8 sps:$4 sm:$0xff]  }
 0x13c   :  { %5205 = vmatpush1.bf16.msra.mxu0 %v6382_v37  ;;  %4919 = vmatprep.subr.bf16.mxu1 %v6387_v38  ;;  %v1452_v57 = vpop.f32.mrb[22].mxu1  ;;  %v6424_v33 = vld [vmem:[%s9257_s3 + $0x990] ss:$8 sps:$4 sm:$0xff]  }
 0x13d   :  { %5206 = vmatprep.subr.bf16.mxu0 %v6390_v41  ;;  %v1453_v61 = vpop.f32.mrb[23].mxu1  ;;  %v6421_v41 = vld [vmem:[%s9257_s3 + $0x290] ss:$8 sps:$4 sm:$0xff]  }
 0x13f   :  { %4920 = vmatpush1.bf16.msra.mxu1 %v6385_v45 }
 0x140   :  { %5207 = vmatpush1.bf16.msra.mxu0 %v6388_v46  ;;  %4921 = vmatprep.subr.bf16.mxu1 %v6393_v48  ;;  %v6429_v46 = vld [vmem:[%s9257_s3 + $0x2a4] ss:$8 sps:$4 sm:$0xff]  }
 0x141   :  { %5208 = vmatprep.subr.bf16.mxu0 %v6396_v49  ;;  %v6432_v49 = vld [vmem:[%s9257_s3 + $0x9a4] ss:$8 sps:$4 sm:$0xff]  }
 0x143   :  { %4922 = vmatpush1.bf16.msra.mxu1 %v6391_v50  ;;  %v274_v50 = vrot.slane %v7958_v10, %v7988_v39 }
 0x144   :  { %5209 = vmatpush1.bf16.msra.mxu0 %v6394_v47  ;;  %4923 = vmatprep.subr.bf16.mxu1 %v6399_v51  ;;  %v278_v47 = vrot.slane %v7958_v10, %v7810_v26  ;;  %v6427_v51 = vld [vmem:[%s9257_s3 + $0x2a0] ss:$8 sps:$4 sm:$0xff]  }
 0x145   :  { %5210 = vmatprep.subr.bf16.mxu0 %v6402_v52  ;;  %v6430_v52 = vld [vmem:[%s9257_s3 + $0x9a0] ss:$8 sps:$4 sm:$0xff]  }
 0x147   :  { %4924 = vmatpush1.bf16.msra.mxu1 %v6397_v56  ;;  %v6435_v56 = vld [vmem:[%s9257_s3 + $0x2b4] ss:$8 sps:$4 sm:$0xff]  }
 0x148   :  { %5211 = vmatpush1.bf16.msra.mxu0 %v6400_v58  ;;  %4925 = vmatprep.subr.bf16.mxu1 %v6405_v59  ;;  %v7945_v3 = vpop.f32.mrb[24].mxu0  ;;  %v6438_v58 = vld [vmem:[%s9257_s3 + $0x9b4] ss:$8 sps:$4 sm:$0xff]  }
 0x149   :  { %5212 = vmatprep.subr.bf16.mxu0 %v6408_v63  ;;  %v7950_v5 = vpop.f32.mrb[25].mxu0 }
 0x14a   :  { %v1493_v6 = vpop.f32.mrb[26].mxu0  ;;  %v1530_v36 = vpop.f32.mrb[24].mxu1 }
 0x14b   :  { %4926 = vmatpush1.bf16.msra.mxu1 %v6403_v0  ;;  %v1494_v17 = vpop.f32.mrb[27].mxu0  ;;  %v7985_v37 = vadd.f32 %v1530_v36, %v266_v23  ;;  %v1532_v38 = vpop.f32.mrb[25].mxu1  ;;  %v6436_v6 = vld [vmem:[%s9257_s3 + $0x9b0] ss:$8 sps:$4 sm:$0xff]  }
 0x14c   :  { %5213 = vmatpush1.bf16.msra.mxu0 %v6406_v1  ;;  %4927 = vmatprep.subr.bf16.mxu1 %v6411_v2  ;;  %v7993_v43 = vadd.f32 %v1532_v38, %v270_v27  ;;  %v1534_v45 = vpop.f32.mrb[26].mxu1  ;;  %v6433_v1 = vld [vmem:[%s9257_s3 + $0x2b0] ss:$8 sps:$4 sm:$0xff]   ;;  %v8037_v17 = vsub.s32 7, %v7687_v11  ;;  %v178_v27 = vrot.slane %v7692_v12, %v7988_v39 }
 0x14d   :  { %5214 = vmatprep.subr.bf16.mxu0 %v6414_v4  ;;  %v1535_v48 = vpop.f32.mrb[27].mxu1  ;;  %v8028_v4 = vsub.s32 6, %v7687_v11  ;;  %v6442_v11 = vld [vmem:[%s9257_s3 + $0x9c0] ss:$8 sps:$4 sm:$0xff]   ;;  %v6445_v45 = vld [vmem:[%s9257_s3 + $0x2d0] ss:$8 sps:$4 sm:$0xff]  }
 0x14e   :  { %v286_v23 = vrot.slane %v7958_v10, %v8037_v17  ;;  %vm1646_vm8 = vcmp.gt.f32.partialorder %v7993_v43, 0.0 }
 0x14f   :  { %4928 = vmatpush1.bf16.msra.mxu1 %v6409_v9  ;;  %v6441_v9 = vld [vmem:[%s9257_s3 + $0x2c4] ss:$8 sps:$4 sm:$0xff]  }
 0x150   :  { %5215 = vmatpush1.bf16.msra.mxu0 %v6412_v19  ;;  %4929 = vmatprep.subr.bf16.mxu1 %v6417_v20  ;;  %v6444_v19 = vld [vmem:[%s9257_s3 + $0x9c4] ss:$8 sps:$4 sm:$0xff]   ;;  %v282_v20 = vrot.slane %v7958_v10, %v8028_v4 }
 0x151   :  { %5216 = vmatprep.subr.bf16.mxu0 %v6420_v21  ;;  %v6439_v21 = vld [vmem:[%s9257_s3 + $0x2c0] ss:$8 sps:$4 sm:$0xff]  }
 0x153   :  { %4930 = vmatpush1.bf16.msra.mxu1 %v6415_v24  ;;  %v6447_v24 = vld [vmem:[%s9257_s3 + $0x2d4] ss:$8 sps:$4 sm:$0xff]  }
 0x154   :  { %5217 = vmatpush1.bf16.msra.mxu0 %v6418_v28  ;;  %4931 = vmatprep.subr.bf16.mxu1 %v6423_v29  ;;  %v6450_v28 = vld [vmem:[%s9257_s3 + $0x9d4] ss:$8 sps:$4 sm:$0xff]  }
 0x155   :  { %5218 = vmatprep.subr.bf16.mxu0 %v6426_v32  ;;  %v234_v32 = vrot.slane %v7823_v30, %v7807_v25 }
 0x157   :  { %4932 = vmatpush1.bf16.msra.mxu1 %v6421_v41  ;;  %v190_v41 = vrot.slane %v7692_v12, %v8037_v17  ;;  %v6453_v12 = vld [vmem:[%s9257_s3 + $0x2e4] ss:$8 sps:$4 sm:$0xff]  }
 0x158   :  { %5219 = vmatpush1.bf16.msra.mxu0 %v6424_v33  ;;  %4933 = vmatprep.subr.bf16.mxu1 %v6429_v46  ;;  %v1571_v57 = vpop.f32.mrb[28].mxu0  ;;  %v246_v33 = vrot.slane %v7823_v30, %v7810_v26 }
 0x159   :  { %5220 = vmatprep.subr.bf16.mxu0 %v6432_v49  ;;  %v8020_v59 = vadd.f32 %v1571_v57, %v274_v50  ;;  %v1573_v61 = vpop.f32.mrb[29].mxu0  ;;  %v6448_v49 = vld [vmem:[%s9257_s3 + $0x9d0] ss:$8 sps:$4 sm:$0xff]   ;;  %v6451_v57 = vld [vmem:[%s9257_s3 + $0x2e0] ss:$8 sps:$4 sm:$0xff]  }
 0x15a   :  { %v8022_v63 = vadd.f32 %v1573_v61, %v278_v47  ;;  %v1575_v0 = vpop.f32.mrb[30].mxu0  ;;  %v1612_v29 = vpop.f32.mrb[28].mxu1  ;;  %v1080_v47 = vadd.f32 %v7726_v44, %v178_v27  ;;  %v6454_v44 = vld [vmem:[%s9257_s3 + $0x9e0] ss:$8 sps:$4 sm:$0xff]   ;;  %v6459_v61 = vld [vmem:[%s9257_s3 + $0x2f4] ss:$8 sps:$4 sm:$0xff]  }
 0x15b   :  { %4934 = vmatpush1.bf16.msra.mxu1 %v6427_v51  ;;  %v1576_v2 = vpop.f32.mrb[31].mxu0  ;;  %v8062_v36 = vadd.f32 %v1612_v29, %v282_v20  ;;  %v1614_v38 = vpop.f32.mrb[29].mxu1  ;;  %v6456_v51 = vld [vmem:[%s9257_s3 + $0x9e4] ss:$8 sps:$4 sm:$0xff]  }
 0x15c   :  { %5221 = vmatpush1.bf16.msra.mxu0 %v6430_v52  ;;  %4935 = vmatprep.subr.bf16.mxu1 %v6435_v56  ;;  %v8071_v46 = vadd.f32 %v1614_v38, %v286_v23  ;;  %v1616_v48 = vpop.f32.mrb[30].mxu1  ;;  %v1367_v52 = vadd.f32 %v7866_v15, %v234_v32  ;;  %v1123_v56 = vadd.f32 %v7750_v35, %v190_v41  ;;  %v1655_v15 = vmul.f32 0.2, %v1080_v47  ;;  %v6462_v35 = vld [vmem:[%s9257_s3 + $0x9f4] ss:$8 sps:$4 sm:$0xff]  }
 0x15d   :  { %5222 = vmatprep.subr.bf16.mxu0 %v6438_v58  ;;  %v1617_v50 = vpop.f32.mrb[31].mxu1  ;;  %v1410_v58 = vadd.f32 %v7894_v42, %v246_v33  ;;  %vm1623_vm9 = vcmp.gt.f32.partialorder %v1080_v47, 0.0  ;;  %v6457_v42 = vld [vmem:[%s9257_s3 + $0x2f0] ss:$8 sps:$4 sm:$0xff]   ;;  %v6468_v20 = vld [vmem:[%s9257_s3 + $0xa04] ss:$8 sps:$4 sm:$0xff]  }
 0x15e   :  { %v1669_v0 = vmul.f32 0.2, %v1367_v52  ;;  %vm1637_vm10 = vcmp.gt.f32.partialorder %v1367_v52, 0.0  ;;  %vm1626_vm11 = vcmp.gt.f32.partialorder %v1123_v56, 0.0  ;;  %v6463_v23 = vld [vmem:[%s9257_s3 + $0x300] ss:$8 sps:$4 sm:$0xff]  }
 0x15f   :  { %4936 = vmatpush1.bf16.msra.mxu1 %v6433_v1  ;;  %v1658_v1 = vmul.f32 0.2, %v1123_v56  ;;  %v1672_v2 = vmul.f32 0.2, %v1410_v58  ;;  %vm1640_vm12 = vcmp.gt.f32.partialorder %v1410_v58, 0.0 }
 0x160   :  { %5223 = vmatpush1.bf16.msra.mxu0 %v6436_v6  ;;  %4937 = vmatprep.subr.bf16.mxu1 %v6441_v9  ;;  %v6460_v6 = vld [vmem:[%s9257_s3 + $0x9f0] ss:$8 sps:$4 sm:$0xff]   ;;  %v6465_v9 = vld [vmem:[%s9257_s3 + $0x304] ss:$8 sps:$4 sm:$0xff]   ;;  %v6471_v32 = vld [vmem:[%s9257_s3 + $0x314] ss:$8 sps:$4 sm:$0xff]  }
 0x161   :  { %5224 = vmatprep.subr.bf16.mxu0 %v6444_v19  ;;  %v1687_v19 = vsel %vm1623_vm9, %v1080_v47, %v1655_v15  ;;  %v6474_v38 = vld [vmem:[%s9257_s3 + $0xa14] ss:$8 sps:$4 sm:$0xff]   ;;  %v6469_v33 = vld [vmem:[%s9257_s3 + $0x310] ss:$8 sps:$4 sm:$0xff]   ;;  %v6475_v50 = vld [vmem:[%s9257_s3 + $0x320] ss:$8 sps:$4 sm:$0xff]  }
 0x162   :  { %v1719_v27 = vpack.c.bf16 %v1687_v19, %v1687_v19  ;;  %v6472_v48 = vld [vmem:[%s9257_s3 + $0xa10] ss:$8 sps:$4 sm:$0xff]   ;;  %v6478_v47 = vld [vmem:[%s9257_s3 + $0xa20] ss:$8 sps:$4 sm:$0xff]  }
 0x163   :  { %4938 = vmatpush1.bf16.msra.mxu1 %v6439_v21  ;;  %v1701_v21 = vsel %vm1637_vm10, %v1367_v52, %v1669_v0  ;;  %v6486_v52 = vld [vmem:[%s9257_s3 + $0xa34] ss:$8 sps:$4 sm:$0xff]   ;;  %v6490_v15 = vld [vmem:[%s9257_s3 + $0xa40] ss:$8 sps:$4 sm:$0xff]  }
 0x164   :  { %5225 = vmatpush1.bf16.msra.mxu0 %v6442_v11  ;;  %4939 = vmatprep.subr.bf16.mxu1 %v6447_v24  ;;  %v1690_v11 = vsel %vm1626_vm11, %v1123_v56, %v1658_v1  ;;  %v1704_v24 = vsel %vm1640_vm12, %v1410_v58, %v1672_v2  ;;  %v1733_v29 = vpack.c.bf16 %v1701_v21, %v1701_v21  ;;  %v6481_v56 = vld [vmem:[%s9257_s3 + $0x330] ss:$8 sps:$4 sm:$0xff]   ;;  %v6489_v58 = vld [vmem:[%s9257_s3 + $0x344] ss:$8 sps:$4 sm:$0xff]   ;;  %v6498_v0 = vld [vmem:[%s9257_s3 + $0xa54] ss:$8 sps:$4 sm:$0xff]  }
 0x165   :  { %5226 = vmatprep.subr.bf16.mxu0 %v6450_v28  ;;  %v6466_v28 = vld [vmem:[%s9257_s3 + $0xa00] ss:$8 sps:$4 sm:$0xff]   ;;  %v1722_v41 = vpack.c.bf16 %v1690_v11, %v1690_v11  ;;  %v6496_v1 = vld [vmem:[%s9257_s3 + $0xa50] ss:$8 sps:$4 sm:$0xff]   ;;  %v6501_v2 = vld [vmem:[%s9257_s3 + $0x364] ss:$8 sps:$4 sm:$0xff]  }
 0x166   :  { %v6502_v19 = vld [vmem:[%s9257_s3 + $0xa60] ss:$8 sps:$4 sm:$0xff]   ;;  %v6510_v21 = vld [vmem:[%s9257_s3 + $0xa74] ss:$8 sps:$4 sm:$0xff]   ;;  %v6508_v11 = vld [vmem:[%s9257_s3 + $0xa70] ss:$8 sps:$4 sm:$0xff]  }
 0x167   :  { %4940 = vmatpush1.bf16.msra.mxu1 %v6445_v45  ;;  %v1736_v45 = vpack.c.bf16 %v1704_v24, %v1704_v24  ;;  %v6513_v24 = vld [vmem:[%s9257_s3 + $0x384] ss:$8 sps:$4 sm:$0xff]   ;;  %vm1645_vm11 = vcmp.gt.f32.partialorder %v7985_v37, 0.0  ;;  %vm1648_vm12 = vcmp.gt.f32.partialorder %v8022_v63, 0.0 }
 0x168   :  { %5227 = vmatpush1.bf16.msra.mxu0 %v6448_v49  ;;  %4941 = vmatprep.subr.bf16.mxu1 %v6453_v12  ;;  %v6477_v49 = vld [vmem:[%s9257_s3 + $0x324] ss:$8 sps:$4 sm:$0xff]  }
 0x169   :  { %5228 = vmatprep.subr.bf16.mxu0 %v6456_v51  ;;  %v6480_v12 = vld [vmem:[%s9257_s3 + $0xa24] ss:$8 sps:$4 sm:$0xff]   ;;  %v6483_v51 = vld [vmem:[%s9257_s3 + $0x334] ss:$8 sps:$4 sm:$0xff]  }
 0x16b   :  { %4942 = vmatpush1.bf16.msra.mxu1 %v6451_v57  ;;  %v6484_v57 = vld [vmem:[%s9257_s3 + $0xa30] ss:$8 sps:$4 sm:$0xff]  }
 0x16c   :  { %5229 = vmatpush1.bf16.msra.mxu0 %v6454_v44  ;;  %4943 = vmatprep.subr.bf16.mxu1 %v6459_v61  ;;  %v6492_v44 = vld [vmem:[%s9257_s3 + $0xa44] ss:$8 sps:$4 sm:$0xff]   ;;  %v6487_v61 = vld [vmem:[%s9257_s3 + $0x340] ss:$8 sps:$4 sm:$0xff]  }
 0x16d   :  { %5230 = vmatprep.subr.bf16.mxu0 %v6462_v35  ;;  %v6495_v35 = vld [vmem:[%s9257_s3 + $0x354] ss:$8 sps:$4 sm:$0xff]  }
 0x16f   :  { %4944 = vmatpush1.bf16.msra.mxu1 %v6457_v42  ;;  %v6493_v42 = vld [vmem:[%s9257_s3 + $0x350] ss:$8 sps:$4 sm:$0xff]  }
 0x170   :  { %5231 = vmatpush1.bf16.msra.mxu0 %v6460_v6  ;;  %4954 = vmatprep.subr.bf16.mxu1 %v6465_v9  ;;  %v6504_v6 = vld [vmem:[%s9257_s3 + $0xa64] ss:$8 sps:$4 sm:$0xff]   ;;  %v6499_v9 = vld [vmem:[%s9257_s3 + $0x360] ss:$8 sps:$4 sm:$0xff]  }
 0x171   :  { %5241 = vmatprep.subr.bf16.mxu0 %v6468_v20  ;;  %v6507_v20 = vld [vmem:[%s9257_s3 + $0x374] ss:$8 sps:$4 sm:$0xff]  }
 0x172   :  { %4946 = vmatmul.mubr.bf16.vlgmr.msra.gmra.mrb[32].mxu1 %v1719_v27  ;;  %v6516_v27 = vld [vmem:[%s9257_s3 + $0xa84] ss:$8 sps:$4 sm:$0xff]  }
 0x173   :  { %5233 = vmatmul.mubr.bf16.vlgmr.msra.gmra.mrb[32].mxu0 %v1733_v29  ;;  %4955 = vmatpush1.bf16.msra.mxu1 %v6463_v23  ;;  %v6505_v23 = vld [vmem:[%s9257_s3 + $0x370] ss:$8 sps:$4 sm:$0xff]   ;;  %v6514_v29 = vld [vmem:[%s9257_s3 + $0xa80] ss:$8 sps:$4 sm:$0xff]  }
 0x174   :  { %4986 = vmatprep.mubr.bf16.mxu1 %v1722_v41  ;;  %5242 = vmatpush1.bf16.msra.mxu0 %v6466_v28  ;;  %v6511_v28 = vld [vmem:[%s9257_s3 + $0x380] ss:$8 sps:$4 sm:$0xff]   ;;  %v6517_v41 = vld [vmem:[%s9257_s3 + $0x390] ss:$8 sps:$4 sm:$0xff]  }
 0x175   :  { %4956 = vmatprep.subr.bf16.mxu1 %v6471_v32  ;;  %5243 = vmatprep.subr.bf16.mxu0 %v6474_v38  ;;  %v6519_v32 = vld [vmem:[%s9257_s3 + $0x394] ss:$8 sps:$4 sm:$0xff]  }
 0x176   :  { %5273 = vmatprep.mubr.bf16.mxu0 %v1736_v45  ;;  %v6522_v38 = vld [vmem:[%s9257_s3 + $0xa94] ss:$8 sps:$4 sm:$0xff]   ;;  %v6520_v45 = vld [vmem:[%s9257_s3 + $0xa90] ss:$8 sps:$4 sm:$0xff]  }
 0x177   :  { %4957 = vmatpush1.bf16.msra.mxu1 %v6469_v33  ;;  %v6525_v33 = vld [vmem:[%s9257_s3 + $0x3a4] ss:$8 sps:$4 sm:$0xff]  }
 0x178   :  { %5244 = vmatpush1.bf16.msra.mxu0 %v6472_v48  ;;  %4958 = vmatprep.subr.bf16.mxu1 %v6477_v49  ;;  %v6528_v48 = vld [vmem:[%s9257_s3 + $0xaa4] ss:$8 sps:$4 sm:$0xff]   ;;  %v6523_v49 = vld [vmem:[%s9257_s3 + $0x3a0] ss:$8 sps:$4 sm:$0xff]  }
 0x179   :  { %5245 = vmatprep.subr.bf16.mxu0 %v6480_v12  ;;  %v6526_v12 = vld [vmem:[%s9257_s3 + $0xaa0] ss:$8 sps:$4 sm:$0xff]  }
 0x17b   :  { %4959 = vmatpush1.bf16.msra.mxu1 %v6475_v50  ;;  %v6531_v50 = vld [vmem:[%s9257_s3 + $0x3b4] ss:$8 sps:$4 sm:$0xff]  }
 0x17c   :  { %5246 = vmatpush1.bf16.msra.mxu0 %v6478_v47  ;;  %4960 = vmatprep.subr.bf16.mxu1 %v6483_v51  ;;  %v6534_v47 = vld [vmem:[%s9257_s3 + $0xab4] ss:$8 sps:$4 sm:$0xff]   ;;  %v6529_v51 = vld [vmem:[%s9257_s3 + $0x3b0] ss:$8 sps:$4 sm:$0xff]  }
 0x17d   :  { %5247 = vmatprep.subr.bf16.mxu0 %v6486_v52  ;;  %v6532_v52 = vld [vmem:[%s9257_s3 + $0xab0] ss:$8 sps:$4 sm:$0xff]  }
 0x17f   :  { %4961 = vmatpush1.bf16.msra.mxu1 %v6481_v56  ;;  %v6537_v56 = vld [vmem:[%s9257_s3 + $0x3c4] ss:$8 sps:$4 sm:$0xff]  }
 0x180   :  { %5248 = vmatpush1.bf16.msra.mxu0 %v6484_v57  ;;  %4962 = vmatprep.subr.bf16.mxu1 %v6489_v58  ;;  %v6540_v57 = vld [vmem:[%s9257_s3 + $0xac4] ss:$8 sps:$4 sm:$0xff]   ;;  %v6535_v58 = vld [vmem:[%s9257_s3 + $0x3c0] ss:$8 sps:$4 sm:$0xff]  }
 0x181   :  { %5249 = vmatprep.subr.bf16.mxu0 %v6492_v44  ;;  %v8260_v44 = vld [vmem:[%s9256_s2 + $0x8] sm:$0xff] }
 0x183   :  { %4963 = vmatpush1.bf16.msra.mxu1 %v6487_v61  ;;  %v6538_v61 = vld [vmem:[%s9257_s3 + $0xac0] ss:$8 sps:$4 sm:$0xff]  }
 0x184   :  { %5250 = vmatpush1.bf16.msra.mxu0 %v6490_v15  ;;  %4964 = vmatprep.subr.bf16.mxu1 %v6495_v35  ;;  %v6543_v15 = vld [vmem:[%s9257_s3 + $0x3d4] ss:$8 sps:$4 sm:$0xff]   ;;  %v6992_v35 = vld [vmem:[%s9256_s2] sm:$0xff] }
 0x185   :  { %5251 = vmatprep.subr.bf16.mxu0 %v6498_v0  ;;  %v186_v0 = vrot.slane %v6992_v35, %v8028_v4  ;;  %v6565_v35 = vld [vmem:[%s9257_s3 + $0x410] ss:$8 sps:$4 sm:$0xff]  }
 0x187   :  { %4965 = vmatpush1.bf16.msra.mxu1 %v6493_v42  ;;  %v6546_v42 = vld [vmem:[%s9257_s3 + $0xad4] ss:$8 sps:$4 sm:$0xff]  }
 0x188   :  { %5252 = vmatpush1.bf16.msra.mxu0 %v6496_v1  ;;  %4966 = vmatprep.subr.bf16.mxu1 %v6501_v2  ;;  %v242_v1 = vrot.slane %v7823_v30, %v7988_v39  ;;  %v198_v2 = vrot.slane %v8260_v44, %v7698_v14 }
 0x189   :  { %5253 = vmatprep.subr.bf16.mxu0 %v6504_v6  ;;  %v6541_v6 = vld [vmem:[%s9257_s3 + $0x3d0] ss:$8 sps:$4 sm:$0xff]  }
 0x18b   :  { %4967 = vmatpush1.bf16.msra.mxu1 %v6499_v9  ;;  %v254_v9 = vrot.slane %v7823_v30, %v8037_v17  ;;  %v1164_v30 = vadd.f32 %v7763_v62, %v198_v2  ;;  %v6558_v62 = vld [vmem:[%s9257_s3 + $0xaf4] ss:$8 sps:$4 sm:$0xff]   ;;  %v6571_v2 = vld [vmem:[%s9257_s3 + $0x420] ss:$8 sps:$4 sm:$0xff]  }
 0x18c   :  { %5254 = vmatpush1.bf16.msra.mxu0 %v6502_v19  ;;  %4968 = vmatprep.subr.bf16.mxu1 %v6507_v20  ;;  %v6544_v19 = vld [vmem:[%s9257_s3 + $0xad0] ss:$8 sps:$4 sm:$0xff]   ;;  %v6549_v20 = vld [vmem:[%s9257_s3 + $0x3e4] ss:$8 sps:$4 sm:$0xff]  }
 0x18d   :  { %5255 = vmatprep.subr.bf16.mxu0 %v6510_v21  ;;  %v1121_v21 = vadd.f32 %v7748_v55, %v186_v0  ;;  %v6550_v55 = vld [vmem:[%s9257_s3 + $0xae0] ss:$8 sps:$4 sm:$0xff]   ;;  %vm1628_vm14 = vcmp.gt.f32.partialorder %v1164_v30, 0.0  ;;  %v6568_v0 = vld [vmem:[%s9257_s3 + $0xb10] ss:$8 sps:$4 sm:$0xff]  }
 0x18f   :  { %4969 = vmatpush1.bf16.msra.mxu1 %v6505_v23  ;;  %v6552_v23 = vld [vmem:[%s9257_s3 + $0xae4] ss:$8 sps:$4 sm:$0xff]   ;;  %vm1625_vm13 = vcmp.gt.f32.partialorder %v1121_v21, 0.0 }
 0x190   :  { %5256 = vmatpush1.bf16.msra.mxu0 %v6508_v11  ;;  %4970 = vmatprep.subr.bf16.mxu1 %v6513_v24  ;;  %v1408_v11 = vadd.f32 %v7889_v40, %v242_v1  ;;  %v6547_v24 = vld [vmem:[%s9257_s3 + $0x3e0] ss:$8 sps:$4 sm:$0xff]   ;;  %v1657_v40 = vmul.f32 0.2, %v1121_v21  ;;  %v6576_v1 = vld [vmem:[%s9257_s3 + $0xb24] ss:$8 sps:$4 sm:$0xff]  }
 0x191   :  { %5257 = vmatprep.subr.bf16.mxu0 %v6516_v27  ;;  %v1451_v27 = vadd.f32 %v7922_v54, %v254_v9  ;;  %v1660_v54 = vmul.f32 0.2, %v1164_v30  ;;  %v6579_v9 = vld [vmem:[%s9257_s3 + $0x434] ss:$8 sps:$4 sm:$0xff]  }
 0x192   :  { %vm1639_vm15 = vcmp.gt.f32.partialorder %v1408_v11, 0.0 }
 0x193   :  { %4971 = vmatpush1.bf16.msra.mxu1 %v6511_v28  ;;  %v6555_v28 = vld [vmem:[%s9257_s3 + $0x3f4] ss:$8 sps:$4 sm:$0xff]   ;;  %vm1642_vm0 = vcmp.gt.f32.partialorder %v1451_v27, 0.0 }
 0x194   :  { %5258 = vmatpush1.bf16.msra.mxu0 %v6514_v29  ;;  %4972 = vmatprep.subr.bf16.mxu1 %v6519_v32  ;;  %v1671_v29 = vmul.f32 0.2, %v1408_v11  ;;  %v6553_v32 = vld [vmem:[%s9257_s3 + $0x3f0] ss:$8 sps:$4 sm:$0xff]  }
 0x195   :  { %5259 = vmatprep.subr.bf16.mxu0 %v6522_v38  ;;  %v1674_v38 = vmul.f32 0.2, %v1451_v27 }
 0x197   :  { %4973 = vmatpush1.bf16.msra.mxu1 %v6517_v41  ;;  %v6556_v41 = vld [vmem:[%s9257_s3 + $0xaf0] ss:$8 sps:$4 sm:$0xff]  }
 0x198   :  { %5260 = vmatpush1.bf16.msra.mxu0 %v6520_v45  ;;  %4974 = vmatprep.subr.bf16.mxu1 %v6525_v33  ;;  %v6561_v45 = vld [vmem:[%s9257_s3 + $0x404] ss:$8 sps:$4 sm:$0xff]   ;;  %v1689_v33 = vsel %vm1625_vm13, %v1121_v21, %v1657_v40  ;;  %v6580_v21 = vld [vmem:[%s9257_s3 + $0xb30] ss:$8 sps:$4 sm:$0xff]  }
 0x199   :  { %5261 = vmatprep.subr.bf16.mxu0 %v6528_v48  ;;  %v6564_v48 = vld [vmem:[%s9257_s3 + $0xb04] ss:$8 sps:$4 sm:$0xff]   ;;  %v6592_v40 = vld [vmem:[%s9257_s3 + $0xb50] ss:$8 sps:$4 sm:$0xff]  }
 0x19b   :  { %4975 = vmatpush1.bf16.msra.mxu1 %v6523_v49  ;;  %v1703_v49 = vsel %vm1639_vm15, %v1408_v11, %v1671_v29  ;;  %v6588_v11 = vld [vmem:[%s9257_s3 + $0xb44] ss:$8 sps:$4 sm:$0xff]   ;;  %vm1650_vm15 = vcmp.gt.f32.partialorder %v8071_v46, 0.0 }
 0x19c   :  { %5262 = vmatpush1.bf16.msra.mxu0 %v6526_v12  ;;  %4976 = vmatprep.subr.bf16.mxu1 %v6531_v50  ;;  %v6559_v12 = vld [vmem:[%s9257_s3 + $0x400] ss:$8 sps:$4 sm:$0xff]   ;;  %v1692_v50 = vsel %vm1628_vm14, %v1164_v30, %v1660_v54  ;;  %v6600_v29 = vld [vmem:[%s9257_s3 + $0xb64] ss:$8 sps:$4 sm:$0xff]   ;;  %vm1647_vm14 = vcmp.gt.f32.partialorder %v8020_v59, 0.0 }
 0x19d   :  { %5263 = vmatprep.subr.bf16.mxu0 %v6534_v47  ;;  %v1721_v47 = vpack.c.bf16 %v1689_v33, %v1689_v33  ;;  %v6583_v30 = vld [vmem:[%s9257_s3 + $0x440] ss:$8 sps:$4 sm:$0xff]   ;;  %v6604_v33 = vld [vmem:[%s9257_s3 + $0xb70] ss:$8 sps:$4 sm:$0xff]  }
 0x19e   :  { %v6595_v54 = vld [vmem:[%s9257_s3 + $0x460] ss:$8 sps:$4 sm:$0xff]  }
 0x19f   :  { %4977 = vmatpush1.bf16.msra.mxu1 %v6529_v51  ;;  %v6562_v51 = vld [vmem:[%s9257_s3 + $0xb00] ss:$8 sps:$4 sm:$0xff]  }
 0x1a0   :  { %5264 = vmatpush1.bf16.msra.mxu0 %v6532_v52  ;;  %4978 = vmatprep.subr.bf16.mxu1 %v6537_v56  ;;  %v1706_v52 = vsel %vm1642_vm0, %v1451_v27, %v1674_v38  ;;  %v1735_v56 = vpack.c.bf16 %v1703_v49, %v1703_v49  ;;  %v6591_v27 = vld [vmem:[%s9257_s3 + $0x454] ss:$8 sps:$4 sm:$0xff]   ;;  %v6612_v49 = vld [vmem:[%s9257_s3 + $0xb84] ss:$8 sps:$4 sm:$0xff]   ;;  %vm1649_vm0 = vcmp.gt.f32.partialorder %v8062_v36, 0.0 }
 0x1a1   :  { %5265 = vmatprep.subr.bf16.mxu0 %v6540_v57  ;;  %v6567_v57 = vld [vmem:[%s9257_s3 + $0x414] ss:$8 sps:$4 sm:$0xff]  }
 0x1a2   :  { %v6603_v38 = vld [vmem:[%s9257_s3 + $0x474] ss:$8 sps:$4 sm:$0xff]  }
 0x1a3   :  { %4979 = vmatpush1.bf16.msra.mxu1 %v6535_v58  ;;  %v1724_v58 = vpack.c.bf16 %v1692_v50, %v1692_v50  ;;  %v6610_v50 = vld [vmem:[%s9257_s3 + $0xb80] ss:$8 sps:$4 sm:$0xff]  }
 0x1a4   :  { %5266 = vmatpush1.bf16.msra.mxu0 %v6538_v61  ;;  %4980 = vmatprep.subr.bf16.mxu1 %v6543_v15  ;;  %v6570_v61 = vld [vmem:[%s9257_s3 + $0xb14] ss:$8 sps:$4 sm:$0xff]   ;;  %v1738_v15 = vpack.c.bf16 %v1706_v52, %v1706_v52  ;;  %v6613_v52 = vld [vmem:[%s9257_s3 + $0x490] ss:$8 sps:$4 sm:$0xff]  }
 0x1a5   :  { %5267 = vmatprep.subr.bf16.mxu0 %v6546_v42  ;;  %v6573_v42 = vld [vmem:[%s9257_s3 + $0x424] ss:$8 sps:$4 sm:$0xff]  }
 0x1a7   :  { %4981 = vmatpush1.bf16.msra.mxu1 %v6541_v6  ;;  %v6574_v6 = vld [vmem:[%s9257_s3 + $0xb20] ss:$8 sps:$4 sm:$0xff]  }
 0x1a8   :  { %5268 = vmatpush1.bf16.msra.mxu0 %v6544_v19  ;;  %4982 = vmatprep.subr.bf16.mxu1 %v6549_v20  ;;  %v6582_v19 = vld [vmem:[%s9257_s3 + $0xb34] ss:$8 sps:$4 sm:$0xff]   ;;  %v6577_v20 = vld [vmem:[%s9257_s3 + $0x430] ss:$8 sps:$4 sm:$0xff]  }
 0x1a9   :  { %5269 = vmatprep.subr.bf16.mxu0 %v6552_v23  ;;  %v6585_v23 = vld [vmem:[%s9257_s3 + $0x444] ss:$8 sps:$4 sm:$0xff]  }
 0x1ab   :  { %4983 = vmatpush1.bf16.msra.mxu1 %v6547_v24  ;;  %v6586_v24 = vld [vmem:[%s9257_s3 + $0xb40] ss:$8 sps:$4 sm:$0xff]  }
 0x1ac   :  { %5270 = vmatpush1.bf16.msra.mxu0 %v6550_v55  ;;  %4984 = vmatprep.subr.bf16.mxu1 %v6555_v28  ;;  %v6594_v55 = vld [vmem:[%s9257_s3 + $0xb54] ss:$8 sps:$4 sm:$0xff]   ;;  %v6589_v28 = vld [vmem:[%s9257_s3 + $0x450] ss:$8 sps:$4 sm:$0xff]  }
 0x1ad   :  { %5271 = vmatprep.subr.bf16.mxu0 %v6558_v62  ;;  %v6597_v62 = vld [vmem:[%s9257_s3 + $0x464] ss:$8 sps:$4 sm:$0xff]  }
 0x1af   :  { %4985 = vmatpush1.bf16.msra.mxu1 %v6553_v32  ;;  %v6598_v32 = vld [vmem:[%s9257_s3 + $0xb60] ss:$8 sps:$4 sm:$0xff]  }
 0x1b0   :  { %5272 = vmatpush1.bf16.msra.mxu0 %v6556_v41  ;;  %4995 = vmatprep.subr.bf16.mxu1 %v6561_v45  ;;  %v6606_v41 = vld [vmem:[%s9257_s3 + $0xb74] ss:$8 sps:$4 sm:$0xff]   ;;  %v6601_v45 = vld [vmem:[%s9257_s3 + $0x470] ss:$8 sps:$4 sm:$0xff]  }
 0x1b1   :  { %5282 = vmatprep.subr.bf16.mxu0 %v6564_v48  ;;  %v6609_v48 = vld [vmem:[%s9257_s3 + $0x484] ss:$8 sps:$4 sm:$0xff]  }
 0x1b2   :  { %4987 = vmatmul.mubr.bf16.vlgmr.msra.gmra.mrb[32].mxu1 %v1721_v47  ;;  %v6615_v47 = vld [vmem:[%s9257_s3 + $0x494] ss:$8 sps:$4 sm:$0xff]  }
 0x1b3   :  { %5274 = vmatmul.mubr.bf16.vlgmr.msra.gmra.mrb[32].mxu0 %v1735_v56  ;;  %4996 = vmatpush1.bf16.msra.mxu1 %v6559_v12  ;;  %v6607_v12 = vld [vmem:[%s9257_s3 + $0x480] ss:$8 sps:$4 sm:$0xff]   ;;  %v6616_v56 = vld [vmem:[%s9257_s3 + $0xb90] ss:$8 sps:$4 sm:$0xff]  }
 0x1b4   :  { %5027 = vmatprep.mubr.bf16.mxu1 %v1724_v58  ;;  %5283 = vmatpush1.bf16.msra.mxu0 %v6562_v51  ;;  %v6618_v51 = vld [vmem:[%s9257_s3 + $0xb94] ss:$8 sps:$4 sm:$0xff]   ;;  %v6624_v58 = vld [vmem:[%s9257_s3 + $0xba4] ss:$8 sps:$4 sm:$0xff]  }
 0x1b5   :  { %5314 = vmatprep.mubr.bf16.mxu0 %v1738_v15  ;;  %4997 = vmatprep.subr.bf16.mxu1 %v6567_v57  ;;  %v6621_v57 = vld [vmem:[%s9257_s3 + $0x4a4] ss:$8 sps:$4 sm:$0xff]   ;;  %v6622_v15 = vld [vmem:[%s9257_s3 + $0xba0] ss:$8 sps:$4 sm:$0xff]  }
 0x1b6   :  { %5284 = vmatprep.subr.bf16.mxu0 %v6570_v61  ;;  %v6619_v61 = vld [vmem:[%s9257_s3 + $0x4a0] ss:$8 sps:$4 sm:$0xff]  }
 0x1b7   :  { %4998 = vmatpush1.bf16.msra.mxu1 %v6565_v35  ;;  %v6627_v35 = vld [vmem:[%s9257_s3 + $0x4b4] ss:$8 sps:$4 sm:$0xff]  }
 0x1b8   :  { %5285 = vmatpush1.bf16.msra.mxu0 %v6568_v0  ;;  %4999 = vmatprep.subr.bf16.mxu1 %v6573_v42  ;;  %v6630_v0 = vld [vmem:[%s9257_s3 + $0xbb4] ss:$8 sps:$4 sm:$0xff]   ;;  %v6625_v42 = vld [vmem:[%s9257_s3 + $0x4b0] ss:$8 sps:$4 sm:$0xff]  }
 0x1b9   :  { %5286 = vmatprep.subr.bf16.mxu0 %v6576_v1  ;;  %v6628_v1 = vld [vmem:[%s9257_s3 + $0xbb0] ss:$8 sps:$4 sm:$0xff]  }
 0x1bb   :  { %5000 = vmatpush1.bf16.msra.mxu1 %v6571_v2  ;;  %v6633_v2 = vld [vmem:[%s9257_s3 + $0x4c4] ss:$8 sps:$4 sm:$0xff]  }
 0x1bc   :  { %5287 = vmatpush1.bf16.msra.mxu0 %v6574_v6  ;;  %5001 = vmatprep.subr.bf16.mxu1 %v6579_v9  ;;  %v6636_v6 = vld [vmem:[%s9257_s3 + $0xbc4] ss:$8 sps:$4 sm:$0xff]   ;;  %v6631_v9 = vld [vmem:[%s9257_s3 + $0x4c0] ss:$8 sps:$4 sm:$0xff]  }
 0x1bd   :  { %5288 = vmatprep.subr.bf16.mxu0 %v6582_v19  ;;  %v6634_v19 = vld [vmem:[%s9257_s3 + $0xbc0] ss:$8 sps:$4 sm:$0xff]  }
 0x1bf   :  { %5002 = vmatpush1.bf16.msra.mxu1 %v6577_v20  ;;  %v6639_v20 = vld [vmem:[%s9257_s3 + $0x4d4] ss:$8 sps:$4 sm:$0xff]  }
 0x1c0   :  { %5289 = vmatpush1.bf16.msra.mxu0 %v6580_v21  ;;  %5003 = vmatprep.subr.bf16.mxu1 %v6585_v23  ;;  %v194_v21 = vrot.slane %v8260_v44, %v7695_v13  ;;  %v6642_v23 = vld [vmem:[%s9257_s3 + $0xbd4] ss:$8 sps:$4 sm:$0xff]  }
 0x1c1   :  { %5290 = vmatprep.subr.bf16.mxu0 %v6588_v11  ;;  %v6993_v11 = vld [vmem:[%s9256_s2 + $0x10] sm:$0xff] }
 0x1c3   :  { %5004 = vmatpush1.bf16.msra.mxu1 %v6583_v30  ;;  %v250_v30 = vrot.slane %v6993_v11, %v8028_v4  ;;  %v6673_v11 = vld [vmem:[%s9257_s3 + $0x530] ss:$8 sps:$4 sm:$0xff]  }
 0x1c4   :  { %5291 = vmatpush1.bf16.msra.mxu0 %v6586_v24  ;;  %5005 = vmatprep.subr.bf16.mxu1 %v6591_v27  ;;  %v206_v24 = vrot.slane %v8260_v44, %v7705_v22  ;;  %v6637_v27 = vld [vmem:[%s9257_s3 + $0x4d0] ss:$8 sps:$4 sm:$0xff]   ;;  %v1162_v22 = vadd.f32 %v7758_v60, %v194_v21  ;;  %v6646_v60 = vld [vmem:[%s9257_s3 + $0xbe0] ss:$8 sps:$4 sm:$0xff]   ;;  %v6675_v21 = vld [vmem:[%s9257_s3 + $0x534] ss:$8 sps:$4 sm:$0xff]  }
 0x1c5   :  { %5292 = vmatprep.subr.bf16.mxu0 %v6594_v55  ;;  %v262_v55 = vrot.slane %v7958_v10, %v7698_v14 }
 0x1c6   :  { %v1205_v10 = vadd.f32 %v7782_v8, %v206_v24  ;;  %v6654_v8 = vld [vmem:[%s9257_s3 + $0xbf4] ss:$8 sps:$4 sm:$0xff]   ;;  %vm1627_vm1 = vcmp.gt.f32.partialorder %v1162_v22, 0.0  ;;  %v6681_v24 = vld [vmem:[%s9257_s3 + $0x544] ss:$8 sps:$4 sm:$0xff]  }
 0x1c7   :  { %5006 = vmatpush1.bf16.msra.mxu1 %v6589_v28  ;;  %v6640_v28 = vld [vmem:[%s9257_s3 + $0xbd0] ss:$8 sps:$4 sm:$0xff]  }
 0x1c8   :  { %5293 = vmatpush1.bf16.msra.mxu0 %v6592_v40  ;;  %5007 = vmatprep.subr.bf16.mxu1 %v6597_v62  ;;  %v6645_v40 = vld [vmem:[%s9257_s3 + $0x4e4] ss:$8 sps:$4 sm:$0xff]   ;;  %vm1630_vm2 = vcmp.gt.f32.partialorder %v1205_v10, 0.0 }
 0x1c9   :  { %5294 = vmatprep.subr.bf16.mxu0 %v6600_v29  ;;  %v6648_v62 = vld [vmem:[%s9257_s3 + $0xbe4] ss:$8 sps:$4 sm:$0xff]   ;;  %v1449_v29 = vadd.f32 %v7920_v53, %v250_v30  ;;  %v1659_v53 = vmul.f32 0.2, %v1162_v22  ;;  %v6676_v30 = vld [vmem:[%s9257_s3 + $0xc30] ss:$8 sps:$4 sm:$0xff]  }
 0x1cb   :  { %5008 = vmatpush1.bf16.msra.mxu1 %v6595_v54  ;;  %v6643_v54 = vld [vmem:[%s9257_s3 + $0x4e0] ss:$8 sps:$4 sm:$0xff]   ;;  %vm1641_vm3 = vcmp.gt.f32.partialorder %v1449_v29, 0.0 }
 0x1cc   :  { %5295 = vmatpush1.bf16.msra.mxu0 %v6598_v32  ;;  %5009 = vmatprep.subr.bf16.mxu1 %v6603_v38  ;;  %v1492_v32 = vadd.f32 %v7950_v5, %v262_v55  ;;  %v6651_v38 = vld [vmem:[%s9257_s3 + $0x4f4] ss:$8 sps:$4 sm:$0xff]   ;;  %v1662_v5 = vmul.f32 0.2, %v1205_v10  ;;  %v6679_v55 = vld [vmem:[%s9257_s3 + $0x540] ss:$8 sps:$4 sm:$0xff]  }
 0x1cd   :  { %5296 = vmatprep.subr.bf16.mxu0 %v6606_v41  ;;  %v1673_v41 = vmul.f32 0.2, %v1449_v29 }
 0x1ce   :  { %vm1644_vm4 = vcmp.gt.f32.partialorder %v1492_v32, 0.0 }
 0x1cf   :  { %5010 = vmatpush1.bf16.msra.mxu1 %v6601_v45  ;;  %v6649_v45 = vld [vmem:[%s9257_s3 + $0x4f0] ss:$8 sps:$4 sm:$0xff]  }
 0x1d0   :  { %5297 = vmatpush1.bf16.msra.mxu0 %v6604_v33  ;;  %5011 = vmatprep.subr.bf16.mxu1 %v6609_v48  ;;  %v1676_v33 = vmul.f32 0.2, %v1492_v32  ;;  %v6652_v48 = vld [vmem:[%s9257_s3 + $0xbf0] ss:$8 sps:$4 sm:$0xff]  }
 0x1d1   :  { %5298 = vmatprep.subr.bf16.mxu0 %v6612_v49  ;;  %v6657_v49 = vld [vmem:[%s9257_s3 + $0x504] ss:$8 sps:$4 sm:$0xff]  }
 0x1d3   :  { %5012 = vmatpush1.bf16.msra.mxu1 %v6607_v12  ;;  %v1691_v12 = vsel %vm1627_vm1, %v1162_v22, %v1659_v53  ;;  %v6690_v22 = vld [vmem:[%s9257_s3 + $0xc54] ss:$8 sps:$4 sm:$0xff]  }
 0x1d4   :  { %5299 = vmatpush1.bf16.msra.mxu0 %v6610_v50  ;;  %5013 = vmatprep.subr.bf16.mxu1 %v6615_v47  ;;  %v6660_v50 = vld [vmem:[%s9257_s3 + $0xc04] ss:$8 sps:$4 sm:$0xff]   ;;  %v1705_v47 = vsel %vm1641_vm3, %v1449_v29, %v1673_v41  ;;  %v6688_v29 = vld [vmem:[%s9257_s3 + $0xc50] ss:$8 sps:$4 sm:$0xff]   ;;  %v6702_v53 = vld [vmem:[%s9257_s3 + $0xc74] ss:$8 sps:$4 sm:$0xff]  }
 0x1d5   :  { %5300 = vmatprep.subr.bf16.mxu0 %v6618_v51  ;;  %v6655_v51 = vld [vmem:[%s9257_s3 + $0x500] ss:$8 sps:$4 sm:$0xff]   ;;  %v6700_v41 = vld [vmem:[%s9257_s3 + $0xc70] ss:$8 sps:$4 sm:$0xff]  }
 0x1d7   :  { %5014 = vmatpush1.bf16.msra.mxu1 %v6613_v52  ;;  %v1694_v52 = vsel %vm1630_vm2, %v1205_v10, %v1662_v5  ;;  %v6693_v10 = vld [vmem:[%s9257_s3 + $0x564] ss:$8 sps:$4 sm:$0xff]  }
 0x1d8   :  { %5301 = vmatpush1.bf16.msra.mxu0 %v6616_v56  ;;  %5015 = vmatprep.subr.bf16.mxu1 %v6621_v57  ;;  %v1723_v56 = vpack.c.bf16 %v1691_v12, %v1691_v12  ;;  %v6658_v57 = vld [vmem:[%s9257_s3 + $0xc00] ss:$8 sps:$4 sm:$0xff]   ;;  %v6705_v5 = vld [vmem:[%s9257_s3 + $0x584] ss:$8 sps:$4 sm:$0xff]   ;;  %v6714_v12 = vld [vmem:[%s9257_s3 + $0xc94] ss:$8 sps:$4 sm:$0xff]  }
 0x1d9   :  { %5302 = vmatprep.subr.bf16.mxu0 %v6624_v58  ;;  %v1708_v58 = vsel %vm1644_vm4, %v1492_v32, %v1676_v33  ;;  %v6691_v32 = vld [vmem:[%s9257_s3 + $0x560] ss:$8 sps:$4 sm:$0xff]  }
 0x1da   :  { %v6703_v33 = vld [vmem:[%s9257_s3 + $0x580] ss:$8 sps:$4 sm:$0xff]  }
 0x1db   :  { %5016 = vmatpush1.bf16.msra.mxu1 %v6619_v61  ;;  %v1737_v61 = vpack.c.bf16 %v1705_v47, %v1705_v47  ;;  %v6712_v47 = vld [vmem:[%s9257_s3 + $0xc90] ss:$8 sps:$4 sm:$0xff]  }
 0x1dc   :  { %5303 = vmatpush1.bf16.msra.mxu0 %v6622_v15  ;;  %5017 = vmatprep.subr.bf16.mxu1 %v6627_v35  ;;  %v6663_v15 = vld [vmem:[%s9257_s3 + $0x514] ss:$8 sps:$4 sm:$0xff]   ;;  %v1726_v35 = vpack.c.bf16 %v1694_v52, %v1694_v52  ;;  %v6720_v52 = vld [vmem:[%s9257_s3 + $0xca4] ss:$8 sps:$4 sm:$0xff]  }
 0x1dd   :  { %5304 = vmatprep.subr.bf16.mxu0 %v6630_v0  ;;  %v6666_v0 = vld [vmem:[%s9257_s3 + $0xc14] ss:$8 sps:$4 sm:$0xff]  }
 0x1df   :  { %5018 = vmatpush1.bf16.msra.mxu1 %v6625_v42  ;;  %v1740_v42 = vpack.c.bf16 %v1708_v58, %v1708_v58  ;;  %v6723_v58 = vld [vmem:[%s9257_s3 + $0x5b4] ss:$8 sps:$4 sm:$0xff]  }
 0x1e0   :  { %5305 = vmatpush1.bf16.msra.mxu0 %v6628_v1  ;;  %5019 = vmatprep.subr.bf16.mxu1 %v6633_v2  ;;  %v6661_v1 = vld [vmem:[%s9257_s3 + $0x510] ss:$8 sps:$4 sm:$0xff]  }
 0x1e1   :  { %5306 = vmatprep.subr.bf16.mxu0 %v6636_v6  ;;  %v6664_v2 = vld [vmem:[%s9257_s3 + $0xc10] ss:$8 sps:$4 sm:$0xff]   ;;  %v6669_v6 = vld [vmem:[%s9257_s3 + $0x524] ss:$8 sps:$4 sm:$0xff]  }
 0x1e3   :  { %5020 = vmatpush1.bf16.msra.mxu1 %v6631_v9  ;;  %v6672_v9 = vld [vmem:[%s9257_s3 + $0xc24] ss:$8 sps:$4 sm:$0xff]  }
 0x1e4   :  { %5307 = vmatpush1.bf16.msra.mxu0 %v6634_v19  ;;  %5021 = vmatprep.subr.bf16.mxu1 %v6639_v20  ;;  %v6667_v19 = vld [vmem:[%s9257_s3 + $0x520] ss:$8 sps:$4 sm:$0xff]  }
 0x1e5   :  { %5308 = vmatprep.subr.bf16.mxu0 %v6642_v23  ;;  %v6670_v20 = vld [vmem:[%s9257_s3 + $0xc20] ss:$8 sps:$4 sm:$0xff]   ;;  %v6678_v23 = vld [vmem:[%s9257_s3 + $0xc34] ss:$8 sps:$4 sm:$0xff]  }
 0x1e7   :  { %5022 = vmatpush1.bf16.msra.mxu1 %v6637_v27  ;;  %v6684_v27 = vld [vmem:[%s9257_s3 + $0xc44] ss:$8 sps:$4 sm:$0xff]  }
 0x1e8   :  { %5309 = vmatpush1.bf16.msra.mxu0 %v6640_v28  ;;  %5023 = vmatprep.subr.bf16.mxu1 %v6645_v40  ;;  %v6682_v28 = vld [vmem:[%s9257_s3 + $0xc40] ss:$8 sps:$4 sm:$0xff]   ;;  %v6687_v40 = vld [vmem:[%s9257_s3 + $0x554] ss:$8 sps:$4 sm:$0xff]  }
 0x1e9   :  { %5310 = vmatprep.subr.bf16.mxu0 %v6648_v62  ;;  %v6685_v62 = vld [vmem:[%s9257_s3 + $0x550] ss:$8 sps:$4 sm:$0xff]  }
 0x1eb   :  { %5024 = vmatpush1.bf16.msra.mxu1 %v6643_v54  ;;  %v6696_v54 = vld [vmem:[%s9257_s3 + $0xc64] ss:$8 sps:$4 sm:$0xff]  }
 0x1ec   :  { %5311 = vmatpush1.bf16.msra.mxu0 %v6646_v60  ;;  %5025 = vmatprep.subr.bf16.mxu1 %v6651_v38  ;;  %v6694_v60 = vld [vmem:[%s9257_s3 + $0xc60] ss:$8 sps:$4 sm:$0xff]   ;;  %v6699_v38 = vld [vmem:[%s9257_s3 + $0x574] ss:$8 sps:$4 sm:$0xff]  }
 0x1ed   :  { %5312 = vmatprep.subr.bf16.mxu0 %v6654_v8  ;;  %v6697_v8 = vld [vmem:[%s9257_s3 + $0x570] ss:$8 sps:$4 sm:$0xff]  }
 0x1ef   :  { %5026 = vmatpush1.bf16.msra.mxu1 %v6649_v45  ;;  %v6708_v45 = vld [vmem:[%s9257_s3 + $0xc84] ss:$8 sps:$4 sm:$0xff]  }
 0x1f0   :  { %5313 = vmatpush1.bf16.msra.mxu0 %v6652_v48  ;;  %5036 = vmatprep.subr.bf16.mxu1 %v6657_v49  ;;  %v6706_v48 = vld [vmem:[%s9257_s3 + $0xc80] ss:$8 sps:$4 sm:$0xff]   ;;  %v6711_v49 = vld [vmem:[%s9257_s3 + $0x594] ss:$8 sps:$4 sm:$0xff]  }
 0x1f1   :  { %5323 = vmatprep.subr.bf16.mxu0 %v6660_v50  ;;  %v6709_v50 = vld [vmem:[%s9257_s3 + $0x590] ss:$8 sps:$4 sm:$0xff]  }
 0x1f2   :  { %5028 = vmatmul.mubr.bf16.vlgmr.msra.gmra.mrb[32].mxu1 %v1723_v56  ;;  %v6715_v56 = vld [vmem:[%s9257_s3 + $0x5a0] ss:$8 sps:$4 sm:$0xff]  }
 0x1f3   :  { %5315 = vmatmul.mubr.bf16.vlgmr.msra.gmra.mrb[32].mxu0 %v1737_v61  ;;  %5037 = vmatpush1.bf16.msra.mxu1 %v6655_v51  ;;  %v6717_v51 = vld [vmem:[%s9257_s3 + $0x5a4] ss:$8 sps:$4 sm:$0xff]   ;;  %v6726_v61 = vld [vmem:[%s9257_s3 + $0xcb4] ss:$8 sps:$4 sm:$0xff]  }
 0x1f4   :  { %5068 = vmatprep.mubr.bf16.mxu1 %v1726_v35  ;;  %5324 = vmatpush1.bf16.msra.mxu0 %v6658_v57  ;;  %v6718_v57 = vld [vmem:[%s9257_s3 + $0xca0] ss:$8 sps:$4 sm:$0xff]   ;;  %v6724_v35 = vld [vmem:[%s9257_s3 + $0xcb0] ss:$8 sps:$4 sm:$0xff]  }
 0x1f5   :  { %5355 = vmatprep.mubr.bf16.mxu0 %v1740_v42  ;;  %5038 = vmatprep.subr.bf16.mxu1 %v6663_v15  ;;  %v6721_v15 = vld [vmem:[%s9257_s3 + $0x5b0] ss:$8 sps:$4 sm:$0xff]   ;;  %v6732_v42 = vld [vmem:[%s9257_s3 + $0xcc4] ss:$8 sps:$4 sm:$0xff]  }
 0x1f6   :  { %5325 = vmatprep.subr.bf16.mxu0 %v6666_v0  ;;  %v6729_v0 = vld [vmem:[%s9257_s3 + $0x5c4] ss:$8 sps:$4 sm:$0xff]  }
 0x1f7   :  { %5039 = vmatpush1.bf16.msra.mxu1 %v6661_v1  ;;  %v6727_v1 = vld [vmem:[%s9257_s3 + $0x5c0] ss:$8 sps:$4 sm:$0xff]  }
 0x1f8   :  { %5326 = vmatpush1.bf16.msra.mxu0 %v6664_v2  ;;  %5040 = vmatprep.subr.bf16.mxu1 %v6669_v6  ;;  %v6730_v2 = vld [vmem:[%s9257_s3 + $0xcc0] ss:$8 sps:$4 sm:$0xff]   ;;  %v6735_v6 = vld [vmem:[%s9257_s3 + $0x5d4] ss:$8 sps:$4 sm:$0xff]  }
 0x1f9   :  { %5327 = vmatprep.subr.bf16.mxu0 %v6672_v9  ;;  %v202_v9 = vrot.slane %v8260_v44, %v7807_v25  ;;  %v6736_v25 = vld [vmem:[%s9257_s3 + $0xcd0] ss:$8 sps:$4 sm:$0xff]  }
 0x1fb   :  { %5041 = vmatpush1.bf16.msra.mxu1 %v6667_v19  ;;  %v6738_v19 = vld [vmem:[%s9257_s3 + $0xcd4] ss:$8 sps:$4 sm:$0xff]  }
 0x1fc   :  { %5328 = vmatpush1.bf16.msra.mxu0 %v6670_v20  ;;  %5042 = vmatprep.subr.bf16.mxu1 %v6675_v21  ;;  %v6994_v20 = vld [vmem:[%s9256_s2 + $0x18] sm:$0xff] }
 0x1fd   :  { %5329 = vmatprep.subr.bf16.mxu0 %v6678_v23  ;;  %v258_v21 = vrot.slane %v6994_v20, %v7695_v13  ;;  %v214_v23 = vrot.slane %v8260_v44, %v7810_v26  ;;  %v6744_v26 = vld [vmem:[%s9257_s3 + $0xce4] ss:$8 sps:$4 sm:$0xff]   ;;  %v6781_v20 = vld [vmem:[%s9257_s3 + $0x650] ss:$8 sps:$4 sm:$0xff]  }
 0x1ff   :  { %5043 = vmatpush1.bf16.msra.mxu1 %v6673_v11  ;;  %v6733_v11 = vld [vmem:[%s9257_s3 + $0x5d0] ss:$8 sps:$4 sm:$0xff]  }
 0x200   :  { %5330 = vmatpush1.bf16.msra.mxu0 %v6676_v30  ;;  %5044 = vmatprep.subr.bf16.mxu1 %v6681_v24  ;;  %v6741_v30 = vld [vmem:[%s9257_s3 + $0x5e4] ss:$8 sps:$4 sm:$0xff]   ;;  %v1203_v24 = vadd.f32 %v7780_v7, %v202_v9  ;;  %v6742_v7 = vld [vmem:[%s9257_s3 + $0xce0] ss:$8 sps:$4 sm:$0xff]   ;;  %v6783_v9 = vld [vmem:[%s9257_s3 + $0x654] ss:$8 sps:$4 sm:$0xff]  }
 0x201   :  { %5331 = vmatprep.subr.bf16.mxu0 %v6684_v27  ;;  %v1490_v27 = vadd.f32 %v7945_v3, %v258_v21  ;;  %v6784_v21 = vld [vmem:[%s9257_s3 + $0xd50] ss:$8 sps:$4 sm:$0xff]  }
 0x202   :  { %vm1629_vm5 = vcmp.gt.f32.partialorder %v1203_v24, 0.0 }
 0x203   :  { %5045 = vmatpush1.bf16.msra.mxu1 %v6679_v55  ;;  %v1246_v55 = vadd.f32 %v7795_v18, %v214_v23  ;;  %v6750_v18 = vld [vmem:[%s9257_s3 + $0xcf4] ss:$8 sps:$4 sm:$0xff]   ;;  %v1675_v3 = vmul.f32 0.2, %v1490_v27  ;;  %vm1643_vm7 = vcmp.gt.f32.partialorder %v1490_v27, 0.0 }
 0x204   :  { %5332 = vmatpush1.bf16.msra.mxu0 %v6682_v28  ;;  %5046 = vmatprep.subr.bf16.mxu1 %v6687_v40  ;;  %v6739_v28 = vld [vmem:[%s9257_s3 + $0x5e0] ss:$8 sps:$4 sm:$0xff]   ;;  %v6747_v40 = vld [vmem:[%s9257_s3 + $0x5f4] ss:$8 sps:$4 sm:$0xff]   ;;  %v6789_v23 = vld [vmem:[%s9257_s3 + $0x664] ss:$8 sps:$4 sm:$0xff]  }
 0x205   :  { %5333 = vmatprep.subr.bf16.mxu0 %v6690_v22  ;;  %v1661_v22 = vmul.f32 0.2, %v1203_v24  ;;  %vm1632_vm6 = vcmp.gt.f32.partialorder %v1246_v55, 0.0 }
 0x207   :  { %5047 = vmatpush1.bf16.msra.mxu1 %v6685_v62  ;;  %v1664_v62 = vmul.f32 0.2, %v1246_v55 }
 0x208   :  { %5334 = vmatpush1.bf16.msra.mxu0 %v6688_v29  ;;  %5048 = vmatprep.subr.bf16.mxu1 %v6693_v10  ;;  %v6745_v29 = vld [vmem:[%s9257_s3 + $0x5f0] ss:$8 sps:$4 sm:$0xff]   ;;  %v1678_v10 = vmul.f32 0.2, %v7993_v43 }
 0x209   :  { %5335 = vmatprep.subr.bf16.mxu0 %v6696_v54  ;;  %v6748_v54 = vld [vmem:[%s9257_s3 + $0xcf0] ss:$8 sps:$4 sm:$0xff]  }
 0x20b   :  { %5049 = vmatpush1.bf16.msra.mxu1 %v6691_v32  ;;  %v6753_v32 = vld [vmem:[%s9257_s3 + $0x604] ss:$8 sps:$4 sm:$0xff]  }
 0x20c   :  { %5336 = vmatpush1.bf16.msra.mxu0 %v6694_v60  ;;  %5050 = vmatprep.subr.bf16.mxu1 %v6699_v38  ;;  %v1693_v60 = vsel %vm1629_vm5, %v1203_v24, %v1661_v22  ;;  %v6756_v38 = vld [vmem:[%s9257_s3 + $0xd04] ss:$8 sps:$4 sm:$0xff]   ;;  %v6795_v24 = vld [vmem:[%s9257_s3 + $0x674] ss:$8 sps:$4 sm:$0xff]   ;;  %v6802_v22 = vld [vmem:[%s9257_s3 + $0xd80] ss:$8 sps:$4 sm:$0xff]  }
 0x20d   :  { %5337 = vmatprep.subr.bf16.mxu0 %v6702_v53  ;;  %v1707_v53 = vsel %vm1643_vm7, %v1490_v27, %v1675_v3  ;;  %v6793_v27 = vld [vmem:[%s9257_s3 + $0x670] ss:$8 sps:$4 sm:$0xff]   ;;  %v6810_v3 = vld [vmem:[%s9257_s3 + $0xd94] ss:$8 sps:$4 sm:$0xff]  }
 0x20f   :  { %5051 = vmatpush1.bf16.msra.mxu1 %v6697_v8  ;;  %v6751_v8 = vld [vmem:[%s9257_s3 + $0x600] ss:$8 sps:$4 sm:$0xff]  }
 0x210   :  { %5338 = vmatpush1.bf16.msra.mxu0 %v6700_v41  ;;  %5052 = vmatprep.subr.bf16.mxu1 %v6705_v5  ;;  %v1696_v41 = vsel %vm1632_vm6, %v1246_v55, %v1664_v62  ;;  %v1725_v5 = vpack.c.bf16 %v1693_v60, %v1693_v60  ;;  %v6796_v55 = vld [vmem:[%s9257_s3 + $0xd70] ss:$8 sps:$4 sm:$0xff]   ;;  %v6814_v60 = vld [vmem:[%s9257_s3 + $0xda0] ss:$8 sps:$4 sm:$0xff]  }
 0x211   :  { %5339 = vmatprep.subr.bf16.mxu0 %v6708_v45  ;;  %v6754_v45 = vld [vmem:[%s9257_s3 + $0xd00] ss:$8 sps:$4 sm:$0xff]   ;;  %v6805_v62 = vld [vmem:[%s9257_s3 + $0x690] ss:$8 sps:$4 sm:$0xff]  }
 0x213   :  { %5053 = vmatpush1.bf16.msra.mxu1 %v6703_v33  ;;  %v1710_v33 = vsel %vm1646_vm8, %v7993_v43, %v1678_v10  ;;  %v6760_v43 = vld [vmem:[%s9257_s3 + $0xd10] ss:$8 sps:$4 sm:$0xff]   ;;  %v6813_v10 = vld [vmem:[%s9257_s3 + $0x6a4] ss:$8 sps:$4 sm:$0xff]  }
 0x214   :  { %5340 = vmatpush1.bf16.msra.mxu0 %v6706_v48  ;;  %5054 = vmatprep.subr.bf16.mxu1 %v6711_v49  ;;  %v1739_v48 = vpack.c.bf16 %v1707_v53, %v1707_v53  ;;  %v6759_v49 = vld [vmem:[%s9257_s3 + $0x614] ss:$8 sps:$4 sm:$0xff]  }
 0x215   :  { %5341 = vmatprep.subr.bf16.mxu0 %v6714_v12  ;;  %v1728_v12 = vpack.c.bf16 %v1696_v41, %v1696_v41  ;;  %v6822_v53 = vld [vmem:[%s9257_s3 + $0xdb4] ss:$8 sps:$4 sm:$0xff]   ;;  %v6820_v41 = vld [vmem:[%s9257_s3 + $0xdb0] ss:$8 sps:$4 sm:$0xff]  }
 0x217   :  { %5055 = vmatpush1.bf16.msra.mxu1 %v6709_v50  ;;  %v6762_v50 = vld [vmem:[%s9257_s3 + $0xd14] ss:$8 sps:$4 sm:$0xff]  }
 0x218   :  { %5342 = vmatpush1.bf16.msra.mxu0 %v6712_v47  ;;  %5056 = vmatprep.subr.bf16.mxu1 %v6717_v51  ;;  %v1742_v47 = vpack.c.bf16 %v1710_v33, %v1710_v33  ;;  %v6757_v51 = vld [vmem:[%s9257_s3 + $0x610] ss:$8 sps:$4 sm:$0xff]   ;;  %v6823_v33 = vld [vmem:[%s9257_s3 + $0x6c0] ss:$8 sps:$4 sm:$0xff]  }
 0x219   :  { %5343 = vmatprep.subr.bf16.mxu0 %v6720_v52  ;;  %v6765_v52 = vld [vmem:[%s9257_s3 + $0x624] ss:$8 sps:$4 sm:$0xff]  }
 0x21b   :  { %5057 = vmatpush1.bf16.msra.mxu1 %v6715_v56  ;;  %v6768_v56 = vld [vmem:[%s9257_s3 + $0xd24] ss:$8 sps:$4 sm:$0xff]  }
 0x21c   :  { %5344 = vmatpush1.bf16.msra.mxu0 %v6718_v57  ;;  %5058 = vmatprep.subr.bf16.mxu1 %v6723_v58  ;;  %v6763_v57 = vld [vmem:[%s9257_s3 + $0x620] ss:$8 sps:$4 sm:$0xff]  }
 0x21d   :  { %5345 = vmatprep.subr.bf16.mxu0 %v6726_v61  ;;  %v6766_v58 = vld [vmem:[%s9257_s3 + $0xd20] ss:$8 sps:$4 sm:$0xff]   ;;  %v6771_v61 = vld [vmem:[%s9257_s3 + $0x634] ss:$8 sps:$4 sm:$0xff]  }
 0x21f   :  { %5059 = vmatpush1.bf16.msra.mxu1 %v6721_v15  ;;  %v6774_v15 = vld [vmem:[%s9257_s3 + $0xd34] ss:$8 sps:$4 sm:$0xff]  }
 0x220   :  { %5346 = vmatpush1.bf16.msra.mxu0 %v6724_v35  ;;  %5060 = vmatprep.subr.bf16.mxu1 %v6729_v0  ;;  %v6769_v35 = vld [vmem:[%s9257_s3 + $0x630] ss:$8 sps:$4 sm:$0xff]  }
 0x221   :  { %5347 = vmatprep.subr.bf16.mxu0 %v6732_v42  ;;  %v6772_v0 = vld [vmem:[%s9257_s3 + $0xd30] ss:$8 sps:$4 sm:$0xff]   ;;  %v6777_v42 = vld [vmem:[%s9257_s3 + $0x644] ss:$8 sps:$4 sm:$0xff]  }
 0x223   :  { %5061 = vmatpush1.bf16.msra.mxu1 %v6727_v1  ;;  %v6780_v1 = vld [vmem:[%s9257_s3 + $0xd44] ss:$8 sps:$4 sm:$0xff]  }
 0x224   :  { %5348 = vmatpush1.bf16.msra.mxu0 %v6730_v2  ;;  %5062 = vmatprep.subr.bf16.mxu1 %v6735_v6  ;;  %v6775_v2 = vld [vmem:[%s9257_s3 + $0x640] ss:$8 sps:$4 sm:$0xff]  }
 0x225   :  { %5349 = vmatprep.subr.bf16.mxu0 %v6738_v19  ;;  %v6778_v6 = vld [vmem:[%s9257_s3 + $0xd40] ss:$8 sps:$4 sm:$0xff]   ;;  %v6786_v19 = vld [vmem:[%s9257_s3 + $0xd54] ss:$8 sps:$4 sm:$0xff]  }
 0x227   :  { %5063 = vmatpush1.bf16.msra.mxu1 %v6733_v11  ;;  %v6792_v11 = vld [vmem:[%s9257_s3 + $0xd64] ss:$8 sps:$4 sm:$0xff]  }
 0x228   :  { %5350 = vmatpush1.bf16.msra.mxu0 %v6736_v25  ;;  %5064 = vmatprep.subr.bf16.mxu1 %v6741_v30  ;;  %v6787_v25 = vld [vmem:[%s9257_s3 + $0x660] ss:$8 sps:$4 sm:$0xff]  }
 0x229   :  { %5351 = vmatprep.subr.bf16.mxu0 %v6744_v26  ;;  %v6790_v30 = vld [vmem:[%s9257_s3 + $0xd60] ss:$8 sps:$4 sm:$0xff]   ;;  %v6798_v26 = vld [vmem:[%s9257_s3 + $0xd74] ss:$8 sps:$4 sm:$0xff]  }
 0x22b   :  { %5065 = vmatpush1.bf16.msra.mxu1 %v6739_v28  ;;  %v6801_v28 = vld [vmem:[%s9257_s3 + $0x684] ss:$8 sps:$4 sm:$0xff]  }
 0x22c   :  { %5352 = vmatpush1.bf16.msra.mxu0 %v6742_v7  ;;  %5066 = vmatprep.subr.bf16.mxu1 %v6747_v40  ;;  %v6804_v7 = vld [vmem:[%s9257_s3 + $0xd84] ss:$8 sps:$4 sm:$0xff]   ;;  %v6799_v40 = vld [vmem:[%s9257_s3 + $0x680] ss:$8 sps:$4 sm:$0xff]  }
 0x22d   :  { %5353 = vmatprep.subr.bf16.mxu0 %v6750_v18  ;;  %v6807_v18 = vld [vmem:[%s9257_s3 + $0x694] ss:$8 sps:$4 sm:$0xff]  }
 0x22f   :  { %5067 = vmatpush1.bf16.msra.mxu1 %v6745_v29  ;;  %v6808_v29 = vld [vmem:[%s9257_s3 + $0xd90] ss:$8 sps:$4 sm:$0xff]  }
 0x230   :  { %5354 = vmatpush1.bf16.msra.mxu0 %v6748_v54  ;;  %5077 = vmatprep.subr.bf16.mxu1 %v6753_v32  ;;  %v6816_v54 = vld [vmem:[%s9257_s3 + $0xda4] ss:$8 sps:$4 sm:$0xff]   ;;  %v6811_v32 = vld [vmem:[%s9257_s3 + $0x6a0] ss:$8 sps:$4 sm:$0xff]  }
 0x231   :  { %5364 = vmatprep.subr.bf16.mxu0 %v6756_v38  ;;  %v6819_v38 = vld [vmem:[%s9257_s3 + $0x6b4] ss:$8 sps:$4 sm:$0xff]  }
 0x232   :  { %5069 = vmatmul.mubr.bf16.vlgmr.msra.gmra.mrb[32].mxu1 %v1725_v5  ;;  %v6825_v5 = vld [vmem:[%s9257_s3 + $0x6c4] ss:$8 sps:$4 sm:$0xff]  }
 0x233   :  { %5356 = vmatmul.mubr.bf16.vlgmr.msra.gmra.mrb[32].mxu0 %v1739_v48  ;;  %5078 = vmatpush1.bf16.msra.mxu1 %v6751_v8  ;;  %v6817_v8 = vld [vmem:[%s9257_s3 + $0x6b0] ss:$8 sps:$4 sm:$0xff]   ;;  %v6826_v48 = vld [vmem:[%s9257_s3 + $0xdc0] ss:$8 sps:$4 sm:$0xff]  }
 0x234   :  { %5109 = vmatprep.mubr.bf16.mxu1 %v1728_v12  ;;  %5365 = vmatpush1.bf16.msra.mxu0 %v6754_v45  ;;  %v6828_v45 = vld [vmem:[%s9257_s3 + $0xdc4] ss:$8 sps:$4 sm:$0xff]   ;;  %v210_v12 = vrot.slane %v8260_v44, %v7988_v39 }
 0x235   :  { %5396 = vmatprep.mubr.bf16.mxu0 %v1742_v47  ;;  %5079 = vmatprep.subr.bf16.mxu1 %v6759_v49  ;;  %v6831_v49 = vld [vmem:[%s9257_s3 + $0x6d4] ss:$8 sps:$4 sm:$0xff]   ;;  %v222_v47 = vrot.slane %v8260_v44, %v8037_v17  ;;  %v6837_v39 = vld [vmem:[%s9257_s3 + $0x6e4] ss:$8 sps:$4 sm:$0xff]  }
 0x236   :  { %5366 = vmatprep.subr.bf16.mxu0 %v6762_v50  ;;  %v6834_v50 = vld [vmem:[%s9257_s3 + $0xdd4] ss:$8 sps:$4 sm:$0xff]   ;;  %v6840_v17 = vld [vmem:[%s9257_s3 + $0xde4] ss:$8 sps:$4 sm:$0xff]  }
 0x237   :  { %5080 = vmatpush1.bf16.msra.mxu1 %v6757_v51  ;;  %v6829_v51 = vld [vmem:[%s9257_s3 + $0x6d0] ss:$8 sps:$4 sm:$0xff]   ;;  %v1287_v44 = vadd.f32 %v7829_v34, %v222_v47  ;;  %v6846_v34 = vld [vmem:[%s9257_s3 + $0xdf4] ss:$8 sps:$4 sm:$0xff]   ;;  %v6897_v47 = vld [vmem:[%s9257_s3 + $0x784] ss:$8 sps:$4 sm:$0xff]  }
 0x238   :  { %5367 = vmatpush1.bf16.msra.mxu0 %v6760_v43  ;;  %5081 = vmatprep.subr.bf16.mxu1 %v6765_v52  ;;  %v6832_v43 = vld [vmem:[%s9257_s3 + $0xdd0] ss:$8 sps:$4 sm:$0xff]   ;;  %v1244_v52 = vadd.f32 %v7790_v16, %v210_v12  ;;  %v6843_v16 = vld [vmem:[%s9257_s3 + $0x6f4] ss:$8 sps:$4 sm:$0xff]  }
 0x239   :  { %5368 = vmatprep.subr.bf16.mxu0 %v6768_v56  ;;  %v6835_v56 = vld [vmem:[%s9257_s3 + $0x6e0] ss:$8 sps:$4 sm:$0xff]   ;;  %vm1634_vm10 = vcmp.gt.f32.partialorder %v1287_v44, 0.0  ;;  %v6889_v12 = vld [vmem:[%s9257_s3 + $0x770] ss:$8 sps:$4 sm:$0xff]  }
 0x23a   :  { %vm1631_vm9 = vcmp.gt.f32.partialorder %v1244_v52, 0.0 }
 0x23b   :  { %5082 = vmatpush1.bf16.msra.mxu1 %v6763_v57  ;;  %v6838_v57 = vld [vmem:[%s9257_s3 + $0xde0] ss:$8 sps:$4 sm:$0xff]  }
 0x23c   :  { %5369 = vmatpush1.bf16.msra.mxu0 %v6766_v58  ;;  %5083 = vmatprep.subr.bf16.mxu1 %v6771_v61  ;;  %v1663_v58 = vmul.f32 0.2, %v1244_v52  ;;  %v1677_v61 = vmul.f32 0.2, %v7985_v37 }
 0x23d   :  { %5370 = vmatprep.subr.bf16.mxu0 %v6774_v15  ;;  %v1666_v15 = vmul.f32 0.2, %v1287_v44 }
 0x23f   :  { %5084 = vmatpush1.bf16.msra.mxu1 %v6769_v35  ;;  %v6841_v35 = vld [vmem:[%s9257_s3 + $0x6f0] ss:$8 sps:$4 sm:$0xff]  }
 0x240   :  { %5371 = vmatpush1.bf16.msra.mxu0 %v6772_v0  ;;  %5085 = vmatprep.subr.bf16.mxu1 %v6777_v42  ;;  %v1680_v0 = vmul.f32 0.2, %v8022_v63  ;;  %v6844_v42 = vld [vmem:[%s9257_s3 + $0xdf0] ss:$8 sps:$4 sm:$0xff]  }
 0x241   :  { %5372 = vmatprep.subr.bf16.mxu0 %v6780_v1  ;;  %v6849_v1 = vld [vmem:[%s9257_s3 + $0x704] ss:$8 sps:$4 sm:$0xff]  }
 0x243   :  { %5086 = vmatpush1.bf16.msra.mxu1 %v6775_v2  ;;  %v1695_v2 = vsel %vm1631_vm9, %v1244_v52, %v1663_v58  ;;  %v6903_v52 = vld [vmem:[%s9257_s3 + $0x794] ss:$8 sps:$4 sm:$0xff]   ;;  %v6907_v58 = vld [vmem:[%s9257_s3 + $0x7a0] ss:$8 sps:$4 sm:$0xff]  }
 0x244   :  { %5373 = vmatpush1.bf16.msra.mxu0 %v6778_v6  ;;  %5087 = vmatprep.subr.bf16.mxu1 %v6783_v9  ;;  %v6852_v6 = vld [vmem:[%s9257_s3 + $0xe04] ss:$8 sps:$4 sm:$0xff]   ;;  %v1709_v9 = vsel %vm1645_vm11, %v7985_v37, %v1677_v61  ;;  %v6855_v37 = vld [vmem:[%s9257_s3 + $0x714] ss:$8 sps:$4 sm:$0xff]  }
 0x245   :  { %5374 = vmatprep.subr.bf16.mxu0 %v6786_v19  ;;  %v6847_v19 = vld [vmem:[%s9257_s3 + $0x700] ss:$8 sps:$4 sm:$0xff]   ;;  %v6915_v61 = vld [vmem:[%s9257_s3 + $0x7b4] ss:$8 sps:$4 sm:$0xff]  }
 0x247   :  { %5088 = vmatpush1.bf16.msra.mxu1 %v6781_v20  ;;  %v1698_v20 = vsel %vm1634_vm10, %v1287_v44, %v1666_v15  ;;  %v6901_v44 = vld [vmem:[%s9257_s3 + $0x790] ss:$8 sps:$4 sm:$0xff]   ;;  %v6918_v15 = vld [vmem:[%s9257_s3 + $0xeb4] ss:$8 sps:$4 sm:$0xff]  }
 0x248   :  { %5375 = vmatpush1.bf16.msra.mxu0 %v6784_v21  ;;  %5089 = vmatprep.subr.bf16.mxu1 %v6789_v23  ;;  %v1727_v21 = vpack.c.bf16 %v1695_v2, %v1695_v2  ;;  %v6850_v23 = vld [vmem:[%s9257_s3 + $0xe00] ss:$8 sps:$4 sm:$0xff]  }
 0x249   :  { %5376 = vmatprep.subr.bf16.mxu0 %v6792_v11  ;;  %v1712_v11 = vsel %vm1648_vm12, %v8022_v63, %v1680_v0  ;;  %v6856_v63 = vld [vmem:[%s9257_s3 + $0xe10] ss:$8 sps:$4 sm:$0xff]   ;;  %v6919_v2 = vld [vmem:[%s9257_s3 + $0x7c0] ss:$8 sps:$4 sm:$0xff]  }
 0x24a   :  { %v6916_v0 = vld [vmem:[%s9257_s3 + $0xeb0] ss:$8 sps:$4 sm:$0xff]  }
 0x24b   :  { %5090 = vmatpush1.bf16.msra.mxu1 %v6787_v25  ;;  %v1741_v25 = vpack.c.bf16 %v1709_v9, %v1709_v9  ;;  %v6927_v9 = vld [vmem:[%s9257_s3 + $0x7d4] ss:$8 sps:$4 sm:$0xff]  }
 0x24c   :  { %5377 = vmatpush1.bf16.msra.mxu0 %v6790_v30  ;;  %5091 = vmatprep.subr.bf16.mxu1 %v6795_v24  ;;  %v1730_v30 = vpack.c.bf16 %v1698_v20, %v1698_v20  ;;  %v6858_v24 = vld [vmem:[%s9257_s3 + $0xe14] ss:$8 sps:$4 sm:$0xff]  }
 0x24d   :  { %5378 = vmatprep.subr.bf16.mxu0 %v6798_v26  ;;  %v1744_v26 = vpack.c.bf16 %v1712_v11, %v1712_v11  ;;  %v6928_v11 = vld [vmem:[%s9257_s3 + $0xed0] ss:$8 sps:$4 sm:$0xff]  }
 0x24f   :  { %5092 = vmatpush1.bf16.msra.mxu1 %v6793_v27  ;;  %v6853_v27 = vld [vmem:[%s9257_s3 + $0x710] ss:$8 sps:$4 sm:$0xff]  }
 0x250   :  { %5379 = vmatpush1.bf16.msra.mxu0 %v6796_v55  ;;  %5093 = vmatprep.subr.bf16.mxu1 %v6801_v28  ;;  %v6861_v55 = vld [vmem:[%s9257_s3 + $0x724] ss:$8 sps:$4 sm:$0xff]  }
 0x251   :  { %5380 = vmatprep.subr.bf16.mxu0 %v6804_v7  ;;  %v6864_v28 = vld [vmem:[%s9257_s3 + $0xe24] ss:$8 sps:$4 sm:$0xff]   ;;  %v6859_v7 = vld [vmem:[%s9257_s3 + $0x720] ss:$8 sps:$4 sm:$0xff]  }
 0x253   :  { %5094 = vmatpush1.bf16.msra.mxu1 %v6799_v40  ;;  %v6862_v40 = vld [vmem:[%s9257_s3 + $0xe20] ss:$8 sps:$4 sm:$0xff]  }
 0x254   :  { %5381 = vmatpush1.bf16.msra.mxu0 %v6802_v22  ;;  %5095 = vmatprep.subr.bf16.mxu1 %v6807_v18  ;;  %v6867_v22 = vld [vmem:[%s9257_s3 + $0x734] ss:$8 sps:$4 sm:$0xff]  }
 0x255   :  { %5382 = vmatprep.subr.bf16.mxu0 %v6810_v3  ;;  %v6870_v18 = vld [vmem:[%s9257_s3 + $0xe34] ss:$8 sps:$4 sm:$0xff]   ;;  %v6865_v3 = vld [vmem:[%s9257_s3 + $0x730] ss:$8 sps:$4 sm:$0xff]  }
 0x257   :  { %5096 = vmatpush1.bf16.msra.mxu1 %v6805_v62  ;;  %v6868_v62 = vld [vmem:[%s9257_s3 + $0xe30] ss:$8 sps:$4 sm:$0xff]  }
 0x258   :  { %5383 = vmatpush1.bf16.msra.mxu0 %v6808_v29  ;;  %5097 = vmatprep.subr.bf16.mxu1 %v6813_v10  ;;  %v6873_v29 = vld [vmem:[%s9257_s3 + $0x744] ss:$8 sps:$4 sm:$0xff]  }
 0x259   :  { %5384 = vmatprep.subr.bf16.mxu0 %v6816_v54  ;;  %v6876_v10 = vld [vmem:[%s9257_s3 + $0xe44] ss:$8 sps:$4 sm:$0xff]   ;;  %v6871_v54 = vld [vmem:[%s9257_s3 + $0x740] ss:$8 sps:$4 sm:$0xff]  }
 0x25b   :  { %5098 = vmatpush1.bf16.msra.mxu1 %v6811_v32  ;;  %v6874_v32 = vld [vmem:[%s9257_s3 + $0xe40] ss:$8 sps:$4 sm:$0xff]  }
 0x25c   :  { %5385 = vmatpush1.bf16.msra.mxu0 %v6814_v60  ;;  %5099 = vmatprep.subr.bf16.mxu1 %v6819_v38  ;;  %v6879_v60 = vld [vmem:[%s9257_s3 + $0x754] ss:$8 sps:$4 sm:$0xff]  }
 0x25d   :  { %5386 = vmatprep.subr.bf16.mxu0 %v6822_v53  ;;  %v6882_v38 = vld [vmem:[%s9257_s3 + $0xe54] ss:$8 sps:$4 sm:$0xff]   ;;  %v6877_v53 = vld [vmem:[%s9257_s3 + $0x750] ss:$8 sps:$4 sm:$0xff]  }
 0x25f   :  { %5100 = vmatpush1.bf16.msra.mxu1 %v6817_v8  ;;  %v6880_v8 = vld [vmem:[%s9257_s3 + $0xe50] ss:$8 sps:$4 sm:$0xff]  }
 0x260   :  { %5387 = vmatpush1.bf16.msra.mxu0 %v6820_v41  ;;  %5101 = vmatprep.subr.bf16.mxu1 %v6825_v5  ;;  %v6885_v41 = vld [vmem:[%s9257_s3 + $0x764] ss:$8 sps:$4 sm:$0xff]  }
 0x261   :  { %5388 = vmatprep.subr.bf16.mxu0 %v6828_v45  ;;  %v6888_v5 = vld [vmem:[%s9257_s3 + $0xe64] ss:$8 sps:$4 sm:$0xff]   ;;  %v6883_v45 = vld [vmem:[%s9257_s3 + $0x760] ss:$8 sps:$4 sm:$0xff]  }
 0x263   :  { %5102 = vmatpush1.bf16.msra.mxu1 %v6823_v33  ;;  %v6886_v33 = vld [vmem:[%s9257_s3 + $0xe60] ss:$8 sps:$4 sm:$0xff]  }
 0x264   :  { %5389 = vmatpush1.bf16.msra.mxu0 %v6826_v48  ;;  %5103 = vmatprep.subr.bf16.mxu1 %v6831_v49  ;;  %v6891_v48 = vld [vmem:[%s9257_s3 + $0x774] ss:$8 sps:$4 sm:$0xff]  }
 0x265   :  { %5390 = vmatprep.subr.bf16.mxu0 %v6834_v50  ;;  %v6894_v49 = vld [vmem:[%s9257_s3 + $0xe74] ss:$8 sps:$4 sm:$0xff]   ;;  %v6892_v50 = vld [vmem:[%s9257_s3 + $0xe70] ss:$8 sps:$4 sm:$0xff]  }
 0x267   :  { %5104 = vmatpush1.bf16.msra.mxu1 %v6829_v51  ;;  %v6900_v51 = vld [vmem:[%s9257_s3 + $0xe84] ss:$8 sps:$4 sm:$0xff]  }
 0x268   :  { %5391 = vmatpush1.bf16.msra.mxu0 %v6832_v43  ;;  %5105 = vmatprep.subr.bf16.mxu1 %v6837_v39  ;;  %v6895_v43 = vld [vmem:[%s9257_s3 + $0x780] ss:$8 sps:$4 sm:$0xff]  }
 0x269   :  { %5392 = vmatprep.subr.bf16.mxu0 %v6840_v17  ;;  %v6898_v39 = vld [vmem:[%s9257_s3 + $0xe80] ss:$8 sps:$4 sm:$0xff]   ;;  %v6906_v17 = vld [vmem:[%s9257_s3 + $0xe94] ss:$8 sps:$4 sm:$0xff]  }
 0x26b   :  { %5106 = vmatpush1.bf16.msra.mxu1 %v6835_v56  ;;  %v6904_v56 = vld [vmem:[%s9257_s3 + $0xe90] ss:$8 sps:$4 sm:$0xff]  }
 0x26c   :  { %5393 = vmatpush1.bf16.msra.mxu0 %v6838_v57  ;;  %5107 = vmatprep.subr.bf16.mxu1 %v6843_v16  ;;  %v6909_v57 = vld [vmem:[%s9257_s3 + $0x7a4] ss:$8 sps:$4 sm:$0xff]  }
 0x26d   :  { %5394 = vmatprep.subr.bf16.mxu0 %v6846_v34  ;;  %v6912_v16 = vld [vmem:[%s9257_s3 + $0xea4] ss:$8 sps:$4 sm:$0xff]   ;;  %v6910_v34 = vld [vmem:[%s9257_s3 + $0xea0] ss:$8 sps:$4 sm:$0xff]  }
 0x26f   :  { %5108 = vmatpush1.bf16.msra.mxu1 %v6841_v35  ;;  %v6913_v35 = vld [vmem:[%s9257_s3 + $0x7b0] ss:$8 sps:$4 sm:$0xff]  }
 0x270   :  { %5395 = vmatpush1.bf16.msra.mxu0 %v6844_v42  ;;  %5118 = vmatprep.subr.bf16.mxu1 %v6849_v1  ;;  %v6921_v42 = vld [vmem:[%s9257_s3 + $0x7c4] ss:$8 sps:$4 sm:$0xff]  }
 0x271   :  { %5405 = vmatprep.subr.bf16.mxu0 %v6852_v6  ;;  %v6924_v1 = vld [vmem:[%s9257_s3 + $0xec4] ss:$8 sps:$4 sm:$0xff]   ;;  %v6922_v6 = vld [vmem:[%s9257_s3 + $0xec0] ss:$8 sps:$4 sm:$0xff]  }
 0x272   :  { %5110 = vmatmul.mubr.bf16.vlgmr.msra.gmra.mrb[32].mxu1 %v1727_v21  ;;  %v6930_v21 = vld [vmem:[%s9257_s3 + $0xed4] ss:$8 sps:$4 sm:$0xff]  }
 0x273   :  { %5397 = vmatmul.mubr.bf16.vlgmr.msra.gmra.mrb[32].mxu0 %v1741_v25  ;;  %5119 = vmatpush1.bf16.msra.mxu1 %v6847_v19  ;;  %v6995_v19 = vld [vmem:[%s9256_s2 + $0x8] sm:$0xff] }
 0x274   :  { %5150 = vmatprep.mubr.bf16.mxu1 %v1730_v30  ;;  %5406 = vmatpush1.bf16.msra.mxu0 %v6850_v23  ;;  %v218_v20 = vrot.slane %v6995_v19, %v8028_v4  ;;  %v6925_v23 = vld [vmem:[%s9257_s3 + $0x7d0] ss:$8 sps:$4 sm:$0xff]   ;;  %v6933_v4 = vld [vmem:[%s9257_s3 + $0x7e4] ss:$8 sps:$4 sm:$0xff]   ;;  %v6931_v30 = vld [vmem:[%s9257_s3 + $0x7e0] ss:$8 sps:$4 sm:$0xff]  }
 0x275   :  { %5437 = vmatprep.mubr.bf16.mxu0 %v1744_v26  ;;  %5120 = vmatprep.subr.bf16.mxu1 %v6855_v37  ;;  %v6936_v37 = vld [vmem:[%s9257_s3 + $0xee4] ss:$8 sps:$4 sm:$0xff]  }
 0x276   :  { %5407 = vmatprep.subr.bf16.mxu0 %v6858_v24  ;;  %v1285_v25 = vadd.f32 %v7825_v31, %v218_v20  ;;  %v6934_v24 = vld [vmem:[%s9257_s3 + $0xee0] ss:$8 sps:$4 sm:$0xff]   ;;  %v6939_v31 = vld [vmem:[%s9257_s3 + $0x7f4] ss:$8 sps:$4 sm:$0xff]  }
 0x277   :  { %5121 = vmatpush1.bf16.msra.mxu1 %v6853_v27  ;;  %v6942_v27 = vld [vmem:[%s9257_s3 + $0xef4] ss:$8 sps:$4 sm:$0xff]   ;;  %v2259_v20 = vld [vmem:[%s9258_s4] sm:$0x3] }
 0x278   :  { %5408 = vmatpush1.bf16.msra.mxu0 %v6856_v63  ;;  %5122 = vmatprep.subr.bf16.mxu1 %v6861_v55  ;;  %v1665_v26 = vmul.f32 0.2, %v1285_v25  ;;  %vm1633_vm13 = vcmp.gt.f32.partialorder %v1285_v25, 0.0  ;;  %v1679_v63 = vmul.f32 0.2, %v8020_v59 }
 0x279   :  { %5409 = vmatprep.subr.bf16.mxu0 %v6864_v28  ;;  %v1682_v55 = vmul.f32 0.2, %v8071_v46  ;;  %v6937_v28 = vld [vmem:[%s9257_s3 + $0x7f0] ss:$8 sps:$4 sm:$0xff]  }
 0x27b   :  { %5123 = vmatpush1.bf16.msra.mxu1 %v6859_v7  ;;  %v6940_v7 = vld [vmem:[%s9257_s3 + $0xef0] ss:$8 sps:$4 sm:$0xff]  }
 0x27c   :  { %5410 = vmatpush1.bf16.msra.mxu0 %v6862_v40  ;;  %5124 = vmatprep.subr.bf16.mxu1 %v6867_v22  ;;  %v1697_v40 = vsel %vm1633_vm13, %v1285_v25, %v1665_v26  ;;  %v6945_v22 = vld [vmem:[%s9257_s3 + $0xf04] ss:$8 sps:$4 sm:$0xff]  }
 0x27d   :  { %5411 = vmatprep.subr.bf16.mxu0 %v6870_v18  ;;  %v1711_v18 = vsel %vm1647_vm14, %v8020_v59, %v1679_v63  ;;  %v6946_v59 = vld [vmem:[%s9257_s3 + $0xf10] ss:$8 sps:$4 sm:$0xff]  }
 0x27f   :  { %5125 = vmatpush1.bf16.msra.mxu1 %v6865_v3  ;;  %v1714_v3 = vsel %vm1650_vm15, %v8071_v46, %v1682_v55  ;;  %v6951_v46 = vld [vmem:[%s9257_s3 + $0xf24] ss:$8 sps:$4 sm:$0xff]  }
 0x280   :  { %5412 = vmatpush1.bf16.msra.mxu0 %v6868_v62  ;;  %5126 = vmatprep.subr.bf16.mxu1 %v6873_v29  ;;  %v1729_v62 = vpack.c.bf16 %v1697_v40, %v1697_v40  ;;  %v6943_v29 = vld [vmem:[%s9257_s3 + $0xf00] ss:$8 sps:$4 sm:$0xff]  }
 0x281   :  { %5413 = vmatprep.subr.bf16.mxu0 %v6876_v10  ;;  %v1743_v10 = vpack.c.bf16 %v1711_v18, %v1711_v18 }
 0x283   :  { %5127 = vmatpush1.bf16.msra.mxu1 %v6871_v54  ;;  %v6948_v54 = vld [vmem:[%s9257_s3 + $0xf14] ss:$8 sps:$4 sm:$0xff]  }
 0x284   :  { %5414 = vmatpush1.bf16.msra.mxu0 %v6874_v32  ;;  %5128 = vmatprep.subr.bf16.mxu1 %v6879_v60  ;;  %v1746_v32 = vpack.c.bf16 %v1714_v3, %v1714_v3  ;;  %v6949_v60 = vld [vmem:[%s9257_s3 + $0xf20] ss:$8 sps:$4 sm:$0xff]  }
 0x285   :  { %5415 = vmatprep.subr.bf16.mxu0 %v6882_v38  ;;  %v6954_v38 = vld [vmem:[%s9257_s3 + $0xf34] ss:$8 sps:$4 sm:$0xff]  }
 0x287   :  { %5129 = vmatpush1.bf16.msra.mxu1 %v6877_v53  ;;  %v6952_v53 = vld [vmem:[%s9257_s3 + $0xf30] ss:$8 sps:$4 sm:$0xff]  }
 0x288   :  { %5416 = vmatpush1.bf16.msra.mxu0 %v6880_v8  ;;  %5130 = vmatprep.subr.bf16.mxu1 %v6885_v41  ;;  %v6957_v8 = vld [vmem:[%s9257_s3 + $0xf44] ss:$8 sps:$4 sm:$0xff]   ;;  %v6955_v41 = vld [vmem:[%s9257_s3 + $0xf40] ss:$8 sps:$4 sm:$0xff]  }
 0x289   :  { %5417 = vmatprep.subr.bf16.mxu0 %v6888_v5  ;;  %v6960_v5 = vld [vmem:[%s9257_s3 + $0xf54] ss:$8 sps:$4 sm:$0xff]  }
 0x28b   :  { %5131 = vmatpush1.bf16.msra.mxu1 %v6883_v45  ;;  %v6958_v45 = vld [vmem:[%s9257_s3 + $0xf50] ss:$8 sps:$4 sm:$0xff]  }
 0x28c   :  { %5418 = vmatpush1.bf16.msra.mxu0 %v6886_v33  ;;  %5132 = vmatprep.subr.bf16.mxu1 %v6891_v48  ;;  %v6963_v33 = vld [vmem:[%s9257_s3 + $0xf64] ss:$8 sps:$4 sm:$0xff]   ;;  %v6961_v48 = vld [vmem:[%s9257_s3 + $0xf60] ss:$8 sps:$4 sm:$0xff]  }
 0x28d   :  { %5419 = vmatprep.subr.bf16.mxu0 %v6894_v49  ;;  %v6966_v49 = vld [vmem:[%s9257_s3 + $0xf74] ss:$8 sps:$4 sm:$0xff]  }
 0x28f   :  { %5133 = vmatpush1.bf16.msra.mxu1 %v6889_v12  ;;  %v6964_v12 = vld [vmem:[%s9257_s3 + $0xf70] ss:$8 sps:$4 sm:$0xff]  }
 0x290   :  { %5420 = vmatpush1.bf16.msra.mxu0 %v6892_v50  ;;  %5134 = vmatprep.subr.bf16.mxu1 %v6897_v47  ;;  %v6969_v50 = vld [vmem:[%s9257_s3 + $0xf84] ss:$8 sps:$4 sm:$0xff]   ;;  %v6967_v47 = vld [vmem:[%s9257_s3 + $0xf80] ss:$8 sps:$4 sm:$0xff]  }
 0x291   :  { %5421 = vmatprep.subr.bf16.mxu0 %v6900_v51  ;;  %v6972_v51 = vld [vmem:[%s9257_s3 + $0xf94] ss:$8 sps:$4 sm:$0xff]  }
 0x293   :  { %5135 = vmatpush1.bf16.msra.mxu1 %v6895_v43  ;;  %v6970_v43 = vld [vmem:[%s9257_s3 + $0xf90] ss:$8 sps:$4 sm:$0xff]  }
 0x294   :  { %5422 = vmatpush1.bf16.msra.mxu0 %v6898_v39  ;;  %5136 = vmatprep.subr.bf16.mxu1 %v6903_v52  ;;  %v6975_v39 = vld [vmem:[%s9257_s3 + $0xfa4] ss:$8 sps:$4 sm:$0xff]   ;;  %v6973_v52 = vld [vmem:[%s9257_s3 + $0xfa0] ss:$8 sps:$4 sm:$0xff]  }
 0x295   :  { %5423 = vmatprep.subr.bf16.mxu0 %v6906_v17  ;;  %v6978_v17 = vld [vmem:[%s9257_s3 + $0xfb4] ss:$8 sps:$4 sm:$0xff]  }
 0x297   :  { %5137 = vmatpush1.bf16.msra.mxu1 %v6901_v44  ;;  %v6976_v44 = vld [vmem:[%s9257_s3 + $0xfb0] ss:$8 sps:$4 sm:$0xff]  }
 0x298   :  { %5424 = vmatpush1.bf16.msra.mxu0 %v6904_v56  ;;  %5138 = vmatprep.subr.bf16.mxu1 %v6909_v57  ;;  %v6981_v56 = vld [vmem:[%s9257_s3 + $0xfc4] ss:$8 sps:$4 sm:$0xff]   ;;  %v6979_v57 = vld [vmem:[%s9257_s3 + $0xfc0] ss:$8 sps:$4 sm:$0xff]  }
 0x299   :  { %5425 = vmatprep.subr.bf16.mxu0 %v6912_v16  ;;  %v6984_v16 = vld [vmem:[%s9257_s3 + $0xfd4] ss:$8 sps:$4 sm:$0xff]  }
 0x29b   :  { %5139 = vmatpush1.bf16.msra.mxu1 %v6907_v58  ;;  %v6982_v58 = vld [vmem:[%s9257_s3 + $0xfd0] ss:$8 sps:$4 sm:$0xff]  }
 0x29c   :  { %5426 = vmatpush1.bf16.msra.mxu0 %v6910_v34  ;;  %5140 = vmatprep.subr.bf16.mxu1 %v6915_v61  ;;  %v6987_v34 = vld [vmem:[%s9257_s3 + $0xfe4] ss:$8 sps:$4 sm:$0xff]   ;;  %v6985_v61 = vld [vmem:[%s9257_s3 + $0xfe0] ss:$8 sps:$4 sm:$0xff]  }
 0x29d   :  { %5427 = vmatprep.subr.bf16.mxu0 %v6918_v15  ;;  %v6990_v15 = vld [vmem:[%s9257_s3 + $0xff4] ss:$8 sps:$4 sm:$0xff]  }
 0x29f   :  { %5141 = vmatpush1.bf16.msra.mxu1 %v6913_v35  ;;  %v1681_v35 = vmul.f32 0.2, %v8062_v36 }
 0x2a0   :  { %5428 = vmatpush1.bf16.msra.mxu0 %v6916_v0  ;;  %5142 = vmatprep.subr.bf16.mxu1 %v6921_v42  ;;  %v6988_v0 = vld [vmem:[%s9257_s3 + $0xff0] ss:$8 sps:$4 sm:$0xff]   ;;  %s7021_s3 = smov [#allocation2]  }
 0x2a1   :  { %5429 = vmatprep.subr.bf16.mxu0 %v6924_v1  ;;  %v1713_v42 = vsel %vm1649_vm0, %v8062_v36, %v1681_v35  ;;  %s5497_s14 = sshll.u32 %s7021_s3, 4  ;;  %s5498_s14 = int_to_ptr.vmem [resolvable:$true] %s5497_s14 }
 0x2a2   :  { %v1745_v1 = vpack.c.bf16 %v1713_v42, %v1713_v42  ;;  %s6996_s4 = scalar_lea.vmem %s5498_s14, 256  ;;  %p7001_p1 = scmp.lt.s32.totalorder %s5498_s14, %s5498_s14 }
 0x2a3   :  { %5143 = vmatpush1.bf16.msra.mxu1 %v6919_v2  ;;  %p6997_p0 = scmp.ne.s32.totalorder %s5498_s14, %s6996_s4  ;;  %p7002_p2 = scmp.lt.s32.totalorder %s6996_s4, %s6996_s4 }
 0x2a4   :  { %5430 = vmatpush1.bf16.msra.mxu0 %v6922_v6  ;;  %5144 = vmatprep.subr.bf16.mxu1 %v6927_v9 }
 0x2a5   :  { %5431 = vmatprep.subr.bf16.mxu0 %v6930_v21  ;;  %v2264_v21 = vrot.slane %v2259_v20, %v7695_v13  ;;  %p7003_p3 = por %p7002_p2, %p7001_p1 }
 0x2a7   :  { %5145 = vmatpush1.bf16.msra.mxu1 %v6925_v23  ;;  %v2268_v23 = vrot.slane %v2259_v20, %v7698_v14  ;;  %p7004_p4 = pnand %p7003_p3, %p6997_p0 }
 0x2a8   :  { %5432 = vmatpush1.bf16.msra.mxu0 %v6928_v11  ;;  %5146 = vmatprep.subr.bf16.mxu1 %v6933_v4 }
 0x2a9   :  { %5433 = vmatprep.subr.bf16.mxu0 %v6936_v37 }
 0x2ab   :  { %5147 = vmatpush1.bf16.msra.mxu1 %v6931_v30 }
 0x2ac   :  { %5434 = vmatpush1.bf16.msra.mxu0 %v6934_v24  ;;  %5148 = vmatprep.subr.bf16.mxu1 %v6939_v31 }
 0x2ad   :  { %5435 = vmatprep.subr.bf16.mxu0 %v6942_v27 }
 0x2af   :  { %5149 = vmatpush1.bf16.msra.mxu1 %v6937_v28 }
 0x2b0   :  { %5436 = vmatpush1.bf16.msra.mxu0 %v6940_v7 }
 0x2b1   :  { %5446 = vmatprep.subr.bf16.mxu0 %v6945_v22 }
 0x2b2   :  { %5151 = vmatmul.mubr.bf16.vlgmr.msra.gmra.mrb[32].mxu1 %v1729_v62 }
 0x2b3   :  { %5438 = vmatmul.mubr.bf16.vlgmr.msra.gmra.mrb[32].mxu0 %v1743_v10 }
 0x2b4   :  { %5447 = vmatpush1.bf16.msra.mxu0 %v6943_v29  ;;  %5478 = vmatprep.mubr.bf16.mxu0 %v1746_v32 }
 0x2b5   :  { %5448 = vmatprep.subr.bf16.mxu0 %v6948_v54 }
 0x2b8   :  { %5449 = vmatpush1.bf16.msra.mxu0 %v6946_v59 }
 0x2b9   :  { %5450 = vmatprep.subr.bf16.mxu0 %v6951_v46 }
 0x2bc   :  { %5451 = vmatpush1.bf16.msra.mxu0 %v6949_v60 }
 0x2bd   :  { %5452 = vmatprep.subr.bf16.mxu0 %v6954_v38 }
 0x2c0   :  { %5453 = vmatpush1.bf16.msra.mxu0 %v6952_v53 }
 0x2c1   :  { %5454 = vmatprep.subr.bf16.mxu0 %v6957_v8 }
 0x2c4   :  { %5455 = vmatpush1.bf16.msra.mxu0 %v6955_v41 }
 0x2c5   :  { %5456 = vmatprep.subr.bf16.mxu0 %v6960_v5 }
 0x2c8   :  { %5457 = vmatpush1.bf16.msra.mxu0 %v6958_v45 }
 0x2c9   :  { %5458 = vmatprep.subr.bf16.mxu0 %v6963_v33 }
 0x2cc   :  { %5459 = vmatpush1.bf16.msra.mxu0 %v6961_v48 }
 0x2cd   :  { %5460 = vmatprep.subr.bf16.mxu0 %v6966_v49 }
 0x2d0   :  { %5461 = vmatpush1.bf16.msra.mxu0 %v6964_v12 }
 0x2d1   :  { %5462 = vmatprep.subr.bf16.mxu0 %v6969_v50 }
 0x2d4   :  { %5463 = vmatpush1.bf16.msra.mxu0 %v6967_v47 }
 0x2d5   :  { %5464 = vmatprep.subr.bf16.mxu0 %v6972_v51 }
 0x2d8   :  { %5465 = vmatpush1.bf16.msra.mxu0 %v6970_v43 }
 0x2d9   :  { %5466 = vmatprep.subr.bf16.mxu0 %v6975_v39 }
 0x2dc   :  { %5467 = vmatpush1.bf16.msra.mxu0 %v6973_v52 }
 0x2dd   :  { %5468 = vmatprep.subr.bf16.mxu0 %v6978_v17 }
 0x2e0   :  { %5469 = vmatpush1.bf16.msra.mxu0 %v6976_v44 }
 0x2e1   :  { %5470 = vmatprep.subr.bf16.mxu0 %v6981_v56 }
 0x2e4   :  { %5471 = vmatpush1.bf16.msra.mxu0 %v6979_v57 }
 0x2e5   :  { %5472 = vmatprep.subr.bf16.mxu0 %v6984_v16 }
 0x2e8   :  { %5473 = vmatpush1.bf16.msra.mxu0 %v6982_v58 }
 0x2e9   :  { %5474 = vmatprep.subr.bf16.mxu0 %v6987_v34 }
 0x2ec   :  { %5475 = vmatpush1.bf16.msra.mxu0 %v6985_v61 }
 0x2ed   :  { %5476 = vmatprep.subr.bf16.mxu0 %v6990_v15 }
 0x2f0   :  { %5477 = vmatpush1.bf16.msra.mxu0 %v6988_v0 }
 0x2f3   :  { %5479 = vmatmul.mubr.bf16.vlgmr.msra.gmra.mrb[32].mxu0 %v1745_v1 }
 0x385   :  { %v5152_v2 = vpop.f32.mrb[32].mxu1 }
 0x386   :  { %v5154_v6 = vpop.f32.mrb[33].mxu1  ;;  %v6161_v11 = vadd.f32 %v5152_v2, %v2264_v21 }
 0x387   :  { %v5156_v9 = vpop.f32.mrb[34].mxu1  ;;  %v6163_v4 = vadd.f32 %v5154_v6, %v2268_v23 }
 0x388   :  { %v5157_v19 = vpop.f32.mrb[35].mxu1 }
 0x3c6   :  { %v5480_v25 = vpop.f32.mrb[32].mxu0 }
 0x3c7   :  { %v6162_v37 = vadd.f32 %v6161_v11, %v5480_v25  ;;  %v5482_v36 = vpop.f32.mrb[33].mxu0 }
 0x3c8   :  { %v6164_v30 = vadd.f32 %v6163_v4, %v5482_v36  ;;  %v5484_v24 = vpop.f32.mrb[34].mxu0 }
 0x3c9   :  { %v5487_v31 = vmax.f32 %v6162_v37, 0.0  ;;  %v5485_v26 = vpop.f32.mrb[35].mxu0 }
 0x3ca   :  { %v5488_v27 = vmax.f32 %v6164_v30, 0.0 }
 0x3cb   :  { %5489 = vst [vmem:[#allocation2] sm:$0xff] %v5487_v31 }
 0x3cc   :  { %5490 = vst [vmem:[#allocation2 + $0x8] sm:$0xff] %v5488_v27 }
 0x3cd   :  { %7007 = shalt.err (!%p7004_p4)
}
 0x3ce   :  { %s7008_s2 = scalar_lea.hbm %s9259_s5, 256 }
 0x3cf   :  { %p7009_p5 = scmp.ne.s32.totalorder %s9259_s5, %s7008_s2  ;;  %p7012_p6 = scmp.lt.u32.totalorder %s7008_s2, %s9259_s5 }
 0x3d1   :  { %p7014_p7 = pnand %p7012_p6, %p7009_p5 }
 0x3d3   :  { %7017 = shalt.err (!%p7014_p7)
}
 0x3d4   :  { %5500 = dma.vmem_to_hbm [thread:$0]  %s5498_s14, 256, %s9259_s5, [#allocation3]  }
 0x3d5   :  { %7018 = dma.done.wait [#allocation3], 256  }
 0x3d6   :  { %7019 = vsyncadd [#allocation3], 4294967040 }
 0x3d7   :  { %5504 = vsyncpa [#allocation3], 1 }

</bundles_post_ra>
